<compile_context>
chip_gen: v7x
topology: tpu7x:2x2x1
jax: 0.10.0
libtpu: 0.0.40
codegen_flags: <defaults>
</compile_context>

<pallas_src>
import functools

import jax
import jax.numpy as jnp
from jax.experimental import pallas as pl
from jax.experimental.pallas import tpu as pltpu

# ----------------------------- model config ---------------------------------
N_RESBLOCKS = 2
N_FEATS = 8
N_COLORS = 3
SCALE = 2            # args.scale[0] == 2 -> Upsampler = conv(F -> 4F) + PixelShuffle(2)
RES_SCALE = 1.0
BATCH = 2
H = 8
W = 8


def _geometry(batch, h, w):
    wp = w + 2                                    # padded width
    img = (h + 2) * wp                            # padded positions / image
    total = batch * img                           # lane extent of a slab
    g0 = wp + 1                                   # first interior position
    span = (batch - 1) * img + (h - 1) * wp + w   # lanes covering all interiors
    return wp, img, total, g0, span


# ------------------------------ fused kernel --------------------------------
def _edsr_fused_kernel(x_ref, wb_ref, bb_ref, wu_ref, bu_ref, wt_ref, bt_ref,
                       mask_ref, out_ref, pada, planes, patch_s, *,
                       h, w, feats, batch, n_resblocks, res_scale):
    f32 = jnp.float32
    wp, img, total, g0, span = _geometry(batch, h, w)
    F = feats

    # Halo lanes must read as zero; interiors are re-masked on every write-back,
    # so one cheap full zero-fill at kernel entry suffices (single grid step).
    pada[...] = jnp.zeros_like(pada)
    planes[...] = jnp.zeros_like(planes)

    mask = mask_ref[...]                          # (1, span) {0,1} interior mask

    tap_off = [(kh - 1) * wp + (kw - 1) for kh in range(3) for kw in range(3)]

    def im2col(src_ref):
        # 9 sublane-aligned copies -> (9F, span) patch slab.
        for t in range(9):
            s = g0 + tap_off[t]
            patch_s[t * F:(t + 1) * F, :] = src_ref[:, s:s + span]
        return patch_s[...]

    def conv(src_ref, w2d, bias):
        # one (Cout, 9F) x (9F, span) matmul per conv
        return jnp.dot(w2d, im2col(src_ref), preferred_element_type=f32) + bias

    def store_act(val):
        pada[:, g0:g0 + span] = val * mask        # mask re-zeroes halo columns

    # ----- head --------------------------------------------------------------
    head = conv(x_ref, wb_ref[0], bb_ref[0])
    store_act(head)

    # ----- body: ResBlocks + trailing conv + global skip ---------------------
    res = head
    for r in range(n_resblocks):
        t1 = jnp.maximum(conv(pada, wb_ref[1 + 2 * r], bb_ref[1 + 2 * r]), 0.0)
        store_act(t1)
        c2 = conv(pada, wb_ref[2 + 2 * r], bb_ref[2 + 2 * r])
        if res_scale != 1.0:                      # statically skip mul at 1.0
            c2 = c2 * res_scale
        res = c2 + res
        store_act(res)
    body_idx = 1 + 2 * n_resblocks
    res = conv(pada, wb_ref[body_idx], bb_ref[body_idx]) + head
    store_act(res)

    # ----- tail up-conv: 4 per-phase matmuls sharing one patch slab ----------
    up_patch = im2col(pada)                       # (9F, span)
    for g in range(4):
        yg = jnp.dot(wu_ref[g], up_patch, preferred_element_type=f32) + bu_ref[g]
        planes[g, :, g0:g0 + span] = yg * mask

    # ----- tail 3x3 conv in polyphase form (fused PixelShuffle(2)) -----------
    wt = wt_ref[...]                              # (3, 9F)
    bt = bt_ref[...]                              # (3, 1)
    for p in range(2):
        for q in range(2):
            for dh in range(3):
                a = p + dh - 1
                i = a % 2
                oh = (a - i) // 2                 # -1, 0 or 1
                for dw in range(3):
                    b = q + dw - 1
                    j = b % 2
                    ow = (b - j) // 2
                    t = dh * 3 + dw
                    s = g0 + oh * wp + ow
                    patch_s[t * F:(t + 1) * F, :] = planes[2 * i + j, :,
                                                           s:s + span]
            y = jnp.dot(wt, patch_s[...], preferred_element_type=f32) + bt
            out_ref[2 * p + q] = y.astype(out_ref.dtype)


# ------------------------------ host-side packing ----------------------------
def _pack_params(params):
    """Pack weights into matmul-ready slabs: (Cout, 9*F) per conv."""
    F = N_FEATS
    r2 = SCALE * SCALE

    def base_slab(wgt, bias, cin):
        # (3,3,cin,Cout) HWIO -> (Cout, 9F), column = (kh*3+kw)*F + cin
        wgt = jnp.pad(wgt, ((0, 0), (0, 0), (0, F - cin), (0, 0)))
        w2d = jnp.transpose(wgt, (3, 0, 1, 2)).reshape(wgt.shape[-1], 9 * F)
        return w2d, bias.reshape(-1, 1)

    ws, bs = [], []
    w2d, b2d = base_slab(params['head_w'], params['head_b'], N_COLORS)
    ws.append(w2d); bs.append(b2d)
    for i in range(N_RESBLOCKS):
        for t in ('1', '2'):
            w2d, b2d = base_slab(params[f'rb{i}_w{t}'], params[f'rb{i}_b{t}'], F)
            ws.append(w2d); bs.append(b2d)
    w2d, b2d = base_slab(params['body_w'], params['body_b'], F)
    ws.append(w2d); bs.append(b2d)
    wb = jnp.stack(ws)                            # (6, F, 9F)
    bb = jnp.stack(bs)                            # (6, F, 1)

    # up-conv out channel k = c*4 + g (torch PixelShuffle(2) ordering);
    # per-phase slab wu[g]: (F, 9F)
    wu = params['up_w'].reshape(3, 3, F, F, r2)               # (kh,kw,cin,c,g)
    wu = jnp.transpose(wu, (4, 3, 0, 1, 2)).reshape(r2, F, 9 * F)
    bu = jnp.transpose(params['up_b'].reshape(F, r2)).reshape(r2, F, 1)

    wt = jnp.transpose(params['tail_w'], (3, 0, 1, 2)).reshape(N_COLORS, 9 * F)
    bt = params['tail_b'].reshape(N_COLORS, 1)
    return wb, bb, wu, bu, wt, bt


def _prep_input(x):
    # (B,H,W,3) NHWC -> channels-in-sublanes, flat zero-padded spatial-in-lanes
    b, h_, w_, c = x.shape
    xc = jnp.transpose(x, (3, 0, 1, 2))                       # (C,B,H,W)
    xc = jnp.pad(xc, ((0, N_FEATS - c), (0, 0), (1, 1), (1, 1)))
    return xc.reshape(N_FEATS, b * (h_ + 2) * (w_ + 2))


def _interior_mask(batch, h, w):
    wp, img, _, g0, span = _geometry(batch, h, w)
    pos = jnp.arange(span, dtype=jnp.int32) + g0
    q = pos % img
    r = q // wp
    c = q % wp
    ok = (r >= 1) & (r <= h) & (c >= 1) & (c <= w)
    return ok.astype(jnp.float32).reshape(1, span)


@jax.jit
def edsr_forward(x, params):
    assert SCALE == 2  # polyphase tail conv written for PixelShuffle(2)
    b, h_, w_, _ = x.shape
    F = N_FEATS
    _, _, total, g0, span = _geometry(b, h_, w_)
    wb, bb, wu, bu, wt, bt = _pack_params(params)
    xk = _prep_input(x)
    mask = _interior_mask(b, h_, w_)

    kernel = functools.partial(
        _edsr_fused_kernel, h=h_, w=w_, feats=F, batch=b,
        n_resblocks=N_RESBLOCKS, res_scale=RES_SCALE)

    out = pl.pallas_call(
        kernel,
        out_shape=jax.ShapeDtypeStruct((SCALE * SCALE, N_COLORS, span),
                                       jnp.float32),
        grid=(1,),
        in_specs=[
            pl.BlockSpec(xk.shape, lambda i: (0, 0)),
            pl.BlockSpec(wb.shape, lambda i: (0, 0, 0)),
            pl.BlockSpec(bb.shape, lambda i: (0, 0, 0)),
            pl.BlockSpec(wu.shape, lambda i: (0, 0, 0)),
            pl.BlockSpec(bu.shape, lambda i: (0, 0, 0)),
            pl.BlockSpec(wt.shape, lambda i: (0, 0)),
            pl.BlockSpec(bt.shape, lambda i: (0, 0)),
            pl.BlockSpec(mask.shape, lambda i: (0, 0)),
        ],
        out_specs=pl.BlockSpec((SCALE * SCALE, N_COLORS, span),
                               lambda i: (0, 0, 0)),
        scratch_shapes=[
            pltpu.VMEM((F, total), jnp.float32),                   # padded act
            pltpu.VMEM((SCALE * SCALE, F, total), jnp.float32),    # polyphase
            pltpu.VMEM((9 * F, span), jnp.float32),                # im2col slab
        ],
        compiler_params=pltpu.CompilerParams(
            dimension_semantics=("arbitrary",)),
    )(xk, wb, bb, wu, bu, wt, bt, mask)

    # Un-flatten: columns of `out` cover padded flat positions [g0, g0+span).
    full = jnp.pad(out, ((0, 0), (0, 0), (g0, total - g0 - span)))
    full = full.reshape(SCALE, SCALE, N_COLORS, b, h_ + 2, w_ + 2)
    inner = full[:, :, :, :, 1:h_ + 1, 1:w_ + 1]          # (p,q,c,b,h,w)
    y = jnp.transpose(inner, (3, 4, 0, 5, 1, 2))          # (b,h,p,w,q,c)
    return y.reshape(b, h_ * SCALE, w_ * SCALE, N_COLORS)


# ----------------------------- parameters ------------------------------------
def init_params(key):
    """Deterministic synthetic parameters (not a checkpoint load)."""
    params = {}

    def conv_init(k, cin, cout):
        kw_, kb_ = jax.random.split(k)
        wgt = jax.random.normal(kw_, (3, 3, cin, cout), jnp.float32)
        wgt = wgt * (1.0 / jnp.sqrt(9.0 * cin))
        bias = 0.01 * jax.random.normal(kb_, (cout,), jnp.float32)
        return wgt, bias

    keys = jax.random.split(key, 4 + 2 * N_RESBLOCKS)
    ki = iter(keys)

    params['head_w'], params['head_b'] = conv_init(next(ki), N_COLORS, N_FEATS)
    for i in range(N_RESBLOCKS):
        params[f'rb{i}_w1'], params[f'rb{i}_b1'] = conv_init(next(ki), N_FEATS, N_FEATS)
        params[f'rb{i}_w2'], params[f'rb{i}_b2'] = conv_init(next(ki), N_FEATS, N_FEATS)
    params['body_w'], params['body_b'] = conv_init(next(ki), N_FEATS, N_FEATS)
    # tail: Upsampler(scale=2) = conv(n_feats -> 4*n_feats) + PixelShuffle(2)
    params['up_w'], params['up_b'] = conv_init(next(ki), N_FEATS, 4 * N_FEATS)
    params['tail_w'], params['tail_b'] = conv_init(next(ki), N_FEATS, N_COLORS)
    return params


# ----------------------------- pure-JAX reference ----------------------------
def pixel_shuffle_nhwc(x, r):
    """NHWC pixel shuffle matching torch.nn.PixelShuffle channel ordering."""
    n, h, w, crr = x.shape
    c = crr // (r * r)
    x = x.reshape(n, h, w, c, r, r)
    x = jnp.transpose(x, (0, 1, 4, 2, 5, 3))   # (n, h, r, w, r, c)
    return x.reshape(n, h * r, w * r, c)


def _conv3x3_ref(x, w, b, relu=False):
    out = jax.lax.conv_general_dilated(
        x, w, window_strides=(1, 1), padding='SAME',
        dimension_numbers=('NHWC', 'HWIO', 'NHWC'),
        precision=jax.lax.Precision.HIGHEST)
    out = out + b
    return jnp.maximum(out, 0.0) if relu else out


def edsr_ref(x, params):
    h = _conv3x3_ref(x, params['head_w'], params['head_b'])
    res = h
    for i in range(N_RESBLOCKS):
        t = _conv3x3_ref(res, params[f'rb{i}_w1'], params[f'rb{i}_b1'], relu=True)
        res = _conv3x3_ref(t, params[f'rb{i}_w2'], params[f'rb{i}_b2']) * RES_SCALE + res
    res = _conv3x3_ref(res, params['body_w'], params['body_b']) + h
    t = _conv3x3_ref(res, params['up_w'], params['up_b'])
    t = pixel_shuffle_nhwc(t, SCALE)
    return _conv3x3_ref(t, params['tail_w'], params['tail_b'])


# ----------------------------------- main ------------------------------------
if __name__ == "__main__":
    key = jax.random.PRNGKey(0)
    k_x, k_p = jax.random.split(key)
    x = jax.random.uniform(k_x, (BATCH, H, W, N_COLORS), jnp.float32) * 255.0
    params = init_params(k_p)

    out = jax.block_until_ready(edsr_forward(x, params))
    assert out.shape == (BATCH, H * SCALE, W * SCALE, N_COLORS), out.shape

    ref = jax.block_until_ready(edsr_ref(x, params))
    max_err = float(jnp.max(jnp.abs(out - ref)))
    assert jnp.allclose(out, ref, atol=1e-2, rtol=1e-3), max_err

    print("KERNEL_OK")
</pallas_src>

<mosaic_0001>
module attributes {stable_mosaic.version = 11 : i64} {
  func.func @_edsr_fused_kernel(%arg0: i32, %arg1: memref<8x200xf32, #tpu.memory_space<vmem>>, %arg2: memref<6x8x72xf32, #tpu.memory_space<vmem>>, %arg3: memref<6x8x1xf32, #tpu.memory_space<vmem>>, %arg4: memref<4x8x72xf32, #tpu.memory_space<vmem>>, %arg5: memref<4x8x1xf32, #tpu.memory_space<vmem>>, %arg6: memref<3x72xf32, #tpu.memory_space<vmem>>, %arg7: memref<3x1xf32, #tpu.memory_space<vmem>>, %arg8: memref<1x178xf32, #tpu.memory_space<vmem>>, %arg9: memref<4x3x178xf32, #tpu.memory_space<vmem>>, %arg10: memref<8x200xf32, #tpu.memory_space<vmem>>, %arg11: memref<4x8x200xf32, #tpu.memory_space<vmem>>, %arg12: memref<72x178xf32, #tpu.memory_space<vmem>>) attributes {dimension_semantics = [#tpu.dimension_semantics<arbitrary>], iteration_bounds = array<i64: 1>, scalar_prefetch = 0 : i64, scratch_operands = 3 : i64, tpu.core_type = #tpu.core_type<tc>, window_params = [{pipeline_mode = #tpu.pipeline_mode<synchronous>, transform_indices = @transform_0, window_bounds = array<i64: 8, 200>}, {pipeline_mode = #tpu.pipeline_mode<synchronous>, transform_indices = @transform_1, window_bounds = array<i64: 6, 8, 72>}, {pipeline_mode = #tpu.pipeline_mode<synchronous>, transform_indices = @transform_2, window_bounds = array<i64: 6, 8, 1>}, {pipeline_mode = #tpu.pipeline_mode<synchronous>, transform_indices = @transform_3, window_bounds = array<i64: 4, 8, 72>}, {pipeline_mode = #tpu.pipeline_mode<synchronous>, transform_indices = @transform_4, window_bounds = array<i64: 4, 8, 1>}, {pipeline_mode = #tpu.pipeline_mode<synchronous>, transform_indices = @transform_5, window_bounds = array<i64: 3, 72>}, {pipeline_mode = #tpu.pipeline_mode<synchronous>, transform_indices = @transform_6, window_bounds = array<i64: 3, 1>}, {pipeline_mode = #tpu.pipeline_mode<synchronous>, transform_indices = @transform_7, window_bounds = array<i64: 1, 178>}, {pipeline_mode = #tpu.pipeline_mode<synchronous>, transform_indices = @transform_8, window_bounds = array<i64: 4, 3, 178>}]} {
    %cst = arith.constant 0.000000e+00 : f32
    %0 = vector.broadcast %cst : f32 to vector<8x200xf32>
    %c0 = arith.constant 0 : index
    %c0_0 = arith.constant 0 : index
    %1 = vector.load %arg10[%c0, %c0_0] : memref<8x200xf32, #tpu.memory_space<vmem>>, vector<8x200xf32>
    tpu.vector_store %arg10[%c0, %c0_0], %0 {strides = array<i32>} : memref<8x200xf32, #tpu.memory_space<vmem>>, vector<8x200xf32>,
    %cst_1 = arith.constant 0.000000e+00 : f32
    %2 = vector.broadcast %cst_1 : f32 to vector<4x8x200xf32>
    %c0_2 = arith.constant 0 : index
    %c0_3 = arith.constant 0 : index
    %c0_4 = arith.constant 0 : index
    %3 = vector.load %arg11[%c0_2, %c0_3, %c0_4] : memref<4x8x200xf32, #tpu.memory_space<vmem>>, vector<4x8x200xf32>
    tpu.vector_store %arg11[%c0_2, %c0_3, %c0_4], %2 {strides = array<i32>} : memref<4x8x200xf32, #tpu.memory_space<vmem>>, vector<4x8x200xf32>,
    %c0_5 = arith.constant 0 : index
    %c0_6 = arith.constant 0 : index
    %4 = vector.load %arg8[%c0_5, %c0_6] : memref<1x178xf32, #tpu.memory_space<vmem>>, vector<1x178xf32>
    %c0_7 = arith.constant 0 : index
    %c0_8 = arith.constant 0 : index
    %c0_9 = arith.constant 0 : index
    %5 = vector.load %arg2[%c0_7, %c0_8, %c0_9] : memref<6x8x72xf32, #tpu.memory_space<vmem>>, vector<1x8x72xf32>
    %6 = vector.shape_cast %5 : vector<1x8x72xf32> to vector<8x72xf32>
    %c0_10 = arith.constant 0 : index
    %c0_11 = arith.constant 0 : index
    %c0_12 = arith.constant 0 : index
    %7 = vector.load %arg3[%c0_10, %c0_11, %c0_12] : memref<6x8x1xf32, #tpu.memory_space<vmem>>, vector<1x8x1xf32>
    %8 = vector.shape_cast %7 : vector<1x8x1xf32> to vector<8x1xf32>
    %c0_13 = arith.constant 0 : index
    %c0_14 = arith.constant 0 : index
    %9 = vector.load %arg1[%c0_13, %c0_14] : memref<8x200xf32, #tpu.memory_space<vmem>>, vector<8x178xf32>
    %c0_15 = arith.constant 0 : index
    %c0_16 = arith.constant 0 : index
    %10 = vector.load %arg12[%c0_15, %c0_16] : memref<72x178xf32, #tpu.memory_space<vmem>>, vector<8x178xf32>
    tpu.vector_store %arg12[%c0_15, %c0_16], %9 {strides = array<i32>} : memref<72x178xf32, #tpu.memory_space<vmem>>, vector<8x178xf32>,
    %c0_17 = arith.constant 0 : index
    %c1 = arith.constant 1 : index
    %11 = vector.load %arg1[%c0_17, %c1] : memref<8x200xf32, #tpu.memory_space<vmem>>, vector<8x178xf32>
    %c8 = arith.constant 8 : index
    %c0_18 = arith.constant 0 : index
    %12 = vector.load %arg12[%c8, %c0_18] : memref<72x178xf32, #tpu.memory_space<vmem>>, vector<8x178xf32>
    tpu.vector_store %arg12[%c8, %c0_18], %11 {strides = array<i32>} : memref<72x178xf32, #tpu.memory_space<vmem>>, vector<8x178xf32>,
    %c0_19 = arith.constant 0 : index
    %c2 = arith.constant 2 : index
    %13 = vector.load %arg1[%c0_19, %c2] : memref<8x200xf32, #tpu.memory_space<vmem>>, vector<8x178xf32>
    %c16 = arith.constant 16 : index
    %c0_20 = arith.constant 0 : index
    %14 = vector.load %arg12[%c16, %c0_20] : memref<72x178xf32, #tpu.memory_space<vmem>>, vector<8x178xf32>
    tpu.vector_store %arg12[%c16, %c0_20], %13 {strides = array<i32>} : memref<72x178xf32, #tpu.memory_space<vmem>>, vector<8x178xf32>,
    %c0_21 = arith.constant 0 : index
    %c10 = arith.constant 10 : index
    %15 = vector.load %arg1[%c0_21, %c10] : memref<8x200xf32, #tpu.memory_space<vmem>>, vector<8x178xf32>
    %c24 = arith.constant 24 : index
    %c0_22 = arith.constant 0 : index
    %16 = vector.load %arg12[%c24, %c0_22] : memref<72x178xf32, #tpu.memory_space<vmem>>, vector<8x178xf32>
    tpu.vector_store %arg12[%c24, %c0_22], %15 {strides = array<i32>} : memref<72x178xf32, #tpu.memory_space<vmem>>, vector<8x178xf32>,
    %c0_23 = arith.constant 0 : index
    %c11 = arith.constant 11 : index
    %17 = vector.load %arg1[%c0_23, %c11] : memref<8x200xf32, #tpu.memory_space<vmem>>, vector<8x178xf32>
    %c32 = arith.constant 32 : index
    %c0_24 = arith.constant 0 : index
    %18 = vector.load %arg12[%c32, %c0_24] : memref<72x178xf32, #tpu.memory_space<vmem>>, vector<8x178xf32>
    tpu.vector_store %arg12[%c32, %c0_24], %17 {strides = array<i32>} : memref<72x178xf32, #tpu.memory_space<vmem>>, vector<8x178xf32>,
    %c0_25 = arith.constant 0 : index
    %c12 = arith.constant 12 : index
    %19 = vector.load %arg1[%c0_25, %c12] : memref<8x200xf32, #tpu.memory_space<vmem>>, vector<8x178xf32>
    %c40 = arith.constant 40 : index
    %c0_26 = arith.constant 0 : index
    %20 = vector.load %arg12[%c40, %c0_26] : memref<72x178xf32, #tpu.memory_space<vmem>>, vector<8x178xf32>
    tpu.vector_store %arg12[%c40, %c0_26], %19 {strides = array<i32>} : memref<72x178xf32, #tpu.memory_space<vmem>>, vector<8x178xf32>,
    %c0_27 = arith.constant 0 : index
    %c20 = arith.constant 20 : index
    %21 = vector.load %arg1[%c0_27, %c20] : memref<8x200xf32, #tpu.memory_space<vmem>>, vector<8x178xf32>
    %c48 = arith.constant 48 : index
    %c0_28 = arith.constant 0 : index
    %22 = vector.load %arg12[%c48, %c0_28] : memref<72x178xf32, #tpu.memory_space<vmem>>, vector<8x178xf32>
    tpu.vector_store %arg12[%c48, %c0_28], %21 {strides = array<i32>} : memref<72x178xf32, #tpu.memory_space<vmem>>, vector<8x178xf32>,
    %c0_29 = arith.constant 0 : index
    %c21 = arith.constant 21 : index
    %23 = vector.load %arg1[%c0_29, %c21] : memref<8x200xf32, #tpu.memory_space<vmem>>, vector<8x178xf32>
    %c56 = arith.constant 56 : index
    %c0_30 = arith.constant 0 : index
    %24 = vector.load %arg12[%c56, %c0_30] : memref<72x178xf32, #tpu.memory_space<vmem>>, vector<8x178xf32>
    tpu.vector_store %arg12[%c56, %c0_30], %23 {strides = array<i32>} : memref<72x178xf32, #tpu.memory_space<vmem>>, vector<8x178xf32>,
    %c0_31 = arith.constant 0 : index
    %c22 = arith.constant 22 : index
    %25 = vector.load %arg1[%c0_31, %c22] : memref<8x200xf32, #tpu.memory_space<vmem>>, vector<8x178xf32>
    %c64 = arith.constant 64 : index
    %c0_32 = arith.constant 0 : index
    %26 = vector.load %arg12[%c64, %c0_32] : memref<72x178xf32, #tpu.memory_space<vmem>>, vector<8x178xf32>
    tpu.vector_store %arg12[%c64, %c0_32], %25 {strides = array<i32>} : memref<72x178xf32, #tpu.memory_space<vmem>>, vector<8x178xf32>,
    %c0_33 = arith.constant 0 : index
    %c0_34 = arith.constant 0 : index
    %27 = vector.load %arg12[%c0_33, %c0_34] : memref<72x178xf32, #tpu.memory_space<vmem>>, vector<72x178xf32>
    %cst_35 = arith.constant dense<0.000000e+00> : vector<8x178xf32>
    %28 = tpu.matmul %6, %27, %cst_35 {dimension_numbers = #tpu.dot_dimension_numbers<[1], [0], [0], [1], [0, 0, 1, 1], [], []>} : vector<8x72xf32>, vector<72x178xf32>, vector<8x178xf32> -> vector<8x178xf32>
    %29 = vector.broadcast %8 : vector<8x1xf32> to vector<8x178xf32>
    %30 = arith.addf %28, %29 : vector<8x178xf32>
    %31 = vector.broadcast %4 : vector<1x178xf32> to vector<8x178xf32>
    %32 = arith.mulf %30, %31 : vector<8x178xf32>
    %c0_36 = arith.constant 0 : index
    %c11_37 = arith.constant 11 : index
    %33 = vector.load %arg10[%c0_36, %c11_37] : memref<8x200xf32, #tpu.memory_space<vmem>>, vector<8x178xf32>
    tpu.vector_store %arg10[%c0_36, %c11_37], %32 {strides = array<i32>} : memref<8x200xf32, #tpu.memory_space<vmem>>, vector<8x178xf32>,
    %c1_38 = arith.constant 1 : index
    %c0_39 = arith.constant 0 : index
    %c0_40 = arith.constant 0 : index
    %34 = vector.load %arg2[%c1_38, %c0_39, %c0_40] : memref<6x8x72xf32, #tpu.memory_space<vmem>>, vector<1x8x72xf32>
    %35 = vector.shape_cast %34 : vector<1x8x72xf32> to vector<8x72xf32>
    %c1_41 = arith.constant 1 : index
    %c0_42 = arith.constant 0 : index
    %c0_43 = arith.constant 0 : index
    %36 = vector.load %arg3[%c1_41, %c0_42, %c0_43] : memref<6x8x1xf32, #tpu.memory_space<vmem>>, vector<1x8x1xf32>
    %37 = vector.shape_cast %36 : vector<1x8x1xf32> to vector<8x1xf32>
    %c0_44 = arith.constant 0 : index
    %c0_45 = arith.constant 0 : index
    %38 = vector.load %arg10[%c0_44, %c0_45] : memref<8x200xf32, #tpu.memory_space<vmem>>, vector<8x178xf32>
    %c0_46 = arith.constant 0 : index
    %c0_47 = arith.constant 0 : index
    %39 = vector.load %arg12[%c0_46, %c0_47] : memref<72x178xf32, #tpu.memory_space<vmem>>, vector<8x178xf32>
    tpu.vector_store %arg12[%c0_46, %c0_47], %38 {strides = array<i32>} : memref<72x178xf32, #tpu.memory_space<vmem>>, vector<8x178xf32>,
    %c0_48 = arith.constant 0 : index
    %c1_49 = arith.constant 1 : index
    %40 = vector.load %arg10[%c0_48, %c1_49] : memref<8x200xf32, #tpu.memory_space<vmem>>, vector<8x178xf32>
    %c8_50 = arith.constant 8 : index
    %c0_51 = arith.constant 0 : index
    %41 = vector.load %arg12[%c8_50, %c0_51] : memref<72x178xf32, #tpu.memory_space<vmem>>, vector<8x178xf32>
    tpu.vector_store %arg12[%c8_50, %c0_51], %40 {strides = array<i32>} : memref<72x178xf32, #tpu.memory_space<vmem>>, vector<8x178xf32>,
    %c0_52 = arith.constant 0 : index
    %c2_53 = arith.constant 2 : index
    %42 = vector.load %arg10[%c0_52, %c2_53] : memref<8x200xf32, #tpu.memory_space<vmem>>, vector<8x178xf32>
    %c16_54 = arith.constant 16 : index
    %c0_55 = arith.constant 0 : index
    %43 = vector.load %arg12[%c16_54, %c0_55] : memref<72x178xf32, #tpu.memory_space<vmem>>, vector<8x178xf32>
    tpu.vector_store %arg12[%c16_54, %c0_55], %42 {strides = array<i32>} : memref<72x178xf32, #tpu.memory_space<vmem>>, vector<8x178xf32>,
    %c0_56 = arith.constant 0 : index
    %c10_57 = arith.constant 10 : index
    %44 = vector.load %arg10[%c0_56, %c10_57] : memref<8x200xf32, #tpu.memory_space<vmem>>, vector<8x178xf32>
    %c24_58 = arith.constant 24 : index
    %c0_59 = arith.constant 0 : index
    %45 = vector.load %arg12[%c24_58, %c0_59] : memref<72x178xf32, #tpu.memory_space<vmem>>, vector<8x178xf32>
    tpu.vector_store %arg12[%c24_58, %c0_59], %44 {strides = array<i32>} : memref<72x178xf32, #tpu.memory_space<vmem>>, vector<8x178xf32>,
    %c0_60 = arith.constant 0 : index
    %c11_61 = arith.constant 11 : index
    %46 = vector.load %arg10[%c0_60, %c11_61] : memref<8x200xf32, #tpu.memory_space<vmem>>, vector<8x178xf32>
    %c32_62 = arith.constant 32 : index
    %c0_63 = arith.constant 0 : index
    %47 = vector.load %arg12[%c32_62, %c0_63] : memref<72x178xf32, #tpu.memory_space<vmem>>, vector<8x178xf32>
    tpu.vector_store %arg12[%c32_62, %c0_63], %46 {strides = array<i32>} : memref<72x178xf32, #tpu.memory_space<vmem>>, vector<8x178xf32>,
    %c0_64 = arith.constant 0 : index
    %c12_65 = arith.constant 12 : index
    %48 = vector.load %arg10[%c0_64, %c12_65] : memref<8x200xf32, #tpu.memory_space<vmem>>, vector<8x178xf32>
    %c40_66 = arith.constant 40 : index
    %c0_67 = arith.constant 0 : index
    %49 = vector.load %arg12[%c40_66, %c0_67] : memref<72x178xf32, #tpu.memory_space<vmem>>, vector<8x178xf32>
    tpu.vector_store %arg12[%c40_66, %c0_67], %48 {strides = array<i32>} : memref<72x178xf32, #tpu.memory_space<vmem>>, vector<8x178xf32>,
    %c0_68 = arith.constant 0 : index
    %c20_69 = arith.constant 20 : index
    %50 = vector.load %arg10[%c0_68, %c20_69] : memref<8x200xf32, #tpu.memory_space<vmem>>, vector<8x178xf32>
    %c48_70 = arith.constant 48 : index
    %c0_71 = arith.constant 0 : index
    %51 = vector.load %arg12[%c48_70, %c0_71] : memref<72x178xf32, #tpu.memory_space<vmem>>, vector<8x178xf32>
    tpu.vector_store %arg12[%c48_70, %c0_71], %50 {strides = array<i32>} : memref<72x178xf32, #tpu.memory_space<vmem>>, vector<8x178xf32>,
    %c0_72 = arith.constant 0 : index
    %c21_73 = arith.constant 21 : index
    %52 = vector.load %arg10[%c0_72, %c21_73] : memref<8x200xf32, #tpu.memory_space<vmem>>, vector<8x178xf32>
    %c56_74 = arith.constant 56 : index
    %c0_75 = arith.constant 0 : index
    %53 = vector.load %arg12[%c56_74, %c0_75] : memref<72x178xf32, #tpu.memory_space<vmem>>, vector<8x178xf32>
    tpu.vector_store %arg12[%c56_74, %c0_75], %52 {strides = array<i32>} : memref<72x178xf32, #tpu.memory_space<vmem>>, vector<8x178xf32>,
    %c0_76 = arith.constant 0 : index
    %c22_77 = arith.constant 22 : index
    %54 = vector.load %arg10[%c0_76, %c22_77] : memref<8x200xf32, #tpu.memory_space<vmem>>, vector<8x178xf32>
    %c64_78 = arith.constant 64 : index
    %c0_79 = arith.constant 0 : index
    %55 = vector.load %arg12[%c64_78, %c0_79] : memref<72x178xf32, #tpu.memory_space<vmem>>, vector<8x178xf32>
    tpu.vector_store %arg12[%c64_78, %c0_79], %54 {strides = array<i32>} : memref<72x178xf32, #tpu.memory_space<vmem>>, vector<8x178xf32>,
    %c0_80 = arith.constant 0 : index
    %c0_81 = arith.constant 0 : index
    %56 = vector.load %arg12[%c0_80, %c0_81] : memref<72x178xf32, #tpu.memory_space<vmem>>, vector<72x178xf32>
    %cst_82 = arith.constant dense<0.000000e+00> : vector<8x178xf32>
    %57 = tpu.matmul %35, %56, %cst_82 {dimension_numbers = #tpu.dot_dimension_numbers<[1], [0], [0], [1], [0, 0, 1, 1], [], []>} : vector<8x72xf32>, vector<72x178xf32>, vector<8x178xf32> -> vector<8x178xf32>
    %58 = vector.broadcast %37 : vector<8x1xf32> to vector<8x178xf32>
    %59 = arith.addf %57, %58 : vector<8x178xf32>
    %cst_83 = arith.constant 0.000000e+00 : f32
    %60 = vector.broadcast %cst_83 : f32 to vector<8x178xf32>
    %61 = arith.maximumf %59, %60 : vector<8x178xf32>
    %62 = vector.broadcast %4 : vector<1x178xf32> to vector<8x178xf32>
    %63 = arith.mulf %61, %62 : vector<8x178xf32>
    %c0_84 = arith.constant 0 : index
    %c11_85 = arith.constant 11 : index
    %64 = vector.load %arg10[%c0_84, %c11_85] : memref<8x200xf32, #tpu.memory_space<vmem>>, vector<8x178xf32>
    tpu.vector_store %arg10[%c0_84, %c11_85], %63 {strides = array<i32>} : memref<8x200xf32, #tpu.memory_space<vmem>>, vector<8x178xf32>,
    %c2_86 = arith.constant 2 : index
    %c0_87 = arith.constant 0 : index
    %c0_88 = arith.constant 0 : index
    %65 = vector.load %arg2[%c2_86, %c0_87, %c0_88] : memref<6x8x72xf32, #tpu.memory_space<vmem>>, vector<1x8x72xf32>
    %66 = vector.shape_cast %65 : vector<1x8x72xf32> to vector<8x72xf32>
    %c2_89 = arith.constant 2 : index
    %c0_90 = arith.constant 0 : index
    %c0_91 = arith.constant 0 : index
    %67 = vector.load %arg3[%c2_89, %c0_90, %c0_91] : memref<6x8x1xf32, #tpu.memory_space<vmem>>, vector<1x8x1xf32>
    %68 = vector.shape_cast %67 : vector<1x8x1xf32> to vector<8x1xf32>
    %c0_92 = arith.constant 0 : index
    %c0_93 = arith.constant 0 : index
    %69 = vector.load %arg10[%c0_92, %c0_93] : memref<8x200xf32, #tpu.memory_space<vmem>>, vector<8x178xf32>
    %c0_94 = arith.constant 0 : index
    %c0_95 = arith.constant 0 : index
    %70 = vector.load %arg12[%c0_94, %c0_95] : memref<72x178xf32, #tpu.memory_space<vmem>>, vector<8x178xf32>
    tpu.vector_store %arg12[%c0_94, %c0_95], %69 {strides = array<i32>} : memref<72x178xf32, #tpu.memory_space<vmem>>, vector<8x178xf32>,
    %c0_96 = arith.constant 0 : index
    %c1_97 = arith.constant 1 : index
    %71 = vector.load %arg10[%c0_96, %c1_97] : memref<8x200xf32, #tpu.memory_space<vmem>>, vector<8x178xf32>
    %c8_98 = arith.constant 8 : index
    %c0_99 = arith.constant 0 : index
    %72 = vector.load %arg12[%c8_98, %c0_99] : memref<72x178xf32, #tpu.memory_space<vmem>>, vector<8x178xf32>
    tpu.vector_store %arg12[%c8_98, %c0_99], %71 {strides = array<i32>} : memref<72x178xf32, #tpu.memory_space<vmem>>, vector<8x178xf32>,
    %c0_100 = arith.constant 0 : index
    %c2_101 = arith.constant 2 : index
    %73 = vector.load %arg10[%c0_100, %c2_101] : memref<8x200xf32, #tpu.memory_space<vmem>>, vector<8x178xf32>
    %c16_102 = arith.constant 16 : index
    %c0_103 = arith.constant 0 : index
    %74 = vector.load %arg12[%c16_102, %c0_103] : memref<72x178xf32, #tpu.memory_space<vmem>>, vector<8x178xf32>
    tpu.vector_store %arg12[%c16_102, %c0_103], %73 {strides = array<i32>} : memref<72x178xf32, #tpu.memory_space<vmem>>, vector<8x178xf32>,
    %c0_104 = arith.constant 0 : index
    %c10_105 = arith.constant 10 : index
    %75 = vector.load %arg10[%c0_104, %c10_105] : memref<8x200xf32, #tpu.memory_space<vmem>>, vector<8x178xf32>
    %c24_106 = arith.constant 24 : index
    %c0_107 = arith.constant 0 : index
    %76 = vector.load %arg12[%c24_106, %c0_107] : memref<72x178xf32, #tpu.memory_space<vmem>>, vector<8x178xf32>
    tpu.vector_store %arg12[%c24_106, %c0_107], %75 {strides = array<i32>} : memref<72x178xf32, #tpu.memory_space<vmem>>, vector<8x178xf32>,
    %c0_108 = arith.constant 0 : index
    %c11_109 = arith.constant 11 : index
    %77 = vector.load %arg10[%c0_108, %c11_109] : memref<8x200xf32, #tpu.memory_space<vmem>>, vector<8x178xf32>
    %c32_110 = arith.constant 32 : index
    %c0_111 = arith.constant 0 : index
    %78 = vector.load %arg12[%c32_110, %c0_111] : memref<72x178xf32, #tpu.memory_space<vmem>>, vector<8x178xf32>
    tpu.vector_store %arg12[%c32_110, %c0_111], %77 {strides = array<i32>} : memref<72x178xf32, #tpu.memory_space<vmem>>, vector<8x178xf32>,
    %c0_112 = arith.constant 0 : index
    %c12_113 = arith.constant 12 : index
    %79 = vector.load %arg10[%c0_112, %c12_113] : memref<8x200xf32, #tpu.memory_space<vmem>>, vector<8x178xf32>
    %c40_114 = arith.constant 40 : index
    %c0_115 = arith.constant 0 : index
    %80 = vector.load %arg12[%c40_114, %c0_115] : memref<72x178xf32, #tpu.memory_space<vmem>>, vector<8x178xf32>
    tpu.vector_store %arg12[%c40_114, %c0_115], %79 {strides = array<i32>} : memref<72x178xf32, #tpu.memory_space<vmem>>, vector<8x178xf32>,
    %c0_116 = arith.constant 0 : index
    %c20_117 = arith.constant 20 : index
    %81 = vector.load %arg10[%c0_116, %c20_117] : memref<8x200xf32, #tpu.memory_space<vmem>>, vector<8x178xf32>
    %c48_118 = arith.constant 48 : index
    %c0_119 = arith.constant 0 : index
    %82 = vector.load %arg12[%c48_118, %c0_119] : memref<72x178xf32, #tpu.memory_space<vmem>>, vector<8x178xf32>
    tpu.vector_store %arg12[%c48_118, %c0_119], %81 {strides = array<i32>} : memref<72x178xf32, #tpu.memory_space<vmem>>, vector<8x178xf32>,
    %c0_120 = arith.constant 0 : index
    %c21_121 = arith.constant 21 : index
    %83 = vector.load %arg10[%c0_120, %c21_121] : memref<8x200xf32, #tpu.memory_space<vmem>>, vector<8x178xf32>
    %c56_122 = arith.constant 56 : index
    %c0_123 = arith.constant 0 : index
    %84 = vector.load %arg12[%c56_122, %c0_123] : memref<72x178xf32, #tpu.memory_space<vmem>>, vector<8x178xf32>
    tpu.vector_store %arg12[%c56_122, %c0_123], %83 {strides = array<i32>} : memref<72x178xf32, #tpu.memory_space<vmem>>, vector<8x178xf32>,
    %c0_124 = arith.constant 0 : index
    %c22_125 = arith.constant 22 : index
    %85 = vector.load %arg10[%c0_124, %c22_125] : memref<8x200xf32, #tpu.memory_space<vmem>>, vector<8x178xf32>
    %c64_126 = arith.constant 64 : index
    %c0_127 = arith.constant 0 : index
    %86 = vector.load %arg12[%c64_126, %c0_127] : memref<72x178xf32, #tpu.memory_space<vmem>>, vector<8x178xf32>
    tpu.vector_store %arg12[%c64_126, %c0_127], %85 {strides = array<i32>} : memref<72x178xf32, #tpu.memory_space<vmem>>, vector<8x178xf32>,
    %c0_128 = arith.constant 0 : index
    %c0_129 = arith.constant 0 : index
    %87 = vector.load %arg12[%c0_128, %c0_129] : memref<72x178xf32, #tpu.memory_space<vmem>>, vector<72x178xf32>
    %cst_130 = arith.constant dense<0.000000e+00> : vector<8x178xf32>
    %88 = tpu.matmul %66, %87, %cst_130 {dimension_numbers = #tpu.dot_dimension_numbers<[1], [0], [0], [1], [0, 0, 1, 1], [], []>} : vector<8x72xf32>, vector<72x178xf32>, vector<8x178xf32> -> vector<8x178xf32>
    %89 = vector.broadcast %68 : vector<8x1xf32> to vector<8x178xf32>
    %90 = arith.addf %88, %89 : vector<8x178xf32>
    %91 = arith.addf %90, %30 : vector<8x178xf32>
    %92 = vector.broadcast %4 : vector<1x178xf32> to vector<8x178xf32>
    %93 = arith.mulf %91, %92 : vector<8x178xf32>
    %c0_131 = arith.constant 0 : index
    %c11_132 = arith.constant 11 : index
    %94 = vector.load %arg10[%c0_131, %c11_132] : memref<8x200xf32, #tpu.memory_space<vmem>>, vector<8x178xf32>
    tpu.vector_store %arg10[%c0_131, %c11_132], %93 {strides = array<i32>} : memref<8x200xf32, #tpu.memory_space<vmem>>, vector<8x178xf32>,
    %c3 = arith.constant 3 : index
    %c0_133 = arith.constant 0 : index
    %c0_134 = arith.constant 0 : index
    %95 = vector.load %arg2[%c3, %c0_133, %c0_134] : memref<6x8x72xf32, #tpu.memory_space<vmem>>, vector<1x8x72xf32>
    %96 = vector.shape_cast %95 : vector<1x8x72xf32> to vector<8x72xf32>
    %c3_135 = arith.constant 3 : index
    %c0_136 = arith.constant 0 : index
    %c0_137 = arith.constant 0 : index
    %97 = vector.load %arg3[%c3_135, %c0_136, %c0_137] : memref<6x8x1xf32, #tpu.memory_space<vmem>>, vector<1x8x1xf32>
    %98 = vector.shape_cast %97 : vector<1x8x1xf32> to vector<8x1xf32>
    %c0_138 = arith.constant 0 : index
    %c0_139 = arith.constant 0 : index
    %99 = vector.load %arg10[%c0_138, %c0_139] : memref<8x200xf32, #tpu.memory_space<vmem>>, vector<8x178xf32>
    %c0_140 = arith.constant 0 : index
    %c0_141 = arith.constant 0 : index
    %100 = vector.load %arg12[%c0_140, %c0_141] : memref<72x178xf32, #tpu.memory_space<vmem>>, vector<8x178xf32>
    tpu.vector_store %arg12[%c0_140, %c0_141], %99 {strides = array<i32>} : memref<72x178xf32, #tpu.memory_space<vmem>>, vector<8x178xf32>,
    %c0_142 = arith.constant 0 : index
    %c1_143 = arith.constant 1 : index
    %101 = vector.load %arg10[%c0_142, %c1_143] : memref<8x200xf32, #tpu.memory_space<vmem>>, vector<8x178xf32>
    %c8_144 = arith.constant 8 : index
    %c0_145 = arith.constant 0 : index
    %102 = vector.load %arg12[%c8_144, %c0_145] : memref<72x178xf32, #tpu.memory_space<vmem>>, vector<8x178xf32>
    tpu.vector_store %arg12[%c8_144, %c0_145], %101 {strides = array<i32>} : memref<72x178xf32, #tpu.memory_space<vmem>>, vector<8x178xf32>,
    %c0_146 = arith.constant 0 : index
    %c2_147 = arith.constant 2 : index
    %103 = vector.load %arg10[%c0_146, %c2_147] : memref<8x200xf32, #tpu.memory_space<vmem>>, vector<8x178xf32>
    %c16_148 = arith.constant 16 : index
    %c0_149 = arith.constant 0 : index
    %104 = vector.load %arg12[%c16_148, %c0_149] : memref<72x178xf32, #tpu.memory_space<vmem>>, vector<8x178xf32>
    tpu.vector_store %arg12[%c16_148, %c0_149], %103 {strides = array<i32>} : memref<72x178xf32, #tpu.memory_space<vmem>>, vector<8x178xf32>,
    %c0_150 = arith.constant 0 : index
    %c10_151 = arith.constant 10 : index
    %105 = vector.load %arg10[%c0_150, %c10_151] : memref<8x200xf32, #tpu.memory_space<vmem>>, vector<8x178xf32>
    %c24_152 = arith.constant 24 : index
    %c0_153 = arith.constant 0 : index
    %106 = vector.load %arg12[%c24_152, %c0_153] : memref<72x178xf32, #tpu.memory_space<vmem>>, vector<8x178xf32>
    tpu.vector_store %arg12[%c24_152, %c0_153], %105 {strides = array<i32>} : memref<72x178xf32, #tpu.memory_space<vmem>>, vector<8x178xf32>,
    %c0_154 = arith.constant 0 : index
    %c11_155 = arith.constant 11 : index
    %107 = vector.load %arg10[%c0_154, %c11_155] : memref<8x200xf32, #tpu.memory_space<vmem>>, vector<8x178xf32>
    %c32_156 = arith.constant 32 : index
    %c0_157 = arith.constant 0 : index
    %108 = vector.load %arg12[%c32_156, %c0_157] : memref<72x178xf32, #tpu.memory_space<vmem>>, vector<8x178xf32>
    tpu.vector_store %arg12[%c32_156, %c0_157], %107 {strides = array<i32>} : memref<72x178xf32, #tpu.memory_space<vmem>>, vector<8x178xf32>,
    %c0_158 = arith.constant 0 : index
    %c12_159 = arith.constant 12 : index
    %109 = vector.load %arg10[%c0_158, %c12_159] : memref<8x200xf32, #tpu.memory_space<vmem>>, vector<8x178xf32>
    %c40_160 = arith.constant 40 : index
    %c0_161 = arith.constant 0 : index
    %110 = vector.load %arg12[%c40_160, %c0_161] : memref<72x178xf32, #tpu.memory_space<vmem>>, vector<8x178xf32>
    tpu.vector_store %arg12[%c40_160, %c0_161], %109 {strides = array<i32>} : memref<72x178xf32, #tpu.memory_space<vmem>>, vector<8x178xf32>,
    %c0_162 = arith.constant 0 : index
    %c20_163 = arith.constant 20 : index
    %111 = vector.load %arg10[%c0_162, %c20_163] : memref<8x200xf32, #tpu.memory_space<vmem>>, vector<8x178xf32>
    %c48_164 = arith.constant 48 : index
    %c0_165 = arith.constant 0 : index
    %112 = vector.load %arg12[%c48_164, %c0_165] : memref<72x178xf32, #tpu.memory_space<vmem>>, vector<8x178xf32>
    tpu.vector_store %arg12[%c48_164, %c0_165], %111 {strides = array<i32>} : memref<72x178xf32, #tpu.memory_space<vmem>>, vector<8x178xf32>,
    %c0_166 = arith.constant 0 : index
    %c21_167 = arith.constant 21 : index
    %113 = vector.load %arg10[%c0_166, %c21_167] : memref<8x200xf32, #tpu.memory_space<vmem>>, vector<8x178xf32>
    %c56_168 = arith.constant 56 : index
    %c0_169 = arith.constant 0 : index
    %114 = vector.load %arg12[%c56_168, %c0_169] : memref<72x178xf32, #tpu.memory_space<vmem>>, vector<8x178xf32>
    tpu.vector_store %arg12[%c56_168, %c0_169], %113 {strides = array<i32>} : memref<72x178xf32, #tpu.memory_space<vmem>>, vector<8x178xf32>,
    %c0_170 = arith.constant 0 : index
    %c22_171 = arith.constant 22 : index
    %115 = vector.load %arg10[%c0_170, %c22_171] : memref<8x200xf32, #tpu.memory_space<vmem>>, vector<8x178xf32>
    %c64_172 = arith.constant 64 : index
    %c0_173 = arith.constant 0 : index
    %116 = vector.load %arg12[%c64_172, %c0_173] : memref<72x178xf32, #tpu.memory_space<vmem>>, vector<8x178xf32>
    tpu.vector_store %arg12[%c64_172, %c0_173], %115 {strides = array<i32>} : memref<72x178xf32, #tpu.memory_space<vmem>>, vector<8x178xf32>,
    %c0_174 = arith.constant 0 : index
    %c0_175 = arith.constant 0 : index
    %117 = vector.load %arg12[%c0_174, %c0_175] : memref<72x178xf32, #tpu.memory_space<vmem>>, vector<72x178xf32>
    %cst_176 = arith.constant dense<0.000000e+00> : vector<8x178xf32>
    %118 = tpu.matmul %96, %117, %cst_176 {dimension_numbers = #tpu.dot_dimension_numbers<[1], [0], [0], [1], [0, 0, 1, 1], [], []>} : vector<8x72xf32>, vector<72x178xf32>, vector<8x178xf32> -> vector<8x178xf32>
    %119 = vector.broadcast %98 : vector<8x1xf32> to vector<8x178xf32>
    %120 = arith.addf %118, %119 : vector<8x178xf32>
    %cst_177 = arith.constant 0.000000e+00 : f32
    %121 = vector.broadcast %cst_177 : f32 to vector<8x178xf32>
    %122 = arith.maximumf %120, %121 : vector<8x178xf32>
    %123 = vector.broadcast %4 : vector<1x178xf32> to vector<8x178xf32>
    %124 = arith.mulf %122, %123 : vector<8x178xf32>
    %c0_178 = arith.constant 0 : index
    %c11_179 = arith.constant 11 : index
    %125 = vector.load %arg10[%c0_178, %c11_179] : memref<8x200xf32, #tpu.memory_space<vmem>>, vector<8x178xf32>
    tpu.vector_store %arg10[%c0_178, %c11_179], %124 {strides = array<i32>} : memref<8x200xf32, #tpu.memory_space<vmem>>, vector<8x178xf32>,
    %c4 = arith.constant 4 : index
    %c0_180 = arith.constant 0 : index
    %c0_181 = arith.constant 0 : index
    %126 = vector.load %arg2[%c4, %c0_180, %c0_181] : memref<6x8x72xf32, #tpu.memory_space<vmem>>, vector<1x8x72xf32>
    %127 = vector.shape_cast %126 : vector<1x8x72xf32> to vector<8x72xf32>
    %c4_182 = arith.constant 4 : index
    %c0_183 = arith.constant 0 : index
    %c0_184 = arith.constant 0 : index
    %128 = vector.load %arg3[%c4_182, %c0_183, %c0_184] : memref<6x8x1xf32, #tpu.memory_space<vmem>>, vector<1x8x1xf32>
    %129 = vector.shape_cast %128 : vector<1x8x1xf32> to vector<8x1xf32>
    %c0_185 = arith.constant 0 : index
    %c0_186 = arith.constant 0 : index
    %130 = vector.load %arg10[%c0_185, %c0_186] : memref<8x200xf32, #tpu.memory_space<vmem>>, vector<8x178xf32>
    %c0_187 = arith.constant 0 : index
    %c0_188 = arith.constant 0 : index
    %131 = vector.load %arg12[%c0_187, %c0_188] : memref<72x178xf32, #tpu.memory_space<vmem>>, vector<8x178xf32>
    tpu.vector_store %arg12[%c0_187, %c0_188], %130 {strides = array<i32>} : memref<72x178xf32, #tpu.memory_space<vmem>>, vector<8x178xf32>,
    %c0_189 = arith.constant 0 : index
    %c1_190 = arith.constant 1 : index
    %132 = vector.load %arg10[%c0_189, %c1_190] : memref<8x200xf32, #tpu.memory_space<vmem>>, vector<8x178xf32>
    %c8_191 = arith.constant 8 : index
    %c0_192 = arith.constant 0 : index
    %133 = vector.load %arg12[%c8_191, %c0_192] : memref<72x178xf32, #tpu.memory_space<vmem>>, vector<8x178xf32>
    tpu.vector_store %arg12[%c8_191, %c0_192], %132 {strides = array<i32>} : memref<72x178xf32, #tpu.memory_space<vmem>>, vector<8x178xf32>,
    %c0_193 = arith.constant 0 : index
    %c2_194 = arith.constant 2 : index
    %134 = vector.load %arg10[%c0_193, %c2_194] : memref<8x200xf32, #tpu.memory_space<vmem>>, vector<8x178xf32>
    %c16_195 = arith.constant 16 : index
    %c0_196 = arith.constant 0 : index
    %135 = vector.load %arg12[%c16_195, %c0_196] : memref<72x178xf32, #tpu.memory_space<vmem>>, vector<8x178xf32>
    tpu.vector_store %arg12[%c16_195, %c0_196], %134 {strides = array<i32>} : memref<72x178xf32, #tpu.memory_space<vmem>>, vector<8x178xf32>,
    %c0_197 = arith.constant 0 : index
    %c10_198 = arith.constant 10 : index
    %136 = vector.load %arg10[%c0_197, %c10_198] : memref<8x200xf32, #tpu.memory_space<vmem>>, vector<8x178xf32>
    %c24_199 = arith.constant 24 : index
    %c0_200 = arith.constant 0 : index
    %137 = vector.load %arg12[%c24_199, %c0_200] : memref<72x178xf32, #tpu.memory_space<vmem>>, vector<8x178xf32>
    tpu.vector_store %arg12[%c24_199, %c0_200], %136 {strides = array<i32>} : memref<72x178xf32, #tpu.memory_space<vmem>>, vector<8x178xf32>,
    %c0_201 = arith.constant 0 : index
    %c11_202 = arith.constant 11 : index
    %138 = vector.load %arg10[%c0_201, %c11_202] : memref<8x200xf32, #tpu.memory_space<vmem>>, vector<8x178xf32>
    %c32_203 = arith.constant 32 : index
    %c0_204 = arith.constant 0 : index
    %139 = vector.load %arg12[%c32_203, %c0_204] : memref<72x178xf32, #tpu.memory_space<vmem>>, vector<8x178xf32>
    tpu.vector_store %arg12[%c32_203, %c0_204], %138 {strides = array<i32>} : memref<72x178xf32, #tpu.memory_space<vmem>>, vector<8x178xf32>,
    %c0_205 = arith.constant 0 : index
    %c12_206 = arith.constant 12 : index
    %140 = vector.load %arg10[%c0_205, %c12_206] : memref<8x200xf32, #tpu.memory_space<vmem>>, vector<8x178xf32>
    %c40_207 = arith.constant 40 : index
    %c0_208 = arith.constant 0 : index
    %141 = vector.load %arg12[%c40_207, %c0_208] : memref<72x178xf32, #tpu.memory_space<vmem>>, vector<8x178xf32>
    tpu.vector_store %arg12[%c40_207, %c0_208], %140 {strides = array<i32>} : memref<72x178xf32, #tpu.memory_space<vmem>>, vector<8x178xf32>,
    %c0_209 = arith.constant 0 : index
    %c20_210 = arith.constant 20 : index
    %142 = vector.load %arg10[%c0_209, %c20_210] : memref<8x200xf32, #tpu.memory_space<vmem>>, vector<8x178xf32>
    %c48_211 = arith.constant 48 : index
    %c0_212 = arith.constant 0 : index
    %143 = vector.load %arg12[%c48_211, %c0_212] : memref<72x178xf32, #tpu.memory_space<vmem>>, vector<8x178xf32>
    tpu.vector_store %arg12[%c48_211, %c0_212], %142 {strides = array<i32>} : memref<72x178xf32, #tpu.memory_space<vmem>>, vector<8x178xf32>,
    %c0_213 = arith.constant 0 : index
    %c21_214 = arith.constant 21 : index
    %144 = vector.load %arg10[%c0_213, %c21_214] : memref<8x200xf32, #tpu.memory_space<vmem>>, vector<8x178xf32>
    %c56_215 = arith.constant 56 : index
    %c0_216 = arith.constant 0 : index
    %145 = vector.load %arg12[%c56_215, %c0_216] : memref<72x178xf32, #tpu.memory_space<vmem>>, vector<8x178xf32>
    tpu.vector_store %arg12[%c56_215, %c0_216], %144 {strides = array<i32>} : memref<72x178xf32, #tpu.memory_space<vmem>>, vector<8x178xf32>,
    %c0_217 = arith.constant 0 : index
    %c22_218 = arith.constant 22 : index
    %146 = vector.load %arg10[%c0_217, %c22_218] : memref<8x200xf32, #tpu.memory_space<vmem>>, vector<8x178xf32>
    %c64_219 = arith.constant 64 : index
    %c0_220 = arith.constant 0 : index
    %147 = vector.load %arg12[%c64_219, %c0_220] : memref<72x178xf32, #tpu.memory_space<vmem>>, vector<8x178xf32>
    tpu.vector_store %arg12[%c64_219, %c0_220], %146 {strides = array<i32>} : memref<72x178xf32, #tpu.memory_space<vmem>>, vector<8x178xf32>,
    %c0_221 = arith.constant 0 : index
    %c0_222 = arith.constant 0 : index
    %148 = vector.load %arg12[%c0_221, %c0_222] : memref<72x178xf32, #tpu.memory_space<vmem>>, vector<72x178xf32>
    %cst_223 = arith.constant dense<0.000000e+00> : vector<8x178xf32>
    %149 = tpu.matmul %127, %148, %cst_223 {dimension_numbers = #tpu.dot_dimension_numbers<[1], [0], [0], [1], [0, 0, 1, 1], [], []>} : vector<8x72xf32>, vector<72x178xf32>, vector<8x178xf32> -> vector<8x178xf32>
    %150 = vector.broadcast %129 : vector<8x1xf32> to vector<8x178xf32>
    %151 = arith.addf %149, %150 : vector<8x178xf32>
    %152 = arith.addf %151, %91 : vector<8x178xf32>
    %153 = vector.broadcast %4 : vector<1x178xf32> to vector<8x178xf32>
    %154 = arith.mulf %152, %153 : vector<8x178xf32>
    %c0_224 = arith.constant 0 : index
    %c11_225 = arith.constant 11 : index
    %155 = vector.load %arg10[%c0_224, %c11_225] : memref<8x200xf32, #tpu.memory_space<vmem>>, vector<8x178xf32>
    tpu.vector_store %arg10[%c0_224, %c11_225], %154 {strides = array<i32>} : memref<8x200xf32, #tpu.memory_space<vmem>>, vector<8x178xf32>,
    %c5 = arith.constant 5 : index
    %c0_226 = arith.constant 0 : index
    %c0_227 = arith.constant 0 : index
    %156 = vector.load %arg2[%c5, %c0_226, %c0_227] : memref<6x8x72xf32, #tpu.memory_space<vmem>>, vector<1x8x72xf32>
    %157 = vector.shape_cast %156 : vector<1x8x72xf32> to vector<8x72xf32>
    %c5_228 = arith.constant 5 : index
    %c0_229 = arith.constant 0 : index
    %c0_230 = arith.constant 0 : index
    %158 = vector.load %arg3[%c5_228, %c0_229, %c0_230] : memref<6x8x1xf32, #tpu.memory_space<vmem>>, vector<1x8x1xf32>
    %159 = vector.shape_cast %158 : vector<1x8x1xf32> to vector<8x1xf32>
    %c0_231 = arith.constant 0 : index
    %c0_232 = arith.constant 0 : index
    %160 = vector.load %arg10[%c0_231, %c0_232] : memref<8x200xf32, #tpu.memory_space<vmem>>, vector<8x178xf32>
    %c0_233 = arith.constant 0 : index
    %c0_234 = arith.constant 0 : index
    %161 = vector.load %arg12[%c0_233, %c0_234] : memref<72x178xf32, #tpu.memory_space<vmem>>, vector<8x178xf32>
    tpu.vector_store %arg12[%c0_233, %c0_234], %160 {strides = array<i32>} : memref<72x178xf32, #tpu.memory_space<vmem>>, vector<8x178xf32>,
    %c0_235 = arith.constant 0 : index
    %c1_236 = arith.constant 1 : index
    %162 = vector.load %arg10[%c0_235, %c1_236] : memref<8x200xf32, #tpu.memory_space<vmem>>, vector<8x178xf32>
    %c8_237 = arith.constant 8 : index
    %c0_238 = arith.constant 0 : index
    %163 = vector.load %arg12[%c8_237, %c0_238] : memref<72x178xf32, #tpu.memory_space<vmem>>, vector<8x178xf32>
    tpu.vector_store %arg12[%c8_237, %c0_238], %162 {strides = array<i32>} : memref<72x178xf32, #tpu.memory_space<vmem>>, vector<8x178xf32>,
    %c0_239 = arith.constant 0 : index
    %c2_240 = arith.constant 2 : index
    %164 = vector.load %arg10[%c0_239, %c2_240] : memref<8x200xf32, #tpu.memory_space<vmem>>, vector<8x178xf32>
    %c16_241 = arith.constant 16 : index
    %c0_242 = arith.constant 0 : index
    %165 = vector.load %arg12[%c16_241, %c0_242] : memref<72x178xf32, #tpu.memory_space<vmem>>, vector<8x178xf32>
    tpu.vector_store %arg12[%c16_241, %c0_242], %164 {strides = array<i32>} : memref<72x178xf32, #tpu.memory_space<vmem>>, vector<8x178xf32>,
    %c0_243 = arith.constant 0 : index
    %c10_244 = arith.constant 10 : index
    %166 = vector.load %arg10[%c0_243, %c10_244] : memref<8x200xf32, #tpu.memory_space<vmem>>, vector<8x178xf32>
    %c24_245 = arith.constant 24 : index
    %c0_246 = arith.constant 0 : index
    %167 = vector.load %arg12[%c24_245, %c0_246] : memref<72x178xf32, #tpu.memory_space<vmem>>, vector<8x178xf32>
    tpu.vector_store %arg12[%c24_245, %c0_246], %166 {strides = array<i32>} : memref<72x178xf32, #tpu.memory_space<vmem>>, vector<8x178xf32>,
    %c0_247 = arith.constant 0 : index
    %c11_248 = arith.constant 11 : index
    %168 = vector.load %arg10[%c0_247, %c11_248] : memref<8x200xf32, #tpu.memory_space<vmem>>, vector<8x178xf32>
    %c32_249 = arith.constant 32 : index
    %c0_250 = arith.constant 0 : index
    %169 = vector.load %arg12[%c32_249, %c0_250] : memref<72x178xf32, #tpu.memory_space<vmem>>, vector<8x178xf32>
    tpu.vector_store %arg12[%c32_249, %c0_250], %168 {strides = array<i32>} : memref<72x178xf32, #tpu.memory_space<vmem>>, vector<8x178xf32>,
    %c0_251 = arith.constant 0 : index
    %c12_252 = arith.constant 12 : index
    %170 = vector.load %arg10[%c0_251, %c12_252] : memref<8x200xf32, #tpu.memory_space<vmem>>, vector<8x178xf32>
    %c40_253 = arith.constant 40 : index
    %c0_254 = arith.constant 0 : index
    %171 = vector.load %arg12[%c40_253, %c0_254] : memref<72x178xf32, #tpu.memory_space<vmem>>, vector<8x178xf32>
    tpu.vector_store %arg12[%c40_253, %c0_254], %170 {strides = array<i32>} : memref<72x178xf32, #tpu.memory_space<vmem>>, vector<8x178xf32>,
    %c0_255 = arith.constant 0 : index
    %c20_256 = arith.constant 20 : index
    %172 = vector.load %arg10[%c0_255, %c20_256] : memref<8x200xf32, #tpu.memory_space<vmem>>, vector<8x178xf32>
    %c48_257 = arith.constant 48 : index
    %c0_258 = arith.constant 0 : index
    %173 = vector.load %arg12[%c48_257, %c0_258] : memref<72x178xf32, #tpu.memory_space<vmem>>, vector<8x178xf32>
    tpu.vector_store %arg12[%c48_257, %c0_258], %172 {strides = array<i32>} : memref<72x178xf32, #tpu.memory_space<vmem>>, vector<8x178xf32>,
    %c0_259 = arith.constant 0 : index
    %c21_260 = arith.constant 21 : index
    %174 = vector.load %arg10[%c0_259, %c21_260] : memref<8x200xf32, #tpu.memory_space<vmem>>, vector<8x178xf32>
    %c56_261 = arith.constant 56 : index
    %c0_262 = arith.constant 0 : index
    %175 = vector.load %arg12[%c56_261, %c0_262] : memref<72x178xf32, #tpu.memory_space<vmem>>, vector<8x178xf32>
    tpu.vector_store %arg12[%c56_261, %c0_262], %174 {strides = array<i32>} : memref<72x178xf32, #tpu.memory_space<vmem>>, vector<8x178xf32>,
    %c0_263 = arith.constant 0 : index
    %c22_264 = arith.constant 22 : index
    %176 = vector.load %arg10[%c0_263, %c22_264] : memref<8x200xf32, #tpu.memory_space<vmem>>, vector<8x178xf32>
    %c64_265 = arith.constant 64 : index
    %c0_266 = arith.constant 0 : index
    %177 = vector.load %arg12[%c64_265, %c0_266] : memref<72x178xf32, #tpu.memory_space<vmem>>, vector<8x178xf32>
    tpu.vector_store %arg12[%c64_265, %c0_266], %176 {strides = array<i32>} : memref<72x178xf32, #tpu.memory_space<vmem>>, vector<8x178xf32>,
    %c0_267 = arith.constant 0 : index
    %c0_268 = arith.constant 0 : index
    %178 = vector.load %arg12[%c0_267, %c0_268] : memref<72x178xf32, #tpu.memory_space<vmem>>, vector<72x178xf32>
    %cst_269 = arith.constant dense<0.000000e+00> : vector<8x178xf32>
    %179 = tpu.matmul %157, %178, %cst_269 {dimension_numbers = #tpu.dot_dimension_numbers<[1], [0], [0], [1], [0, 0, 1, 1], [], []>} : vector<8x72xf32>, vector<72x178xf32>, vector<8x178xf32> -> vector<8x178xf32>
    %180 = vector.broadcast %159 : vector<8x1xf32> to vector<8x178xf32>
    %181 = arith.addf %179, %180 : vector<8x178xf32>
    %182 = arith.addf %181, %30 : vector<8x178xf32>
    %183 = vector.broadcast %4 : vector<1x178xf32> to vector<8x178xf32>
    %184 = arith.mulf %182, %183 : vector<8x178xf32>
    %c0_270 = arith.constant 0 : index
    %c11_271 = arith.constant 11 : index
    %185 = vector.load %arg10[%c0_270, %c11_271] : memref<8x200xf32, #tpu.memory_space<vmem>>, vector<8x178xf32>
    tpu.vector_store %arg10[%c0_270, %c11_271], %184 {strides = array<i32>} : memref<8x200xf32, #tpu.memory_space<vmem>>, vector<8x178xf32>,
    %c0_272 = arith.constant 0 : index
    %c0_273 = arith.constant 0 : index
    %186 = vector.load %arg10[%c0_272, %c0_273] : memref<8x200xf32, #tpu.memory_space<vmem>>, vector<8x178xf32>
    %c0_274 = arith.constant 0 : index
    %c0_275 = arith.constant 0 : index
    %187 = vector.load %arg12[%c0_274, %c0_275] : memref<72x178xf32, #tpu.memory_space<vmem>>, vector<8x178xf32>
    tpu.vector_store %arg12[%c0_274, %c0_275], %186 {strides = array<i32>} : memref<72x178xf32, #tpu.memory_space<vmem>>, vector<8x178xf32>,
    %c0_276 = arith.constant 0 : index
    %c1_277 = arith.constant 1 : index
    %188 = vector.load %arg10[%c0_276, %c1_277] : memref<8x200xf32, #tpu.memory_space<vmem>>, vector<8x178xf32>
    %c8_278 = arith.constant 8 : index
    %c0_279 = arith.constant 0 : index
    %189 = vector.load %arg12[%c8_278, %c0_279] : memref<72x178xf32, #tpu.memory_space<vmem>>, vector<8x178xf32>
    tpu.vector_store %arg12[%c8_278, %c0_279], %188 {strides = array<i32>} : memref<72x178xf32, #tpu.memory_space<vmem>>, vector<8x178xf32>,
    %c0_280 = arith.constant 0 : index
    %c2_281 = arith.constant 2 : index
    %190 = vector.load %arg10[%c0_280, %c2_281] : memref<8x200xf32, #tpu.memory_space<vmem>>, vector<8x178xf32>
    %c16_282 = arith.constant 16 : index
    %c0_283 = arith.constant 0 : index
    %191 = vector.load %arg12[%c16_282, %c0_283] : memref<72x178xf32, #tpu.memory_space<vmem>>, vector<8x178xf32>
    tpu.vector_store %arg12[%c16_282, %c0_283], %190 {strides = array<i32>} : memref<72x178xf32, #tpu.memory_space<vmem>>, vector<8x178xf32>,
    %c0_284 = arith.constant 0 : index
    %c10_285 = arith.constant 10 : index
    %192 = vector.load %arg10[%c0_284, %c10_285] : memref<8x200xf32, #tpu.memory_space<vmem>>, vector<8x178xf32>
    %c24_286 = arith.constant 24 : index
    %c0_287 = arith.constant 0 : index
    %193 = vector.load %arg12[%c24_286, %c0_287] : memref<72x178xf32, #tpu.memory_space<vmem>>, vector<8x178xf32>
    tpu.vector_store %arg12[%c24_286, %c0_287], %192 {strides = array<i32>} : memref<72x178xf32, #tpu.memory_space<vmem>>, vector<8x178xf32>,
    %c0_288 = arith.constant 0 : index
    %c11_289 = arith.constant 11 : index
    %194 = vector.load %arg10[%c0_288, %c11_289] : memref<8x200xf32, #tpu.memory_space<vmem>>, vector<8x178xf32>
    %c32_290 = arith.constant 32 : index
    %c0_291 = arith.constant 0 : index
    %195 = vector.load %arg12[%c32_290, %c0_291] : memref<72x178xf32, #tpu.memory_space<vmem>>, vector<8x178xf32>
    tpu.vector_store %arg12[%c32_290, %c0_291], %194 {strides = array<i32>} : memref<72x178xf32, #tpu.memory_space<vmem>>, vector<8x178xf32>,
    %c0_292 = arith.constant 0 : index
    %c12_293 = arith.constant 12 : index
    %196 = vector.load %arg10[%c0_292, %c12_293] : memref<8x200xf32, #tpu.memory_space<vmem>>, vector<8x178xf32>
    %c40_294 = arith.constant 40 : index
    %c0_295 = arith.constant 0 : index
    %197 = vector.load %arg12[%c40_294, %c0_295] : memref<72x178xf32, #tpu.memory_space<vmem>>, vector<8x178xf32>
    tpu.vector_store %arg12[%c40_294, %c0_295], %196 {strides = array<i32>} : memref<72x178xf32, #tpu.memory_space<vmem>>, vector<8x178xf32>,
    %c0_296 = arith.constant 0 : index
    %c20_297 = arith.constant 20 : index
    %198 = vector.load %arg10[%c0_296, %c20_297] : memref<8x200xf32, #tpu.memory_space<vmem>>, vector<8x178xf32>
    %c48_298 = arith.constant 48 : index
    %c0_299 = arith.constant 0 : index
    %199 = vector.load %arg12[%c48_298, %c0_299] : memref<72x178xf32, #tpu.memory_space<vmem>>, vector<8x178xf32>
    tpu.vector_store %arg12[%c48_298, %c0_299], %198 {strides = array<i32>} : memref<72x178xf32, #tpu.memory_space<vmem>>, vector<8x178xf32>,
    %c0_300 = arith.constant 0 : index
    %c21_301 = arith.constant 21 : index
    %200 = vector.load %arg10[%c0_300, %c21_301] : memref<8x200xf32, #tpu.memory_space<vmem>>, vector<8x178xf32>
    %c56_302 = arith.constant 56 : index
    %c0_303 = arith.constant 0 : index
    %201 = vector.load %arg12[%c56_302, %c0_303] : memref<72x178xf32, #tpu.memory_space<vmem>>, vector<8x178xf32>
    tpu.vector_store %arg12[%c56_302, %c0_303], %200 {strides = array<i32>} : memref<72x178xf32, #tpu.memory_space<vmem>>, vector<8x178xf32>,
    %c0_304 = arith.constant 0 : index
    %c22_305 = arith.constant 22 : index
    %202 = vector.load %arg10[%c0_304, %c22_305] : memref<8x200xf32, #tpu.memory_space<vmem>>, vector<8x178xf32>
    %c64_306 = arith.constant 64 : index
    %c0_307 = arith.constant 0 : index
    %203 = vector.load %arg12[%c64_306, %c0_307] : memref<72x178xf32, #tpu.memory_space<vmem>>, vector<8x178xf32>
    tpu.vector_store %arg12[%c64_306, %c0_307], %202 {strides = array<i32>} : memref<72x178xf32, #tpu.memory_space<vmem>>, vector<8x178xf32>,
    %c0_308 = arith.constant 0 : index
    %c0_309 = arith.constant 0 : index
    %204 = vector.load %arg12[%c0_308, %c0_309] : memref<72x178xf32, #tpu.memory_space<vmem>>, vector<72x178xf32>
    %c0_310 = arith.constant 0 : index
    %c0_311 = arith.constant 0 : index
    %c0_312 = arith.constant 0 : index
    %205 = vector.load %arg4[%c0_310, %c0_311, %c0_312] : memref<4x8x72xf32, #tpu.memory_space<vmem>>, vector<1x8x72xf32>
    %206 = vector.shape_cast %205 : vector<1x8x72xf32> to vector<8x72xf32>
    %cst_313 = arith.constant dense<0.000000e+00> : vector<8x178xf32>
    %207 = tpu.matmul %206, %204, %cst_313 {dimension_numbers = #tpu.dot_dimension_numbers<[1], [0], [0], [1], [0, 0, 1, 1], [], []>} : vector<8x72xf32>, vector<72x178xf32>, vector<8x178xf32> -> vector<8x178xf32>
    %c0_314 = arith.constant 0 : index
    %c0_315 = arith.constant 0 : index
    %c0_316 = arith.constant 0 : index
    %208 = vector.load %arg5[%c0_314, %c0_315, %c0_316] : memref<4x8x1xf32, #tpu.memory_space<vmem>>, vector<1x8x1xf32>
    %209 = vector.shape_cast %208 : vector<1x8x1xf32> to vector<8x1xf32>
    %210 = vector.broadcast %209 : vector<8x1xf32> to vector<8x178xf32>
    %211 = arith.addf %207, %210 : vector<8x178xf32>
    %212 = vector.broadcast %4 : vector<1x178xf32> to vector<8x178xf32>
    %213 = arith.mulf %211, %212 : vector<8x178xf32>
    %c0_317 = arith.constant 0 : index
    %c0_318 = arith.constant 0 : index
    %c11_319 = arith.constant 11 : index
    %214 = vector.load %arg11[%c0_317, %c0_318, %c11_319] : memref<4x8x200xf32, #tpu.memory_space<vmem>>, vector<1x8x178xf32>
    %215 = vector.shape_cast %214 : vector<1x8x178xf32> to vector<8x178xf32>
    %216 = vector.shape_cast %213 : vector<8x178xf32> to vector<1x8x178xf32>
    tpu.vector_store %arg11[%c0_317, %c0_318, %c11_319], %216 {strides = array<i32>} : memref<4x8x200xf32, #tpu.memory_space<vmem>>, vector<1x8x178xf32>,
    %c1_320 = arith.constant 1 : index
    %c0_321 = arith.constant 0 : index
    %c0_322 = arith.constant 0 : index
    %217 = vector.load %arg4[%c1_320, %c0_321, %c0_322] : memref<4x8x72xf32, #tpu.memory_space<vmem>>, vector<1x8x72xf32>
    %218 = vector.shape_cast %217 : vector<1x8x72xf32> to vector<8x72xf32>
    %cst_323 = arith.constant dense<0.000000e+00> : vector<8x178xf32>
    %219 = tpu.matmul %218, %204, %cst_323 {dimension_numbers = #tpu.dot_dimension_numbers<[1], [0], [0], [1], [0, 0, 1, 1], [], []>} : vector<8x72xf32>, vector<72x178xf32>, vector<8x178xf32> -> vector<8x178xf32>
    %c1_324 = arith.constant 1 : index
    %c0_325 = arith.constant 0 : index
    %c0_326 = arith.constant 0 : index
    %220 = vector.load %arg5[%c1_324, %c0_325, %c0_326] : memref<4x8x1xf32, #tpu.memory_space<vmem>>, vector<1x8x1xf32>
    %221 = vector.shape_cast %220 : vector<1x8x1xf32> to vector<8x1xf32>
    %222 = vector.broadcast %221 : vector<8x1xf32> to vector<8x178xf32>
    %223 = arith.addf %219, %222 : vector<8x178xf32>
    %224 = vector.broadcast %4 : vector<1x178xf32> to vector<8x178xf32>
    %225 = arith.mulf %223, %224 : vector<8x178xf32>
    %c1_327 = arith.constant 1 : index
    %c0_328 = arith.constant 0 : index
    %c11_329 = arith.constant 11 : index
    %226 = vector.load %arg11[%c1_327, %c0_328, %c11_329] : memref<4x8x200xf32, #tpu.memory_space<vmem>>, vector<1x8x178xf32>
    %227 = vector.shape_cast %226 : vector<1x8x178xf32> to vector<8x178xf32>
    %228 = vector.shape_cast %225 : vector<8x178xf32> to vector<1x8x178xf32>
    tpu.vector_store %arg11[%c1_327, %c0_328, %c11_329], %228 {strides = array<i32>} : memref<4x8x200xf32, #tpu.memory_space<vmem>>, vector<1x8x178xf32>,
    %c2_330 = arith.constant 2 : index
    %c0_331 = arith.constant 0 : index
    %c0_332 = arith.constant 0 : index
    %229 = vector.load %arg4[%c2_330, %c0_331, %c0_332] : memref<4x8x72xf32, #tpu.memory_space<vmem>>, vector<1x8x72xf32>
    %230 = vector.shape_cast %229 : vector<1x8x72xf32> to vector<8x72xf32>
    %cst_333 = arith.constant dense<0.000000e+00> : vector<8x178xf32>
    %231 = tpu.matmul %230, %204, %cst_333 {dimension_numbers = #tpu.dot_dimension_numbers<[1], [0], [0], [1], [0, 0, 1, 1], [], []>} : vector<8x72xf32>, vector<72x178xf32>, vector<8x178xf32> -> vector<8x178xf32>
    %c2_334 = arith.constant 2 : index
    %c0_335 = arith.constant 0 : index
    %c0_336 = arith.constant 0 : index
    %232 = vector.load %arg5[%c2_334, %c0_335, %c0_336] : memref<4x8x1xf32, #tpu.memory_space<vmem>>, vector<1x8x1xf32>
    %233 = vector.shape_cast %232 : vector<1x8x1xf32> to vector<8x1xf32>
    %234 = vector.broadcast %233 : vector<8x1xf32> to vector<8x178xf32>
    %235 = arith.addf %231, %234 : vector<8x178xf32>
    %236 = vector.broadcast %4 : vector<1x178xf32> to vector<8x178xf32>
    %237 = arith.mulf %235, %236 : vector<8x178xf32>
    %c2_337 = arith.constant 2 : index
    %c0_338 = arith.constant 0 : index
    %c11_339 = arith.constant 11 : index
    %238 = vector.load %arg11[%c2_337, %c0_338, %c11_339] : memref<4x8x200xf32, #tpu.memory_space<vmem>>, vector<1x8x178xf32>
    %239 = vector.shape_cast %238 : vector<1x8x178xf32> to vector<8x178xf32>
    %240 = vector.shape_cast %237 : vector<8x178xf32> to vector<1x8x178xf32>
    tpu.vector_store %arg11[%c2_337, %c0_338, %c11_339], %240 {strides = array<i32>} : memref<4x8x200xf32, #tpu.memory_space<vmem>>, vector<1x8x178xf32>,
    %c3_340 = arith.constant 3 : index
    %c0_341 = arith.constant 0 : index
    %c0_342 = arith.constant 0 : index
    %241 = vector.load %arg4[%c3_340, %c0_341, %c0_342] : memref<4x8x72xf32, #tpu.memory_space<vmem>>, vector<1x8x72xf32>
    %242 = vector.shape_cast %241 : vector<1x8x72xf32> to vector<8x72xf32>
    %cst_343 = arith.constant dense<0.000000e+00> : vector<8x178xf32>
    %243 = tpu.matmul %242, %204, %cst_343 {dimension_numbers = #tpu.dot_dimension_numbers<[1], [0], [0], [1], [0, 0, 1, 1], [], []>} : vector<8x72xf32>, vector<72x178xf32>, vector<8x178xf32> -> vector<8x178xf32>
    %c3_344 = arith.constant 3 : index
    %c0_345 = arith.constant 0 : index
    %c0_346 = arith.constant 0 : index
    %244 = vector.load %arg5[%c3_344, %c0_345, %c0_346] : memref<4x8x1xf32, #tpu.memory_space<vmem>>, vector<1x8x1xf32>
    %245 = vector.shape_cast %244 : vector<1x8x1xf32> to vector<8x1xf32>
    %246 = vector.broadcast %245 : vector<8x1xf32> to vector<8x178xf32>
    %247 = arith.addf %243, %246 : vector<8x178xf32>
    %248 = vector.broadcast %4 : vector<1x178xf32> to vector<8x178xf32>
    %249 = arith.mulf %247, %248 : vector<8x178xf32>
    %c3_347 = arith.constant 3 : index
    %c0_348 = arith.constant 0 : index
    %c11_349 = arith.constant 11 : index
    %250 = vector.load %arg11[%c3_347, %c0_348, %c11_349] : memref<4x8x200xf32, #tpu.memory_space<vmem>>, vector<1x8x178xf32>
    %251 = vector.shape_cast %250 : vector<1x8x178xf32> to vector<8x178xf32>
    %252 = vector.shape_cast %249 : vector<8x178xf32> to vector<1x8x178xf32>
    tpu.vector_store %arg11[%c3_347, %c0_348, %c11_349], %252 {strides = array<i32>} : memref<4x8x200xf32, #tpu.memory_space<vmem>>, vector<1x8x178xf32>,
    %c0_350 = arith.constant 0 : index
    %c0_351 = arith.constant 0 : index
    %253 = vector.load %arg6[%c0_350, %c0_351] : memref<3x72xf32, #tpu.memory_space<vmem>>, vector<3x72xf32>
    %c0_352 = arith.constant 0 : index
    %c0_353 = arith.constant 0 : index
    %254 = vector.load %arg7[%c0_352, %c0_353] : memref<3x1xf32, #tpu.memory_space<vmem>>, vector<3x1xf32>
    %c3_354 = arith.constant 3 : index
    %c0_355 = arith.constant 0 : index
    %c0_356 = arith.constant 0 : index
    %255 = vector.load %arg11[%c3_354, %c0_355, %c0_356] : memref<4x8x200xf32, #tpu.memory_space<vmem>>, vector<1x8x178xf32>
    %256 = vector.shape_cast %255 : vector<1x8x178xf32> to vector<8x178xf32>
    %c0_357 = arith.constant 0 : index
    %c0_358 = arith.constant 0 : index
    %257 = vector.load %arg12[%c0_357, %c0_358] : memref<72x178xf32, #tpu.memory_space<vmem>>, vector<8x178xf32>
    tpu.vector_store %arg12[%c0_357, %c0_358], %256 {strides = array<i32>} : memref<72x178xf32, #tpu.memory_space<vmem>>, vector<8x178xf32>,
    %c2_359 = arith.constant 2 : index
    %c0_360 = arith.constant 0 : index
    %c1_361 = arith.constant 1 : index
    %258 = vector.load %arg11[%c2_359, %c0_360, %c1_361] : memref<4x8x200xf32, #tpu.memory_space<vmem>>, vector<1x8x178xf32>
    %259 = vector.shape_cast %258 : vector<1x8x178xf32> to vector<8x178xf32>
    %c8_362 = arith.constant 8 : index
    %c0_363 = arith.constant 0 : index
    %260 = vector.load %arg12[%c8_362, %c0_363] : memref<72x178xf32, #tpu.memory_space<vmem>>, vector<8x178xf32>
    tpu.vector_store %arg12[%c8_362, %c0_363], %259 {strides = array<i32>} : memref<72x178xf32, #tpu.memory_space<vmem>>, vector<8x178xf32>,
    %c3_364 = arith.constant 3 : index
    %c0_365 = arith.constant 0 : index
    %c1_366 = arith.constant 1 : index
    %261 = vector.load %arg11[%c3_364, %c0_365, %c1_366] : memref<4x8x200xf32, #tpu.memory_space<vmem>>, vector<1x8x178xf32>
    %262 = vector.shape_cast %261 : vector<1x8x178xf32> to vector<8x178xf32>
    %c16_367 = arith.constant 16 : index
    %c0_368 = arith.constant 0 : index
    %263 = vector.load %arg12[%c16_367, %c0_368] : memref<72x178xf32, #tpu.memory_space<vmem>>, vector<8x178xf32>
    tpu.vector_store %arg12[%c16_367, %c0_368], %262 {strides = array<i32>} : memref<72x178xf32, #tpu.memory_space<vmem>>, vector<8x178xf32>,
    %c1_369 = arith.constant 1 : index
    %c0_370 = arith.constant 0 : index
    %c10_371 = arith.constant 10 : index
    %264 = vector.load %arg11[%c1_369, %c0_370, %c10_371] : memref<4x8x200xf32, #tpu.memory_space<vmem>>, vector<1x8x178xf32>
    %265 = vector.shape_cast %264 : vector<1x8x178xf32> to vector<8x178xf32>
    %c24_372 = arith.constant 24 : index
    %c0_373 = arith.constant 0 : index
    %266 = vector.load %arg12[%c24_372, %c0_373] : memref<72x178xf32, #tpu.memory_space<vmem>>, vector<8x178xf32>
    tpu.vector_store %arg12[%c24_372, %c0_373], %265 {strides = array<i32>} : memref<72x178xf32, #tpu.memory_space<vmem>>, vector<8x178xf32>,
    %c0_374 = arith.constant 0 : index
    %c0_375 = arith.constant 0 : index
    %c11_376 = arith.constant 11 : index
    %267 = vector.load %arg11[%c0_374, %c0_375, %c11_376] : memref<4x8x200xf32, #tpu.memory_space<vmem>>, vector<1x8x178xf32>
    %268 = vector.shape_cast %267 : vector<1x8x178xf32> to vector<8x178xf32>
    %c32_377 = arith.constant 32 : index
    %c0_378 = arith.constant 0 : index
    %269 = vector.load %arg12[%c32_377, %c0_378] : memref<72x178xf32, #tpu.memory_space<vmem>>, vector<8x178xf32>
    tpu.vector_store %arg12[%c32_377, %c0_378], %268 {strides = array<i32>} : memref<72x178xf32, #tpu.memory_space<vmem>>, vector<8x178xf32>,
    %c1_379 = arith.constant 1 : index
    %c0_380 = arith.constant 0 : index
    %c11_381 = arith.constant 11 : index
    %270 = vector.load %arg11[%c1_379, %c0_380, %c11_381] : memref<4x8x200xf32, #tpu.memory_space<vmem>>, vector<1x8x178xf32>
    %271 = vector.shape_cast %270 : vector<1x8x178xf32> to vector<8x178xf32>
    %c40_382 = arith.constant 40 : index
    %c0_383 = arith.constant 0 : index
    %272 = vector.load %arg12[%c40_382, %c0_383] : memref<72x178xf32, #tpu.memory_space<vmem>>, vector<8x178xf32>
    tpu.vector_store %arg12[%c40_382, %c0_383], %271 {strides = array<i32>} : memref<72x178xf32, #tpu.memory_space<vmem>>, vector<8x178xf32>,
    %c3_384 = arith.constant 3 : index
    %c0_385 = arith.constant 0 : index
    %c10_386 = arith.constant 10 : index
    %273 = vector.load %arg11[%c3_384, %c0_385, %c10_386] : memref<4x8x200xf32, #tpu.memory_space<vmem>>, vector<1x8x178xf32>
    %274 = vector.shape_cast %273 : vector<1x8x178xf32> to vector<8x178xf32>
    %c48_387 = arith.constant 48 : index
    %c0_388 = arith.constant 0 : index
    %275 = vector.load %arg12[%c48_387, %c0_388] : memref<72x178xf32, #tpu.memory_space<vmem>>, vector<8x178xf32>
    tpu.vector_store %arg12[%c48_387, %c0_388], %274 {strides = array<i32>} : memref<72x178xf32, #tpu.memory_space<vmem>>, vector<8x178xf32>,
    %c2_389 = arith.constant 2 : index
    %c0_390 = arith.constant 0 : index
    %c11_391 = arith.constant 11 : index
    %276 = vector.load %arg11[%c2_389, %c0_390, %c11_391] : memref<4x8x200xf32, #tpu.memory_space<vmem>>, vector<1x8x178xf32>
    %277 = vector.shape_cast %276 : vector<1x8x178xf32> to vector<8x178xf32>
    %c56_392 = arith.constant 56 : index
    %c0_393 = arith.constant 0 : index
    %278 = vector.load %arg12[%c56_392, %c0_393] : memref<72x178xf32, #tpu.memory_space<vmem>>, vector<8x178xf32>
    tpu.vector_store %arg12[%c56_392, %c0_393], %277 {strides = array<i32>} : memref<72x178xf32, #tpu.memory_space<vmem>>, vector<8x178xf32>,
    %c3_394 = arith.constant 3 : index
    %c0_395 = arith.constant 0 : index
    %c11_396 = arith.constant 11 : index
    %279 = vector.load %arg11[%c3_394, %c0_395, %c11_396] : memref<4x8x200xf32, #tpu.memory_space<vmem>>, vector<1x8x178xf32>
    %280 = vector.shape_cast %279 : vector<1x8x178xf32> to vector<8x178xf32>
    %c64_397 = arith.constant 64 : index
    %c0_398 = arith.constant 0 : index
    %281 = vector.load %arg12[%c64_397, %c0_398] : memref<72x178xf32, #tpu.memory_space<vmem>>, vector<8x178xf32>
    tpu.vector_store %arg12[%c64_397, %c0_398], %280 {strides = array<i32>} : memref<72x178xf32, #tpu.memory_space<vmem>>, vector<8x178xf32>,
    %c0_399 = arith.constant 0 : index
    %c0_400 = arith.constant 0 : index
    %282 = vector.load %arg12[%c0_399, %c0_400] : memref<72x178xf32, #tpu.memory_space<vmem>>, vector<72x178xf32>
    %cst_401 = arith.constant dense<0.000000e+00> : vector<3x178xf32>
    %283 = tpu.matmul %253, %282, %cst_401 {dimension_numbers = #tpu.dot_dimension_numbers<[1], [0], [0], [1], [0, 0, 1, 1], [], []>} : vector<3x72xf32>, vector<72x178xf32>, vector<3x178xf32> -> vector<3x178xf32>
    %284 = vector.broadcast %254 : vector<3x1xf32> to vector<3x178xf32>
    %285 = arith.addf %283, %284 : vector<3x178xf32>
    %c0_402 = arith.constant 0 : index
    %c0_403 = arith.constant 0 : index
    %c0_404 = arith.constant 0 : index
    %286 = vector.load %arg9[%c0_402, %c0_403, %c0_404] : memref<4x3x178xf32, #tpu.memory_space<vmem>>, vector<1x3x178xf32>
    %287 = vector.shape_cast %286 : vector<1x3x178xf32> to vector<3x178xf32>
    %288 = vector.shape_cast %285 : vector<3x178xf32> to vector<1x3x178xf32>
    tpu.vector_store %arg9[%c0_402, %c0_403, %c0_404], %288 {strides = array<i32>} : memref<4x3x178xf32, #tpu.memory_space<vmem>>, vector<1x3x178xf32>,
    %c2_405 = arith.constant 2 : index
    %c0_406 = arith.constant 0 : index
    %c1_407 = arith.constant 1 : index
    %289 = vector.load %arg11[%c2_405, %c0_406, %c1_407] : memref<4x8x200xf32, #tpu.memory_space<vmem>>, vector<1x8x178xf32>
    %290 = vector.shape_cast %289 : vector<1x8x178xf32> to vector<8x178xf32>
    %c0_408 = arith.constant 0 : index
    %c0_409 = arith.constant 0 : index
    %291 = vector.load %arg12[%c0_408, %c0_409] : memref<72x178xf32, #tpu.memory_space<vmem>>, vector<8x178xf32>
    tpu.vector_store %arg12[%c0_408, %c0_409], %290 {strides = array<i32>} : memref<72x178xf32, #tpu.memory_space<vmem>>, vector<8x178xf32>,
    %c3_410 = arith.constant 3 : index
    %c0_411 = arith.constant 0 : index
    %c1_412 = arith.constant 1 : index
    %292 = vector.load %arg11[%c3_410, %c0_411, %c1_412] : memref<4x8x200xf32, #tpu.memory_space<vmem>>, vector<1x8x178xf32>
    %293 = vector.shape_cast %292 : vector<1x8x178xf32> to vector<8x178xf32>
    %c8_413 = arith.constant 8 : index
    %c0_414 = arith.constant 0 : index
    %294 = vector.load %arg12[%c8_413, %c0_414] : memref<72x178xf32, #tpu.memory_space<vmem>>, vector<8x178xf32>
    tpu.vector_store %arg12[%c8_413, %c0_414], %293 {strides = array<i32>} : memref<72x178xf32, #tpu.memory_space<vmem>>, vector<8x178xf32>,
    %c2_415 = arith.constant 2 : index
    %c0_416 = arith.constant 0 : index
    %c2_417 = arith.constant 2 : index
    %295 = vector.load %arg11[%c2_415, %c0_416, %c2_417] : memref<4x8x200xf32, #tpu.memory_space<vmem>>, vector<1x8x178xf32>
    %296 = vector.shape_cast %295 : vector<1x8x178xf32> to vector<8x178xf32>
    %c16_418 = arith.constant 16 : index
    %c0_419 = arith.constant 0 : index
    %297 = vector.load %arg12[%c16_418, %c0_419] : memref<72x178xf32, #tpu.memory_space<vmem>>, vector<8x178xf32>
    tpu.vector_store %arg12[%c16_418, %c0_419], %296 {strides = array<i32>} : memref<72x178xf32, #tpu.memory_space<vmem>>, vector<8x178xf32>,
    %c0_420 = arith.constant 0 : index
    %c0_421 = arith.constant 0 : index
    %c11_422 = arith.constant 11 : index
    %298 = vector.load %arg11[%c0_420, %c0_421, %c11_422] : memref<4x8x200xf32, #tpu.memory_space<vmem>>, vector<1x8x178xf32>
    %299 = vector.shape_cast %298 : vector<1x8x178xf32> to vector<8x178xf32>
    %c24_423 = arith.constant 24 : index
    %c0_424 = arith.constant 0 : index
    %300 = vector.load %arg12[%c24_423, %c0_424] : memref<72x178xf32, #tpu.memory_space<vmem>>, vector<8x178xf32>
    tpu.vector_store %arg12[%c24_423, %c0_424], %299 {strides = array<i32>} : memref<72x178xf32, #tpu.memory_space<vmem>>, vector<8x178xf32>,
    %c1_425 = arith.constant 1 : index
    %c0_426 = arith.constant 0 : index
    %c11_427 = arith.constant 11 : index
    %301 = vector.load %arg11[%c1_425, %c0_426, %c11_427] : memref<4x8x200xf32, #tpu.memory_space<vmem>>, vector<1x8x178xf32>
    %302 = vector.shape_cast %301 : vector<1x8x178xf32> to vector<8x178xf32>
    %c32_428 = arith.constant 32 : index
    %c0_429 = arith.constant 0 : index
    %303 = vector.load %arg12[%c32_428, %c0_429] : memref<72x178xf32, #tpu.memory_space<vmem>>, vector<8x178xf32>
    tpu.vector_store %arg12[%c32_428, %c0_429], %302 {strides = array<i32>} : memref<72x178xf32, #tpu.memory_space<vmem>>, vector<8x178xf32>,
    %c0_430 = arith.constant 0 : index
    %c0_431 = arith.constant 0 : index
    %c12_432 = arith.constant 12 : index
    %304 = vector.load %arg11[%c0_430, %c0_431, %c12_432] : memref<4x8x200xf32, #tpu.memory_space<vmem>>, vector<1x8x178xf32>
    %305 = vector.shape_cast %304 : vector<1x8x178xf32> to vector<8x178xf32>
    %c40_433 = arith.constant 40 : index
    %c0_434 = arith.constant 0 : index
    %306 = vector.load %arg12[%c40_433, %c0_434] : memref<72x178xf32, #tpu.memory_space<vmem>>, vector<8x178xf32>
    tpu.vector_store %arg12[%c40_433, %c0_434], %305 {strides = array<i32>} : memref<72x178xf32, #tpu.memory_space<vmem>>, vector<8x178xf32>,
    %c2_435 = arith.constant 2 : index
    %c0_436 = arith.constant 0 : index
    %c11_437 = arith.constant 11 : index
    %307 = vector.load %arg11[%c2_435, %c0_436, %c11_437] : memref<4x8x200xf32, #tpu.memory_space<vmem>>, vector<1x8x178xf32>
    %308 = vector.shape_cast %307 : vector<1x8x178xf32> to vector<8x178xf32>
    %c48_438 = arith.constant 48 : index
    %c0_439 = arith.constant 0 : index
    %309 = vector.load %arg12[%c48_438, %c0_439] : memref<72x178xf32, #tpu.memory_space<vmem>>, vector<8x178xf32>
    tpu.vector_store %arg12[%c48_438, %c0_439], %308 {strides = array<i32>} : memref<72x178xf32, #tpu.memory_space<vmem>>, vector<8x178xf32>,
    %c3_440 = arith.constant 3 : index
    %c0_441 = arith.constant 0 : index
    %c11_442 = arith.constant 11 : index
    %310 = vector.load %arg11[%c3_440, %c0_441, %c11_442] : memref<4x8x200xf32, #tpu.memory_space<vmem>>, vector<1x8x178xf32>
    %311 = vector.shape_cast %310 : vector<1x8x178xf32> to vector<8x178xf32>
    %c56_443 = arith.constant 56 : index
    %c0_444 = arith.constant 0 : index
    %312 = vector.load %arg12[%c56_443, %c0_444] : memref<72x178xf32, #tpu.memory_space<vmem>>, vector<8x178xf32>
    tpu.vector_store %arg12[%c56_443, %c0_444], %311 {strides = array<i32>} : memref<72x178xf32, #tpu.memory_space<vmem>>, vector<8x178xf32>,
    %c2_445 = arith.constant 2 : index
    %c0_446 = arith.constant 0 : index
    %c12_447 = arith.constant 12 : index
    %313 = vector.load %arg11[%c2_445, %c0_446, %c12_447] : memref<4x8x200xf32, #tpu.memory_space<vmem>>, vector<1x8x178xf32>
    %314 = vector.shape_cast %313 : vector<1x8x178xf32> to vector<8x178xf32>
    %c64_448 = arith.constant 64 : index
    %c0_449 = arith.constant 0 : index
    %315 = vector.load %arg12[%c64_448, %c0_449] : memref<72x178xf32, #tpu.memory_space<vmem>>, vector<8x178xf32>
    tpu.vector_store %arg12[%c64_448, %c0_449], %314 {strides = array<i32>} : memref<72x178xf32, #tpu.memory_space<vmem>>, vector<8x178xf32>,
    %c0_450 = arith.constant 0 : index
    %c0_451 = arith.constant 0 : index
    %316 = vector.load %arg12[%c0_450, %c0_451] : memref<72x178xf32, #tpu.memory_space<vmem>>, vector<72x178xf32>
    %cst_452 = arith.constant dense<0.000000e+00> : vector<3x178xf32>
    %317 = tpu.matmul %253, %316, %cst_452 {dimension_numbers = #tpu.dot_dimension_numbers<[1], [0], [0], [1], [0, 0, 1, 1], [], []>} : vector<3x72xf32>, vector<72x178xf32>, vector<3x178xf32> -> vector<3x178xf32>
    %318 = vector.broadcast %254 : vector<3x1xf32> to vector<3x178xf32>
    %319 = arith.addf %317, %318 : vector<3x178xf32>
    %c1_453 = arith.constant 1 : index
    %c0_454 = arith.constant 0 : index
    %c0_455 = arith.constant 0 : index
    %320 = vector.load %arg9[%c1_453, %c0_454, %c0_455] : memref<4x3x178xf32, #tpu.memory_space<vmem>>, vector<1x3x178xf32>
    %321 = vector.shape_cast %320 : vector<1x3x178xf32> to vector<3x178xf32>
    %322 = vector.shape_cast %319 : vector<3x178xf32> to vector<1x3x178xf32>
    tpu.vector_store %arg9[%c1_453, %c0_454, %c0_455], %322 {strides = array<i32>} : memref<4x3x178xf32, #tpu.memory_space<vmem>>, vector<1x3x178xf32>,
    %c1_456 = arith.constant 1 : index
    %c0_457 = arith.constant 0 : index
    %c10_458 = arith.constant 10 : index
    %323 = vector.load %arg11[%c1_456, %c0_457, %c10_458] : memref<4x8x200xf32, #tpu.memory_space<vmem>>, vector<1x8x178xf32>
    %324 = vector.shape_cast %323 : vector<1x8x178xf32> to vector<8x178xf32>
    %c0_459 = arith.constant 0 : index
    %c0_460 = arith.constant 0 : index
    %325 = vector.load %arg12[%c0_459, %c0_460] : memref<72x178xf32, #tpu.memory_space<vmem>>, vector<8x178xf32>
    tpu.vector_store %arg12[%c0_459, %c0_460], %324 {strides = array<i32>} : memref<72x178xf32, #tpu.memory_space<vmem>>, vector<8x178xf32>,
    %c0_461 = arith.constant 0 : index
    %c0_462 = arith.constant 0 : index
    %c11_463 = arith.constant 11 : index
    %326 = vector.load %arg11[%c0_461, %c0_462, %c11_463] : memref<4x8x200xf32, #tpu.memory_space<vmem>>, vector<1x8x178xf32>
    %327 = vector.shape_cast %326 : vector<1x8x178xf32> to vector<8x178xf32>
    %c8_464 = arith.constant 8 : index
    %c0_465 = arith.constant 0 : index
    %328 = vector.load %arg12[%c8_464, %c0_465] : memref<72x178xf32, #tpu.memory_space<vmem>>, vector<8x178xf32>
    tpu.vector_store %arg12[%c8_464, %c0_465], %327 {strides = array<i32>} : memref<72x178xf32, #tpu.memory_space<vmem>>, vector<8x178xf32>,
    %c1_466 = arith.constant 1 : index
    %c0_467 = arith.constant 0 : index
    %c11_468 = arith.constant 11 : index
    %329 = vector.load %arg11[%c1_466, %c0_467, %c11_468] : memref<4x8x200xf32, #tpu.memory_space<vmem>>, vector<1x8x178xf32>
    %330 = vector.shape_cast %329 : vector<1x8x178xf32> to vector<8x178xf32>
    %c16_469 = arith.constant 16 : index
    %c0_470 = arith.constant 0 : index
    %331 = vector.load %arg12[%c16_469, %c0_470] : memref<72x178xf32, #tpu.memory_space<vmem>>, vector<8x178xf32>
    tpu.vector_store %arg12[%c16_469, %c0_470], %330 {strides = array<i32>} : memref<72x178xf32, #tpu.memory_space<vmem>>, vector<8x178xf32>,
    %c3_471 = arith.constant 3 : index
    %c0_472 = arith.constant 0 : index
    %c10_473 = arith.constant 10 : index
    %332 = vector.load %arg11[%c3_471, %c0_472, %c10_473] : memref<4x8x200xf32, #tpu.memory_space<vmem>>, vector<1x8x178xf32>
    %333 = vector.shape_cast %332 : vector<1x8x178xf32> to vector<8x178xf32>
    %c24_474 = arith.constant 24 : index
    %c0_475 = arith.constant 0 : index
    %334 = vector.load %arg12[%c24_474, %c0_475] : memref<72x178xf32, #tpu.memory_space<vmem>>, vector<8x178xf32>
    tpu.vector_store %arg12[%c24_474, %c0_475], %333 {strides = array<i32>} : memref<72x178xf32, #tpu.memory_space<vmem>>, vector<8x178xf32>,
    %c2_476 = arith.constant 2 : index
    %c0_477 = arith.constant 0 : index
    %c11_478 = arith.constant 11 : index
    %335 = vector.load %arg11[%c2_476, %c0_477, %c11_478] : memref<4x8x200xf32, #tpu.memory_space<vmem>>, vector<1x8x178xf32>
    %336 = vector.shape_cast %335 : vector<1x8x178xf32> to vector<8x178xf32>
    %c32_479 = arith.constant 32 : index
    %c0_480 = arith.constant 0 : index
    %337 = vector.load %arg12[%c32_479, %c0_480] : memref<72x178xf32, #tpu.memory_space<vmem>>, vector<8x178xf32>
    tpu.vector_store %arg12[%c32_479, %c0_480], %336 {strides = array<i32>} : memref<72x178xf32, #tpu.memory_space<vmem>>, vector<8x178xf32>,
    %c3_481 = arith.constant 3 : index
    %c0_482 = arith.constant 0 : index
    %c11_483 = arith.constant 11 : index
    %338 = vector.load %arg11[%c3_481, %c0_482, %c11_483] : memref<4x8x200xf32, #tpu.memory_space<vmem>>, vector<1x8x178xf32>
    %339 = vector.shape_cast %338 : vector<1x8x178xf32> to vector<8x178xf32>
    %c40_484 = arith.constant 40 : index
    %c0_485 = arith.constant 0 : index
    %340 = vector.load %arg12[%c40_484, %c0_485] : memref<72x178xf32, #tpu.memory_space<vmem>>, vector<8x178xf32>
    tpu.vector_store %arg12[%c40_484, %c0_485], %339 {strides = array<i32>} : memref<72x178xf32, #tpu.memory_space<vmem>>, vector<8x178xf32>,
    %c1_486 = arith.constant 1 : index
    %c0_487 = arith.constant 0 : index
    %c20_488 = arith.constant 20 : index
    %341 = vector.load %arg11[%c1_486, %c0_487, %c20_488] : memref<4x8x200xf32, #tpu.memory_space<vmem>>, vector<1x8x178xf32>
    %342 = vector.shape_cast %341 : vector<1x8x178xf32> to vector<8x178xf32>
    %c48_489 = arith.constant 48 : index
    %c0_490 = arith.constant 0 : index
    %343 = vector.load %arg12[%c48_489, %c0_490] : memref<72x178xf32, #tpu.memory_space<vmem>>, vector<8x178xf32>
    tpu.vector_store %arg12[%c48_489, %c0_490], %342 {strides = array<i32>} : memref<72x178xf32, #tpu.memory_space<vmem>>, vector<8x178xf32>,
    %c0_491 = arith.constant 0 : index
    %c0_492 = arith.constant 0 : index
    %c21_493 = arith.constant 21 : index
    %344 = vector.load %arg11[%c0_491, %c0_492, %c21_493] : memref<4x8x200xf32, #tpu.memory_space<vmem>>, vector<1x8x178xf32>
    %345 = vector.shape_cast %344 : vector<1x8x178xf32> to vector<8x178xf32>
    %c56_494 = arith.constant 56 : index
    %c0_495 = arith.constant 0 : index
    %346 = vector.load %arg12[%c56_494, %c0_495] : memref<72x178xf32, #tpu.memory_space<vmem>>, vector<8x178xf32>
    tpu.vector_store %arg12[%c56_494, %c0_495], %345 {strides = array<i32>} : memref<72x178xf32, #tpu.memory_space<vmem>>, vector<8x178xf32>,
    %c1_496 = arith.constant 1 : index
    %c0_497 = arith.constant 0 : index
    %c21_498 = arith.constant 21 : index
    %347 = vector.load %arg11[%c1_496, %c0_497, %c21_498] : memref<4x8x200xf32, #tpu.memory_space<vmem>>, vector<1x8x178xf32>
    %348 = vector.shape_cast %347 : vector<1x8x178xf32> to vector<8x178xf32>
    %c64_499 = arith.constant 64 : index
    %c0_500 = arith.constant 0 : index
    %349 = vector.load %arg12[%c64_499, %c0_500] : memref<72x178xf32, #tpu.memory_space<vmem>>, vector<8x178xf32>
    tpu.vector_store %arg12[%c64_499, %c0_500], %348 {strides = array<i32>} : memref<72x178xf32, #tpu.memory_space<vmem>>, vector<8x178xf32>,
    %c0_501 = arith.constant 0 : index
    %c0_502 = arith.constant 0 : index
    %350 = vector.load %arg12[%c0_501, %c0_502] : memref<72x178xf32, #tpu.memory_space<vmem>>, vector<72x178xf32>
    %cst_503 = arith.constant dense<0.000000e+00> : vector<3x178xf32>
    %351 = tpu.matmul %253, %350, %cst_503 {dimension_numbers = #tpu.dot_dimension_numbers<[1], [0], [0], [1], [0, 0, 1, 1], [], []>} : vector<3x72xf32>, vector<72x178xf32>, vector<3x178xf32> -> vector<3x178xf32>
    %352 = vector.broadcast %254 : vector<3x1xf32> to vector<3x178xf32>
    %353 = arith.addf %351, %352 : vector<3x178xf32>
    %c2_504 = arith.constant 2 : index
    %c0_505 = arith.constant 0 : index
    %c0_506 = arith.constant 0 : index
    %354 = vector.load %arg9[%c2_504, %c0_505, %c0_506] : memref<4x3x178xf32, #tpu.memory_space<vmem>>, vector<1x3x178xf32>
    %355 = vector.shape_cast %354 : vector<1x3x178xf32> to vector<3x178xf32>
    %356 = vector.shape_cast %353 : vector<3x178xf32> to vector<1x3x178xf32>
    tpu.vector_store %arg9[%c2_504, %c0_505, %c0_506], %356 {strides = array<i32>} : memref<4x3x178xf32, #tpu.memory_space<vmem>>, vector<1x3x178xf32>,
    %c0_507 = arith.constant 0 : index
    %c0_508 = arith.constant 0 : index
    %c11_509 = arith.constant 11 : index
    %357 = vector.load %arg11[%c0_507, %c0_508, %c11_509] : memref<4x8x200xf32, #tpu.memory_space<vmem>>, vector<1x8x178xf32>
    %358 = vector.shape_cast %357 : vector<1x8x178xf32> to vector<8x178xf32>
    %c0_510 = arith.constant 0 : index
    %c0_511 = arith.constant 0 : index
    %359 = vector.load %arg12[%c0_510, %c0_511] : memref<72x178xf32, #tpu.memory_space<vmem>>, vector<8x178xf32>
    tpu.vector_store %arg12[%c0_510, %c0_511], %358 {strides = array<i32>} : memref<72x178xf32, #tpu.memory_space<vmem>>, vector<8x178xf32>,
    %c1_512 = arith.constant 1 : index
    %c0_513 = arith.constant 0 : index
    %c11_514 = arith.constant 11 : index
    %360 = vector.load %arg11[%c1_512, %c0_513, %c11_514] : memref<4x8x200xf32, #tpu.memory_space<vmem>>, vector<1x8x178xf32>
    %361 = vector.shape_cast %360 : vector<1x8x178xf32> to vector<8x178xf32>
    %c8_515 = arith.constant 8 : index
    %c0_516 = arith.constant 0 : index
    %362 = vector.load %arg12[%c8_515, %c0_516] : memref<72x178xf32, #tpu.memory_space<vmem>>, vector<8x178xf32>
    tpu.vector_store %arg12[%c8_515, %c0_516], %361 {strides = array<i32>} : memref<72x178xf32, #tpu.memory_space<vmem>>, vector<8x178xf32>,
    %c0_517 = arith.constant 0 : index
    %c0_518 = arith.constant 0 : index
    %c12_519 = arith.constant 12 : index
    %363 = vector.load %arg11[%c0_517, %c0_518, %c12_519] : memref<4x8x200xf32, #tpu.memory_space<vmem>>, vector<1x8x178xf32>
    %364 = vector.shape_cast %363 : vector<1x8x178xf32> to vector<8x178xf32>
    %c16_520 = arith.constant 16 : index
    %c0_521 = arith.constant 0 : index
    %365 = vector.load %arg12[%c16_520, %c0_521] : memref<72x178xf32, #tpu.memory_space<vmem>>, vector<8x178xf32>
    tpu.vector_store %arg12[%c16_520, %c0_521], %364 {strides = array<i32>} : memref<72x178xf32, #tpu.memory_space<vmem>>, vector<8x178xf32>,
    %c2_522 = arith.constant 2 : index
    %c0_523 = arith.constant 0 : index
    %c11_524 = arith.constant 11 : index
    %366 = vector.load %arg11[%c2_522, %c0_523, %c11_524] : memref<4x8x200xf32, #tpu.memory_space<vmem>>, vector<1x8x178xf32>
    %367 = vector.shape_cast %366 : vector<1x8x178xf32> to vector<8x178xf32>
    %c24_525 = arith.constant 24 : index
    %c0_526 = arith.constant 0 : index
    %368 = vector.load %arg12[%c24_525, %c0_526] : memref<72x178xf32, #tpu.memory_space<vmem>>, vector<8x178xf32>
    tpu.vector_store %arg12[%c24_525, %c0_526], %367 {strides = array<i32>} : memref<72x178xf32, #tpu.memory_space<vmem>>, vector<8x178xf32>,
    %c3_527 = arith.constant 3 : index
    %c0_528 = arith.constant 0 : index
    %c11_529 = arith.constant 11 : index
    %369 = vector.load %arg11[%c3_527, %c0_528, %c11_529] : memref<4x8x200xf32, #tpu.memory_space<vmem>>, vector<1x8x178xf32>
    %370 = vector.shape_cast %369 : vector<1x8x178xf32> to vector<8x178xf32>
    %c32_530 = arith.constant 32 : index
    %c0_531 = arith.constant 0 : index
    %371 = vector.load %arg12[%c32_530, %c0_531] : memref<72x178xf32, #tpu.memory_space<vmem>>, vector<8x178xf32>
    tpu.vector_store %arg12[%c32_530, %c0_531], %370 {strides = array<i32>} : memref<72x178xf32, #tpu.memory_space<vmem>>, vector<8x178xf32>,
    %c2_532 = arith.constant 2 : index
    %c0_533 = arith.constant 0 : index
    %c12_534 = arith.constant 12 : index
    %372 = vector.load %arg11[%c2_532, %c0_533, %c12_534] : memref<4x8x200xf32, #tpu.memory_space<vmem>>, vector<1x8x178xf32>
    %373 = vector.shape_cast %372 : vector<1x8x178xf32> to vector<8x178xf32>
    %c40_535 = arith.constant 40 : index
    %c0_536 = arith.constant 0 : index
    %374 = vector.load %arg12[%c40_535, %c0_536] : memref<72x178xf32, #tpu.memory_space<vmem>>, vector<8x178xf32>
    tpu.vector_store %arg12[%c40_535, %c0_536], %373 {strides = array<i32>} : memref<72x178xf32, #tpu.memory_space<vmem>>, vector<8x178xf32>,
    %c0_537 = arith.constant 0 : index
    %c0_538 = arith.constant 0 : index
    %c21_539 = arith.constant 21 : index
    %375 = vector.load %arg11[%c0_537, %c0_538, %c21_539] : memref<4x8x200xf32, #tpu.memory_space<vmem>>, vector<1x8x178xf32>
    %376 = vector.shape_cast %375 : vector<1x8x178xf32> to vector<8x178xf32>
    %c48_540 = arith.constant 48 : index
    %c0_541 = arith.constant 0 : index
    %377 = vector.load %arg12[%c48_540, %c0_541] : memref<72x178xf32, #tpu.memory_space<vmem>>, vector<8x178xf32>
    tpu.vector_store %arg12[%c48_540, %c0_541], %376 {strides = array<i32>} : memref<72x178xf32, #tpu.memory_space<vmem>>, vector<8x178xf32>,
    %c1_542 = arith.constant 1 : index
    %c0_543 = arith.constant 0 : index
    %c21_544 = arith.constant 21 : index
    %378 = vector.load %arg11[%c1_542, %c0_543, %c21_544] : memref<4x8x200xf32, #tpu.memory_space<vmem>>, vector<1x8x178xf32>
    %379 = vector.shape_cast %378 : vector<1x8x178xf32> to vector<8x178xf32>
    %c56_545 = arith.constant 56 : index
    %c0_546 = arith.constant 0 : index
    %380 = vector.load %arg12[%c56_545, %c0_546] : memref<72x178xf32, #tpu.memory_space<vmem>>, vector<8x178xf32>
    tpu.vector_store %arg12[%c56_545, %c0_546], %379 {strides = array<i32>} : memref<72x178xf32, #tpu.memory_space<vmem>>, vector<8x178xf32>,
    %c0_547 = arith.constant 0 : index
    %c0_548 = arith.constant 0 : index
    %c22_549 = arith.constant 22 : index
    %381 = vector.load %arg11[%c0_547, %c0_548, %c22_549] : memref<4x8x200xf32, #tpu.memory_space<vmem>>, vector<1x8x178xf32>
    %382 = vector.shape_cast %381 : vector<1x8x178xf32> to vector<8x178xf32>
    %c64_550 = arith.constant 64 : index
    %c0_551 = arith.constant 0 : index
    %383 = vector.load %arg12[%c64_550, %c0_551] : memref<72x178xf32, #tpu.memory_space<vmem>>, vector<8x178xf32>
    tpu.vector_store %arg12[%c64_550, %c0_551], %382 {strides = array<i32>} : memref<72x178xf32, #tpu.memory_space<vmem>>, vector<8x178xf32>,
    %c0_552 = arith.constant 0 : index
    %c0_553 = arith.constant 0 : index
    %384 = vector.load %arg12[%c0_552, %c0_553] : memref<72x178xf32, #tpu.memory_space<vmem>>, vector<72x178xf32>
    %cst_554 = arith.constant dense<0.000000e+00> : vector<3x178xf32>
    %385 = tpu.matmul %253, %384, %cst_554 {dimension_numbers = #tpu.dot_dimension_numbers<[1], [0], [0], [1], [0, 0, 1, 1], [], []>} : vector<3x72xf32>, vector<72x178xf32>, vector<3x178xf32> -> vector<3x178xf32>
    %386 = vector.broadcast %254 : vector<3x1xf32> to vector<3x178xf32>
    %387 = arith.addf %385, %386 : vector<3x178xf32>
    %c3_555 = arith.constant 3 : index
    %c0_556 = arith.constant 0 : index
    %c0_557 = arith.constant 0 : index
    %388 = vector.load %arg9[%c3_555, %c0_556, %c0_557] : memref<4x3x178xf32, #tpu.memory_space<vmem>>, vector<1x3x178xf32>
    %389 = vector.shape_cast %388 : vector<1x3x178xf32> to vector<3x178xf32>
    %390 = vector.shape_cast %387 : vector<3x178xf32> to vector<1x3x178xf32>
    tpu.vector_store %arg9[%c3_555, %c0_556, %c0_557], %390 {strides = array<i32>} : memref<4x3x178xf32, #tpu.memory_space<vmem>>, vector<1x3x178xf32>,
    return
  }
  func.func @transform_0(%arg0: i32) -> (i32, i32) {
    %c0_i32 = arith.constant 0 : i32
    %c0_i32_0 = arith.constant 0 : i32
    %c0_i32_1 = arith.constant 0 : i32
    return %c0_i32, %c0_i32_0 : i32, i32
  }
  func.func @transform_1(%arg0: i32) -> (i32, i32, i32) {
    %c0_i32 = arith.constant 0 : i32
    %c0_i32_0 = arith.constant 0 : i32
    %c0_i32_1 = arith.constant 0 : i32
    %c0_i32_2 = arith.constant 0 : i32
    return %c0_i32, %c0_i32_0, %c0_i32_1 : i32, i32, i32
  }
  func.func @transform_2(%arg0: i32) -> (i32, i32, i32) {
    %c0_i32 = arith.constant 0 : i32
    %c0_i32_0 = arith.constant 0 : i32
    %c0_i32_1 = arith.constant 0 : i32
    %c0_i32_2 = arith.constant 0 : i32
    return %c0_i32, %c0_i32_0, %c0_i32_1 : i32, i32, i32
  }
  func.func @transform_3(%arg0: i32) -> (i32, i32, i32) {
    %c0_i32 = arith.constant 0 : i32
    %c0_i32_0 = arith.constant 0 : i32
    %c0_i32_1 = arith.constant 0 : i32
    %c0_i32_2 = arith.constant 0 : i32
    return %c0_i32, %c0_i32_0, %c0_i32_1 : i32, i32, i32
  }
  func.func @transform_4(%arg0: i32) -> (i32, i32, i32) {
    %c0_i32 = arith.constant 0 : i32
    %c0_i32_0 = arith.constant 0 : i32
    %c0_i32_1 = arith.constant 0 : i32
    %c0_i32_2 = arith.constant 0 : i32
    return %c0_i32, %c0_i32_0, %c0_i32_1 : i32, i32, i32
  }
  func.func @transform_5(%arg0: i32) -> (i32, i32) {
    %c0_i32 = arith.constant 0 : i32
    %c0_i32_0 = arith.constant 0 : i32
    %c0_i32_1 = arith.constant 0 : i32
    return %c0_i32, %c0_i32_0 : i32, i32
  }
  func.func @transform_6(%arg0: i32) -> (i32, i32) {
    %c0_i32 = arith.constant 0 : i32
    %c0_i32_0 = arith.constant 0 : i32
    %c0_i32_1 = arith.constant 0 : i32
    return %c0_i32, %c0_i32_0 : i32, i32
  }
  func.func @transform_7(%arg0: i32) -> (i32, i32) {
    %c0_i32 = arith.constant 0 : i32
    %c0_i32_0 = arith.constant 0 : i32
    %c0_i32_1 = arith.constant 0 : i32
    return %c0_i32, %c0_i32_0 : i32, i32
  }
  func.func @transform_8(%arg0: i32) -> (i32, i32, i32) {
    %c0_i32 = arith.constant 0 : i32
    %c0_i32_0 = arith.constant 0 : i32
    %c0_i32_1 = arith.constant 0 : i32
    %c0_i32_2 = arith.constant 0 : i32
    return %c0_i32, %c0_i32_0, %c0_i32_1 : i32, i32, i32
  }
}

</mosaic_0001>

<bundles_post_ra>
// kernel: edsr_forward.1
= control target key start
LH: loop header
LB: loop body
LE: loop exit
PB: predicated region body
PF: predicated region fallthrough
CT: control target
= control target key end

     0   :  { %vm46_vm0 = vcmask 408576   ;;  %s3041_s9 = smov 126   ;;  %s3042_s10 = smov 127   ;;  %v3048_v2 = vmov 0.0   ;;  %vm30_vm1 = vcmask 588800   ;;  %v3050_v3 = vmov 0   ;;  %s3906_s0 = inlined_call_operand.vmem [shape: f32[8,200], index: 0, kind: input, shape index: {}]   ;;  %s3907_s2 = inlined_call_operand.vmem [shape: f32[6,8,1], index: 2, kind: input, shape index: {}]   ;;  %s3908_s1 = inlined_call_operand.vmem [shape: f32[6,8,72], index: 1, kind: input, shape index: {}]   ;;  %s3909_s7 = inlined_call_operand.vmem [shape: f32[1,178], index: 7, kind: input, shape index: {}]   ;;  %s3910_s4 = inlined_call_operand.vmem [shape: f32[4,8,1], index: 4, kind: input, shape index: {}]   ;;  %s3911_s3 = inlined_call_operand.vmem [shape: f32[4,8,72], index: 3, kind: input, shape index: {}]   ;;  %s3912_s6 = inlined_call_operand.vmem [shape: f32[3,1], index: 6, kind: input, shape index: {}]   ;;  %s3913_s5 = inlined_call_operand.vmem [shape: f32[3,72], index: 5, kind: input, shape index: {}]   ;;  %s3914_s8 = inlined_call_operand.vmem [shape: f32[4,3,178], index: 8, kind: output, shape index: {}]  }
   0x1   :  { %v3100_v0 = vld [vmem:[%s3906_s0] sm:$0xff]  ;;  %v63_v1 = vld [vmem:[%s3906_s0 + $0x8] sm:$0xff]  ;;  %s3043_s11 = smov 118   ;;  %s3044_s0 = smov 117   ;;  %250 = vmatprep.mubr.f32.mxu0 %v3048_v2  ;;  %29 = vst [vmem:[#allocation2] sm:$0xff] %v3048_v2  ;;  %32 = vst [vmem:[#allocation3] sm:$0xff] %v3048_v2  ;;  %486 = vmatprep.mubr.f32.mxu1 %v3048_v2  ;;  %v258_v47 = vlaneseq }
   0x2   :  { %66 = vrot.lane.b32.xlu1 %v3100_v0, %s3041_s9  ;;  %52 = vrot.lane.b32.xlu0 %v3100_v0, %s3042_s10  ;;  %47 = vst.msk [vmem:[#allocation4 + $0x8] sm:$0xff] %vm46_vm0, %v63_v1  ;;  %s3045_s12 = smov 116   ;;  %s3046_s13 = smov 108   ;;  %34 = vst [vmem:[#allocation3 + $0x10] sm:$0xff] %v3048_v2  ;;  %v42_v4 = vld [vmem:[%s3907_s2] sm:$0xff]  ;;  %vm56_vm2 = vcmask 1039360  }
   0x3   :  { %s3047_s14 = smov 107   ;;  %36 = vst [vmem:[#allocation3 + $0x20] sm:$0xff] %v3048_v2  ;;  %38 = vst [vmem:[#allocation3 + $0x30] sm:$0xff] %v3048_v2  ;;  %s3049_s15 = smov 106   ;;  %3038 = vset.pattern.permute.xlu0 %v3050_v3  ;;  %3039 = vset.pattern.permute.xlu1 %v3050_v3  ;;  %vm84_vm3 = vcmask 965632   ;;  %vm70_vm4 = vcmask 1031168  }
   0x4   :  { %31 = vst.msk [vmem:[#allocation2 + $0x8] sm:$0xff] %vm30_vm1, %v3048_v2  ;;  %33 = vst.msk [vmem:[#allocation3 + $0x8] sm:$0xff] %vm30_vm1, %v3048_v2  ;;  %vm112_vm5 = vcmask 949248   ;;  %vm98_vm6 = vcmask 957440   ;;  %vm140_vm7 = vcmask 875520   ;;  %vm126_vm8 = vcmask 883712  }
   0x5   :  { %35 = vst.msk [vmem:[#allocation3 + $0x18] sm:$0xff] %vm30_vm1, %v3048_v2  ;;  %37 = vst.msk [vmem:[#allocation3 + $0x28] sm:$0xff] %vm30_vm1, %v3048_v2  ;;  %vm154_vm9 = vcmask 867328   ;;  %v41_v45 = vld [vmem:[%s3908_s1] sm:$0xff]  ;;  %v259_v48 = vshrl.u32 %v258_v47, 7  ;;  %s3051_s22 = smov 11  }
   0x6   :  { %68 = vrot.lane.b32.xlu1 %v63_v1, %s3041_s9  ;;  %54 = vrot.lane.b32.xlu0 %v63_v1, %s3042_s10  ;;  %39 = vst.msk [vmem:[#allocation3 + $0x38] sm:$0xff] %vm30_vm1, %v3048_v2  ;;  %v40_v50 = vld [vmem:[%s3909_s7] sm:$0x3]  ;;  %vm280_vm10 = vcmask 1047640   ;;  %vm276_vm11 = vcmask 89088   ;;  %vm282_vm12 = vcmask 498688  }
   0x7   :  { %v260_v49 = vsub.s32 0, %v259_v48  ;;  %v264_v53 = vsub.s32 1, %v259_v48  ;;  %v2772_v3 = vld [vmem:[%s3907_s2 + $0x8] sm:$0xff]  ;;  %vm2126_vm13 = vcmask 1042432   ;;  %vm2127_vm14 = vcmask 407556  }
   0x8   :  { %vm3882_vm15 = vmor %vm2127_vm14, %vm2126_vm13 }
   0x9   :  { %v161_v11 = vld [vmem:[#allocation4 + $0x8] sm:$0xff]  ;;  %v3175_v52 = vrot.slane %v40_v50, %v260_v49  ;;  %v3183_v59 = vrot.slane %v40_v50, %v264_v53 }
   0xa   :  { %82 = vrot.lane.b32.xlu1 %v63_v1, %s3043_s11  ;;  %80 = vrot.lane.b32.xlu0 %v3100_v0, %s3043_s11 }
   0xe   :  { %96 = vrot.lane.b32.xlu1 %v63_v1, %s3044_s0  ;;  %94 = vrot.lane.b32.xlu0 %v3100_v0, %s3044_s0 }
  0x12   :  { %110 = vrot.lane.b32.xlu1 %v63_v1, %s3045_s12  ;;  %108 = vrot.lane.b32.xlu0 %v3100_v0, %s3045_s12 }
  0x16   :  { %124 = vrot.lane.b32.xlu1 %v63_v1, %s3046_s13  ;;  %122 = vrot.lane.b32.xlu0 %v3100_v0, %s3046_s13 }
  0x1a   :  { %138 = vrot.lane.b32.xlu1 %v63_v1, %s3047_s14  ;;  %136 = vrot.lane.b32.xlu0 %v3100_v0, %s3047_s14 }
  0x1e   :  { %152 = vrot.lane.b32.xlu1 %v63_v1, %s3049_s15  ;;  %150 = vrot.lane.b32.xlu0 %v3100_v0, %s3049_s15 }
  0x22   :  { %180 = vperm.xlu0 %3038, %v42_v4  }
  0x74   :  { %v67_v5 = vpop.permute.xlu1 %66  ;;  %v53_v6 = vpop.permute.xlu0 %52 }
  0x78   :  { %v69_v7 = vpop.permute.xlu1 %68  ;;  %v55_v8 = vpop.permute.xlu0 %54 }
  0x79   :  { %75 = vst.msk [vmem:[#allocation4 + $0x28] sm:$0xff] %vm46_vm0, %v69_v7  ;;  %61 = vst.msk [vmem:[#allocation4 + $0x18] sm:$0xff] %vm46_vm0, %v55_v8  ;;  %v57_v12 = vsel %vm56_vm2, %v53_v6, %v55_v8  ;;  %v71_v23 = vsel %vm70_vm4, %v67_v5, %v69_v7 }
  0x7a   :  { %v2805_v17 = vpack.c.bf16 %v57_v12, %v3100_v0 }
  0x7c   :  { %v83_v9 = vpop.permute.xlu1 %82  ;;  %v81_v10 = vpop.permute.xlu0 %80 }
  0x7d   :  { %89 = vst.msk [vmem:[#allocation4 + $0x38] sm:$0xff] %vm46_vm0, %v83_v9  ;;  %v85_v18 = vsel %vm84_vm3, %v81_v10, %v83_v9 }
  0x7e   :  { %v2809_v25 = vpack.c.bf16 %v85_v18, %v71_v23 }
  0x80   :  { %v97_v13 = vpop.permute.xlu1 %96  ;;  %v95_v14 = vpop.permute.xlu0 %94  ;;  %v163_v15 = vld [vmem:[#allocation4 + $0x18] sm:$0xff]  ;;  %v165_v21 = vld [vmem:[#allocation4 + $0x28] sm:$0xff] }
  0x81   :  { %103 = vst.msk [vmem:[#allocation4 + $0x48] sm:$0xff] %vm46_vm0, %v97_v13  ;;  %v2803_v16 = vpack.c.bf16 %v163_v15, %v161_v11  ;;  %v99_v32 = vsel %vm98_vm6, %v95_v14, %v97_v13 }
  0x83   :  { %2804 = vmatprep.subr.bf16.mxu0 %v2803_v16 }
  0x84   :  { %v111_v19 = vpop.permute.xlu1 %110  ;;  %v109_v20 = vpop.permute.xlu0 %108  ;;  %2806 = vmatpush1.bf16.msra.mxu0 %v2805_v17  ;;  %v167_v22 = vld [vmem:[#allocation4 + $0x38] sm:$0xff] }
  0x85   :  { %117 = vst.msk [vmem:[#allocation4 + $0x58] sm:$0xff] %vm46_vm0, %v111_v19  ;;  %v2807_v24 = vpack.c.bf16 %v167_v22, %v165_v21  ;;  %v113_v28 = vsel %vm112_vm5, %v109_v20, %v111_v19 }
  0x86   :  { %v2813_v34 = vpack.c.bf16 %v113_v28, %v99_v32 }
  0x87   :  { %2808 = vmatprep.subr.bf16.mxu0 %v2807_v24 }
  0x88   :  { %v125_v26 = vpop.permute.xlu1 %124  ;;  %2810 = vmatpush1.bf16.msra.mxu0 %v2809_v25  ;;  %v123_v27 = vpop.permute.xlu0 %122  ;;  %v169_v30 = vld [vmem:[#allocation4 + $0x48] sm:$0xff] }
  0x89   :  { %131 = vst.msk [vmem:[#allocation4 + $0x68] sm:$0xff] %vm46_vm0, %v125_v26  ;;  %v127_v40 = vsel %vm126_vm8, %v123_v27, %v125_v26 }
  0x8c   :  { %v139_v29 = vpop.permute.xlu1 %138  ;;  %v171_v31 = vld [vmem:[#allocation4 + $0x58] sm:$0xff]  ;;  %v137_v35 = vpop.permute.xlu0 %136 }
  0x8d   :  { %145 = vst.msk [vmem:[#allocation4 + $0x78] sm:$0xff] %vm46_vm0, %v139_v29  ;;  %v2811_v33 = vpack.c.bf16 %v171_v31, %v169_v30  ;;  %v141_v37 = vsel %vm140_vm7, %v137_v35, %v139_v29 }
  0x8e   :  { %v2817_v42 = vpack.c.bf16 %v141_v37, %v127_v40 }
  0x8f   :  { %2812 = vmatprep.subr.bf16.mxu0 %v2811_v33 }
  0x90   :  { %2814 = vmatpush1.bf16.msra.mxu0 %v2813_v34  ;;  %v153_v36 = vpop.permute.xlu1 %152  ;;  %v173_v38 = vld [vmem:[#allocation4 + $0x68] sm:$0xff]  ;;  %v151_v43 = vpop.permute.xlu0 %150 }
  0x91   :  { %159 = vst.msk [vmem:[#allocation4 + $0x88] sm:$0xff] %vm46_vm0, %v153_v36  ;;  %v155_v46 = vsel %vm154_vm9, %v151_v43, %v153_v36 }
  0x94   :  { %v175_v39 = vld [vmem:[#allocation4 + $0x78] sm:$0xff] }
  0x95   :  { %v2815_v41 = vpack.c.bf16 %v175_v39, %v173_v38 }
  0x97   :  { %2816 = vmatprep.subr.bf16.mxu0 %v2815_v41 }
  0x98   :  { %2818 = vmatpush1.bf16.msra.mxu0 %v2817_v42  ;;  %v177_v44 = vld [vmem:[#allocation4 + $0x88] sm:$0xff] }
  0x99   :  { %202 = vmatprep.subr.mxu0 %v177_v44  ;;  %v2771_v44 = vld [vmem:[%s3908_s1 + $0x8] sm:$0xff] }
  0x9c   :  { %203 = vmatpush1.msra.mxu0 %v155_v46 }
  0x9d   :  { %2770 = vmatmul.mubr.msk.f32.vlgmr.msra.gmra.mrb[0].mxu0 %vm30_vm1, %v41_v45 }
  0x9e   :  { %710 = vmatprep.mubr.f32.mxu0 %v3048_v2 }
  0xa1   :  { %v181_v51 = vpop.permute.xlu0 %180 }
 0x170   :  { %v252_v54 = vpop.f32.mrb[0].mxu0 }
 0x171   :  { %v3177_v55 = vadd.f32 %v252_v54, %v181_v51  ;;  %v254_v56 = vpop.f32.mrb[1].mxu0 }
 0x172   :  { %v3179_v57 = vadd.f32 %v254_v56, %v181_v51 }
 0x173   :  { %v268_v58 = vmul.f32 %v3175_v52, %v3177_v55 }
 0x174   :  { %v269_v60 = vmul.f32 %v3183_v59, %v3179_v57 }
 0x175   :  { %272 = vrot.lane.b32.xlu1 %v268_v58, %s3051_s22 }
 0x179   :  { %274 = vrot.lane.b32.xlu1 %v269_v60, %s3051_s22 }
 0x1e7   :  { %v273_v61 = vpop.permute.xlu1 %272 }
 0x1e8   :  { %281 = vst.msk [vmem:[#allocation2] sm:$0xff] %vm280_vm10, %v273_v61 }
 0x1eb   :  { %v275_v62 = vpop.permute.xlu1 %274 }
 0x1ec   :  { %v277_v63 = vsel %vm276_vm11, %v273_v61, %v275_v62 }
 0x1ed   :  { %283 = vst.msk [vmem:[#allocation2 + $0x8] sm:$0xff] %vm282_vm12, %v277_v63 }
 0x1ef   :  { %v288_v0 = vld [vmem:[#allocation2] sm:$0xff] }
 0x1f0   :  { %296 = vrot.lane.b32.xlu0 %v288_v0, %s3042_s10 }
 0x1f4   :  { %v289_v1 = vld [vmem:[#allocation2 + $0x8] sm:$0xff]  ;;  %309 = vrot.lane.b32.xlu0 %v288_v0, %s3041_s9 }
 0x1f5   :  { %291 = vst.msk [vmem:[#allocation4 + $0x8] sm:$0xff] %vm46_vm0, %v289_v1  ;;  %298 = vrot.lane.b32.xlu1 %v289_v1, %s3042_s10 }
 0x1f8   :  { %322 = vrot.lane.b32.xlu0 %v288_v0, %s3043_s11 }
 0x1f9   :  { %311 = vrot.lane.b32.xlu1 %v289_v1, %s3041_s9 }
 0x1fc   :  { %335 = vrot.lane.b32.xlu0 %v288_v0, %s3044_s0  ;;  %v397_v11 = vld [vmem:[#allocation4 + $0x8] sm:$0xff] }
 0x1fd   :  { %324 = vrot.lane.b32.xlu1 %v289_v1, %s3043_s11 }
 0x200   :  { %348 = vrot.lane.b32.xlu0 %v288_v0, %s3045_s12 }
 0x201   :  { %337 = vrot.lane.b32.xlu1 %v289_v1, %s3044_s0 }
 0x204   :  { %361 = vrot.lane.b32.xlu0 %v288_v0, %s3046_s13 }
 0x205   :  { %350 = vrot.lane.b32.xlu1 %v289_v1, %s3045_s12 }
 0x208   :  { %374 = vrot.lane.b32.xlu0 %v288_v0, %s3047_s14 }
 0x209   :  { %363 = vrot.lane.b32.xlu1 %v289_v1, %s3046_s13 }
 0x20c   :  { %387 = vrot.lane.b32.xlu0 %v288_v0, %s3049_s15 }
 0x20d   :  { %376 = vrot.lane.b32.xlu1 %v289_v1, %s3047_s14 }
 0x210   :  { %416 = vperm.xlu0 %3038, %v2772_v3  }
 0x211   :  { %389 = vrot.lane.b32.xlu1 %v289_v1, %s3049_s15 }
 0x262   :  { %v297_v4 = vpop.permute.xlu0 %296 }
 0x266   :  { %v310_v5 = vpop.permute.xlu0 %309 }
 0x267   :  { %v299_v6 = vpop.permute.xlu1 %298 }
 0x268   :  { %304 = vst.msk [vmem:[#allocation4 + $0x18] sm:$0xff] %vm46_vm0, %v299_v6  ;;  %v300_v9 = vsel %vm56_vm2, %v297_v4, %v299_v6 }
 0x269   :  { %v2821_v14 = vpack.c.bf16 %v300_v9, %v288_v0  ;;  %v2775_v0 = vld [vmem:[%s3907_s2 + $0x10] sm:$0xff] }
 0x26a   :  { %v323_v8 = vpop.permute.xlu0 %322 }
 0x26b   :  { %v312_v7 = vpop.permute.xlu1 %311 }
 0x26c   :  { %317 = vst.msk [vmem:[#allocation4 + $0x28] sm:$0xff] %vm46_vm0, %v312_v7  ;;  %v313_v21 = vsel %vm70_vm4, %v310_v5, %v312_v7 }
 0x26e   :  { %v336_v15 = vpop.permute.xlu0 %335 }
 0x26f   :  { %v325_v10 = vpop.permute.xlu1 %324  ;;  %v399_v12 = vld [vmem:[#allocation4 + $0x18] sm:$0xff] }
 0x270   :  { %330 = vst.msk [vmem:[#allocation4 + $0x38] sm:$0xff] %vm46_vm0, %v325_v10  ;;  %v2819_v13 = vpack.c.bf16 %v399_v12, %v397_v11  ;;  %v326_v17 = vsel %vm84_vm3, %v323_v8, %v325_v10 }
 0x271   :  { %v2825_v24 = vpack.c.bf16 %v326_v17, %v313_v21 }
 0x272   :  { %2820 = vmatprep.subr.bf16.mxu1 %v2819_v13  ;;  %v349_v23 = vpop.permute.xlu0 %348 }
 0x273   :  { %v338_v16 = vpop.permute.xlu1 %337  ;;  %2822 = vmatpush1.bf16.msra.mxu1 %v2821_v14  ;;  %v401_v19 = vld [vmem:[#allocation4 + $0x28] sm:$0xff] }
 0x274   :  { %343 = vst.msk [vmem:[#allocation4 + $0x48] sm:$0xff] %vm46_vm0, %v338_v16  ;;  %v339_v31 = vsel %vm98_vm6, %v336_v15, %v338_v16 }
 0x276   :  { %v362_v27 = vpop.permute.xlu0 %361 }
 0x277   :  { %v351_v18 = vpop.permute.xlu1 %350  ;;  %v403_v20 = vld [vmem:[#allocation4 + $0x38] sm:$0xff] }
 0x278   :  { %356 = vst.msk [vmem:[#allocation4 + $0x58] sm:$0xff] %vm46_vm0, %v351_v18  ;;  %v2823_v22 = vpack.c.bf16 %v403_v20, %v401_v19  ;;  %v352_v26 = vsel %vm112_vm5, %v349_v23, %v351_v18 }
 0x279   :  { %v2829_v33 = vpack.c.bf16 %v352_v26, %v339_v31 }
 0x27a   :  { %2824 = vmatprep.subr.bf16.mxu1 %v2823_v22  ;;  %v375_v35 = vpop.permute.xlu0 %374 }
 0x27b   :  { %v364_v25 = vpop.permute.xlu1 %363  ;;  %2826 = vmatpush1.bf16.msra.mxu1 %v2825_v24  ;;  %v405_v29 = vld [vmem:[#allocation4 + $0x48] sm:$0xff] }
 0x27c   :  { %369 = vst.msk [vmem:[#allocation4 + $0x68] sm:$0xff] %vm46_vm0, %v364_v25  ;;  %v365_v39 = vsel %vm126_vm8, %v362_v27, %v364_v25 }
 0x27e   :  { %v388_v43 = vpop.permute.xlu0 %387 }
 0x27f   :  { %v377_v28 = vpop.permute.xlu1 %376  ;;  %v407_v30 = vld [vmem:[#allocation4 + $0x58] sm:$0xff] }
 0x280   :  { %382 = vst.msk [vmem:[#allocation4 + $0x78] sm:$0xff] %vm46_vm0, %v377_v28  ;;  %v2827_v32 = vpack.c.bf16 %v407_v30, %v405_v29  ;;  %v378_v36 = vsel %vm140_vm7, %v375_v35, %v377_v28 }
 0x281   :  { %v2833_v41 = vpack.c.bf16 %v378_v36, %v365_v39 }
 0x282   :  { %2828 = vmatprep.subr.bf16.mxu1 %v2827_v32 }
 0x283   :  { %v390_v34 = vpop.permute.xlu1 %389  ;;  %2830 = vmatpush1.bf16.msra.mxu1 %v2829_v33  ;;  %v409_v37 = vld [vmem:[#allocation4 + $0x68] sm:$0xff] }
 0x284   :  { %395 = vst.msk [vmem:[#allocation4 + $0x88] sm:$0xff] %vm46_vm0, %v390_v34  ;;  %v391_v45 = vsel %vm154_vm9, %v388_v43, %v390_v34 }
 0x287   :  { %v411_v38 = vld [vmem:[#allocation4 + $0x78] sm:$0xff] }
 0x288   :  { %v2831_v40 = vpack.c.bf16 %v411_v38, %v409_v37 }
 0x28a   :  { %2832 = vmatprep.subr.bf16.mxu1 %v2831_v40 }
 0x28b   :  { %2834 = vmatpush1.bf16.msra.mxu1 %v2833_v41  ;;  %v413_v42 = vld [vmem:[#allocation4 + $0x88] sm:$0xff] }
 0x28c   :  { %438 = vmatprep.subr.mxu1 %v413_v42  ;;  %v2774_v42 = vld [vmem:[%s3908_s1 + $0x10] sm:$0xff] }
 0x28f   :  { %439 = vmatpush1.msra.mxu1 %v391_v45  ;;  %v417_v46 = vpop.permute.xlu0 %416 }
 0x290   :  { %2773 = vmatmul.mubr.msk.f32.vlgmr.msra.gmra.mrb[0].mxu1 %vm30_vm1, %v2771_v44 }
 0x291   :  { %934 = vmatprep.mubr.f32.mxu1 %v3048_v2 }
 0x363   :  { %v488_v47 = vpop.f32.mrb[0].mxu1 }
 0x364   :  { %v489_v48 = vadd.f32 %v488_v47, %v417_v46  ;;  %v490_v49 = vpop.f32.mrb[1].mxu1 }
 0x365   :  { %v491_v50 = vadd.f32 %v490_v49, %v417_v46 }
 0x366   :  { %v493_v51 = vmax.f32 %v489_v48, 0.0 }
 0x367   :  { %v494_v53 = vmax.f32 %v491_v50, 0.0 }
 0x368   :  { %v495_v54 = vmul.f32 %v493_v51, %v3175_v52 }
 0x369   :  { %v496_v56 = vmul.f32 %v494_v53, %v3183_v59 }
 0x36a   :  { %499 = vrot.lane.b32.xlu1 %v495_v54, %s3051_s22 }
 0x36b   :  { %501 = vrot.lane.b32.xlu0 %v496_v56, %s3051_s22 }
 0x3dc   :  { %v500_v58 = vpop.permute.xlu1 %499 }
 0x3dd   :  { %506 = vst.msk [vmem:[#allocation2] sm:$0xff] %vm280_vm10, %v500_v58  ;;  %v502_v60 = vpop.permute.xlu0 %501 }
 0x3de   :  { %v503_v61 = vsel %vm276_vm11, %v500_v58, %v502_v60 }
 0x3df   :  { %507 = vst.msk [vmem:[#allocation2 + $0x8] sm:$0xff] %vm282_vm12, %v503_v61 }
 0x3e4   :  { %v516_v62 = vld [vmem:[#allocation2] sm:$0xff] }
 0x3e5   :  { %520 = vrot.lane.b32.xlu1 %v516_v62, %s3042_s10 }
 0x3e6   :  { %v517_v63 = vld [vmem:[#allocation2 + $0x8] sm:$0xff] }
 0x3e7   :  { %522 = vrot.lane.b32.xlu0 %v517_v63, %s3042_s10  ;;  %515 = vst.msk [vmem:[#allocation4 + $0x8] sm:$0xff] %vm46_vm0, %v517_v63 }
 0x3e9   :  { %533 = vrot.lane.b32.xlu1 %v516_v62, %s3041_s9 }
 0x3eb   :  { %535 = vrot.lane.b32.xlu0 %v517_v63, %s3041_s9 }
 0x3ed   :  { %546 = vrot.lane.b32.xlu1 %v516_v62, %s3043_s11 }
 0x3ee   :  { %v621_v9 = vld [vmem:[#allocation4 + $0x8] sm:$0xff] }
 0x3ef   :  { %548 = vrot.lane.b32.xlu0 %v517_v63, %s3043_s11 }
 0x3f1   :  { %559 = vrot.lane.b32.xlu1 %v516_v62, %s3044_s0 }
 0x3f3   :  { %561 = vrot.lane.b32.xlu0 %v517_v63, %s3044_s0 }
 0x3f5   :  { %572 = vrot.lane.b32.xlu1 %v516_v62, %s3045_s12 }
 0x3f7   :  { %574 = vrot.lane.b32.xlu0 %v517_v63, %s3045_s12 }
 0x3f9   :  { %585 = vrot.lane.b32.xlu1 %v516_v62, %s3046_s13 }
 0x3fb   :  { %587 = vrot.lane.b32.xlu0 %v517_v63, %s3046_s13 }
 0x3fd   :  { %598 = vrot.lane.b32.xlu1 %v516_v62, %s3047_s14 }
 0x3ff   :  { %600 = vrot.lane.b32.xlu0 %v517_v63, %s3047_s14 }
 0x401   :  { %611 = vrot.lane.b32.xlu1 %v516_v62, %s3049_s15 }
 0x403   :  { %613 = vrot.lane.b32.xlu0 %v517_v63, %s3049_s15 }
 0x405   :  { %640 = vperm.xlu1 %3039, %v2775_v0  }
 0x457   :  { %v521_v1 = vpop.permute.xlu1 %520 }
 0x459   :  { %v523_v3 = vpop.permute.xlu0 %522 }
 0x45a   :  { %528 = vst.msk [vmem:[#allocation4 + $0x18] sm:$0xff] %vm46_vm0, %v523_v3  ;;  %v524_v7 = vsel %vm56_vm2, %v521_v1, %v523_v3 }
 0x45b   :  { %v534_v4 = vpop.permute.xlu1 %533  ;;  %v2837_v12 = vpack.c.bf16 %v524_v7, %v516_v62  ;;  %v2778_v62 = vld [vmem:[%s3907_s2 + $0x18] sm:$0xff] }
 0x45d   :  { %v536_v5 = vpop.permute.xlu0 %535 }
 0x45e   :  { %541 = vst.msk [vmem:[#allocation4 + $0x28] sm:$0xff] %vm46_vm0, %v536_v5  ;;  %v537_v19 = vsel %vm70_vm4, %v534_v4, %v536_v5 }
 0x45f   :  { %v547_v6 = vpop.permute.xlu1 %546 }
 0x461   :  { %v549_v8 = vpop.permute.xlu0 %548  ;;  %v623_v10 = vld [vmem:[#allocation4 + $0x18] sm:$0xff] }
 0x462   :  { %554 = vst.msk [vmem:[#allocation4 + $0x38] sm:$0xff] %vm46_vm0, %v549_v8  ;;  %v2835_v11 = vpack.c.bf16 %v623_v10, %v621_v9  ;;  %v550_v15 = vsel %vm84_vm3, %v547_v6, %v549_v8 }
 0x463   :  { %v560_v13 = vpop.permute.xlu1 %559  ;;  %v2841_v22 = vpack.c.bf16 %v550_v15, %v537_v19 }
 0x464   :  { %2836 = vmatprep.subr.bf16.mxu0 %v2835_v11 }
 0x465   :  { %v562_v14 = vpop.permute.xlu0 %561  ;;  %2838 = vmatpush1.bf16.msra.mxu0 %v2837_v12  ;;  %v625_v17 = vld [vmem:[#allocation4 + $0x28] sm:$0xff] }
 0x466   :  { %567 = vst.msk [vmem:[#allocation4 + $0x48] sm:$0xff] %vm46_vm0, %v562_v14  ;;  %v563_v29 = vsel %vm98_vm6, %v560_v13, %v562_v14 }
 0x467   :  { %v573_v21 = vpop.permute.xlu1 %572 }
 0x469   :  { %v575_v16 = vpop.permute.xlu0 %574  ;;  %v627_v18 = vld [vmem:[#allocation4 + $0x38] sm:$0xff] }
 0x46a   :  { %580 = vst.msk [vmem:[#allocation4 + $0x58] sm:$0xff] %vm46_vm0, %v575_v16  ;;  %v2839_v20 = vpack.c.bf16 %v627_v18, %v625_v17  ;;  %v576_v24 = vsel %vm112_vm5, %v573_v21, %v575_v16 }
 0x46b   :  { %v586_v25 = vpop.permute.xlu1 %585  ;;  %v2845_v31 = vpack.c.bf16 %v576_v24, %v563_v29 }
 0x46c   :  { %2840 = vmatprep.subr.bf16.mxu0 %v2839_v20 }
 0x46d   :  { %v588_v23 = vpop.permute.xlu0 %587  ;;  %2842 = vmatpush1.bf16.msra.mxu0 %v2841_v22  ;;  %v629_v27 = vld [vmem:[#allocation4 + $0x48] sm:$0xff] }
 0x46e   :  { %593 = vst.msk [vmem:[#allocation4 + $0x68] sm:$0xff] %vm46_vm0, %v588_v23  ;;  %v589_v37 = vsel %vm126_vm8, %v586_v25, %v588_v23 }
 0x46f   :  { %v599_v33 = vpop.permute.xlu1 %598 }
 0x471   :  { %v601_v26 = vpop.permute.xlu0 %600  ;;  %v631_v28 = vld [vmem:[#allocation4 + $0x58] sm:$0xff] }
 0x472   :  { %606 = vst.msk [vmem:[#allocation4 + $0x78] sm:$0xff] %vm46_vm0, %v601_v26  ;;  %v2843_v30 = vpack.c.bf16 %v631_v28, %v629_v27  ;;  %v602_v34 = vsel %vm140_vm7, %v599_v33, %v601_v26 }
 0x473   :  { %v2849_v39 = vpack.c.bf16 %v602_v34, %v589_v37  ;;  %v612_v41 = vpop.permute.xlu1 %611 }
 0x474   :  { %2844 = vmatprep.subr.bf16.mxu0 %v2843_v30 }
 0x475   :  { %v614_v32 = vpop.permute.xlu0 %613  ;;  %2846 = vmatpush1.bf16.msra.mxu0 %v2845_v31  ;;  %v633_v35 = vld [vmem:[#allocation4 + $0x68] sm:$0xff] }
 0x476   :  { %619 = vst.msk [vmem:[#allocation4 + $0x88] sm:$0xff] %vm46_vm0, %v614_v32  ;;  %v615_v43 = vsel %vm154_vm9, %v612_v41, %v614_v32 }
 0x479   :  { %v635_v36 = vld [vmem:[#allocation4 + $0x78] sm:$0xff] }
 0x47a   :  { %v2847_v38 = vpack.c.bf16 %v635_v36, %v633_v35 }
 0x47c   :  { %2848 = vmatprep.subr.bf16.mxu0 %v2847_v38 }
 0x47d   :  { %2850 = vmatpush1.bf16.msra.mxu0 %v2849_v39  ;;  %v637_v40 = vld [vmem:[#allocation4 + $0x88] sm:$0xff] }
 0x47e   :  { %662 = vmatprep.subr.mxu0 %v637_v40  ;;  %v2777_v40 = vld [vmem:[%s3908_s1 + $0x18] sm:$0xff] }
 0x481   :  { %663 = vmatpush1.msra.mxu0 %v615_v43 }
 0x482   :  { %2776 = vmatmul.mubr.msk.f32.vlgmr.msra.gmra.mrb[2].mxu0 %vm30_vm1, %v2774_v42 }
 0x483   :  { %1158 = vmatprep.mubr.f32.mxu0 %v3048_v2 }
 0x484   :  { %v641_v44 = vpop.permute.xlu1 %640 }
 0x555   :  { %v712_v45 = vpop.f32.mrb[2].mxu0 }
 0x556   :  { %v713_v46 = vadd.f32 %v712_v45, %v641_v44  ;;  %v714_v47 = vpop.f32.mrb[3].mxu0 }
 0x557   :  { %v715_v48 = vadd.f32 %v714_v47, %v641_v44 }
 0x558   :  { %v3282_v49 = vadd.f32 %v713_v46, %v3177_v55 }
 0x559   :  { %v3285_v50 = vadd.f32 %v715_v48, %v3179_v57 }
 0x55a   :  { %v719_v51 = vmul.f32 %v3282_v49, %v3175_v52 }
 0x55b   :  { %v720_v53 = vmul.f32 %v3285_v50, %v3183_v59 }
 0x55c   :  { %723 = vrot.lane.b32.xlu0 %v719_v51, %s3051_s22 }
 0x55d   :  { %725 = vrot.lane.b32.xlu1 %v720_v53, %s3051_s22 }
 0x5ce   :  { %v724_v54 = vpop.permute.xlu0 %723 }
 0x5cf   :  { %730 = vst.msk [vmem:[#allocation2] sm:$0xff] %vm280_vm10, %v724_v54  ;;  %v726_v56 = vpop.permute.xlu1 %725 }
 0x5d0   :  { %v727_v58 = vsel %vm276_vm11, %v724_v54, %v726_v56 }
 0x5d1   :  { %731 = vst.msk [vmem:[#allocation2 + $0x8] sm:$0xff] %vm282_vm12, %v727_v58 }
 0x5d6   :  { %v740_v60 = vld [vmem:[#allocation2] sm:$0xff] }
 0x5d7   :  { %744 = vrot.lane.b32.xlu0 %v740_v60, %s3042_s10 }
 0x5d8   :  { %v741_v61 = vld [vmem:[#allocation2 + $0x8] sm:$0xff] }
 0x5d9   :  { %746 = vrot.lane.b32.xlu1 %v741_v61, %s3042_s10  ;;  %739 = vst.msk [vmem:[#allocation4 + $0x8] sm:$0xff] %vm46_vm0, %v741_v61 }
 0x5db   :  { %757 = vrot.lane.b32.xlu0 %v740_v60, %s3041_s9 }
 0x5dd   :  { %759 = vrot.lane.b32.xlu1 %v741_v61, %s3041_s9 }
 0x5df   :  { %770 = vrot.lane.b32.xlu0 %v740_v60, %s3043_s11 }
 0x5e0   :  { %v845_v7 = vld [vmem:[#allocation4 + $0x8] sm:$0xff] }
 0x5e1   :  { %772 = vrot.lane.b32.xlu1 %v741_v61, %s3043_s11 }
 0x5e3   :  { %783 = vrot.lane.b32.xlu0 %v740_v60, %s3044_s0 }
 0x5e5   :  { %785 = vrot.lane.b32.xlu1 %v741_v61, %s3044_s0 }
 0x5e7   :  { %796 = vrot.lane.b32.xlu0 %v740_v60, %s3045_s12 }
 0x5e9   :  { %798 = vrot.lane.b32.xlu1 %v741_v61, %s3045_s12 }
 0x5eb   :  { %809 = vrot.lane.b32.xlu0 %v740_v60, %s3046_s13 }
 0x5ed   :  { %811 = vrot.lane.b32.xlu1 %v741_v61, %s3046_s13 }
 0x5ef   :  { %822 = vrot.lane.b32.xlu0 %v740_v60, %s3047_s14 }
 0x5f1   :  { %824 = vrot.lane.b32.xlu1 %v741_v61, %s3047_s14 }
 0x5f3   :  { %835 = vrot.lane.b32.xlu0 %v740_v60, %s3049_s15 }
 0x5f5   :  { %837 = vrot.lane.b32.xlu1 %v741_v61, %s3049_s15 }
 0x5f7   :  { %864 = vperm.xlu0 %3038, %v2778_v62   ;;  %v2781_v62 = vld [vmem:[%s3907_s2 + $0x20] sm:$0xff] }
 0x649   :  { %v745_v63 = vpop.permute.xlu0 %744 }
 0x64b   :  { %v747_v0 = vpop.permute.xlu1 %746 }
 0x64c   :  { %752 = vst.msk [vmem:[#allocation4 + $0x18] sm:$0xff] %vm46_vm0, %v747_v0  ;;  %v748_v5 = vsel %vm56_vm2, %v745_v63, %v747_v0 }
 0x64d   :  { %v758_v1 = vpop.permute.xlu0 %757  ;;  %v2853_v10 = vpack.c.bf16 %v748_v5, %v740_v60 }
 0x64f   :  { %v760_v3 = vpop.permute.xlu1 %759 }
 0x650   :  { %765 = vst.msk [vmem:[#allocation4 + $0x28] sm:$0xff] %vm46_vm0, %v760_v3  ;;  %v761_v17 = vsel %vm70_vm4, %v758_v1, %v760_v3 }
 0x651   :  { %v771_v4 = vpop.permute.xlu0 %770 }
 0x653   :  { %v773_v6 = vpop.permute.xlu1 %772  ;;  %v847_v8 = vld [vmem:[#allocation4 + $0x18] sm:$0xff] }
 0x654   :  { %778 = vst.msk [vmem:[#allocation4 + $0x38] sm:$0xff] %vm46_vm0, %v773_v6  ;;  %v2851_v9 = vpack.c.bf16 %v847_v8, %v845_v7  ;;  %v774_v13 = vsel %vm84_vm3, %v771_v4, %v773_v6 }
 0x655   :  { %v784_v11 = vpop.permute.xlu0 %783  ;;  %v2857_v20 = vpack.c.bf16 %v774_v13, %v761_v17 }
 0x656   :  { %2852 = vmatprep.subr.bf16.mxu1 %v2851_v9 }
 0x657   :  { %v786_v12 = vpop.permute.xlu1 %785  ;;  %2854 = vmatpush1.bf16.msra.mxu1 %v2853_v10  ;;  %v849_v15 = vld [vmem:[#allocation4 + $0x28] sm:$0xff] }
 0x658   :  { %791 = vst.msk [vmem:[#allocation4 + $0x48] sm:$0xff] %vm46_vm0, %v786_v12  ;;  %v787_v27 = vsel %vm98_vm6, %v784_v11, %v786_v12 }
 0x659   :  { %v797_v19 = vpop.permute.xlu0 %796 }
 0x65b   :  { %v799_v14 = vpop.permute.xlu1 %798  ;;  %v851_v16 = vld [vmem:[#allocation4 + $0x38] sm:$0xff] }
 0x65c   :  { %804 = vst.msk [vmem:[#allocation4 + $0x58] sm:$0xff] %vm46_vm0, %v799_v14  ;;  %v2855_v18 = vpack.c.bf16 %v851_v16, %v849_v15  ;;  %v800_v22 = vsel %vm112_vm5, %v797_v19, %v799_v14 }
 0x65d   :  { %v810_v23 = vpop.permute.xlu0 %809  ;;  %v2861_v29 = vpack.c.bf16 %v800_v22, %v787_v27 }
 0x65e   :  { %2856 = vmatprep.subr.bf16.mxu1 %v2855_v18 }
 0x65f   :  { %v812_v21 = vpop.permute.xlu1 %811  ;;  %2858 = vmatpush1.bf16.msra.mxu1 %v2857_v20  ;;  %v853_v25 = vld [vmem:[#allocation4 + $0x48] sm:$0xff] }
 0x660   :  { %817 = vst.msk [vmem:[#allocation4 + $0x68] sm:$0xff] %vm46_vm0, %v812_v21  ;;  %v813_v35 = vsel %vm126_vm8, %v810_v23, %v812_v21 }
 0x661   :  { %v823_v31 = vpop.permute.xlu0 %822 }
 0x663   :  { %v825_v24 = vpop.permute.xlu1 %824  ;;  %v855_v26 = vld [vmem:[#allocation4 + $0x58] sm:$0xff] }
 0x664   :  { %830 = vst.msk [vmem:[#allocation4 + $0x78] sm:$0xff] %vm46_vm0, %v825_v24  ;;  %v2859_v28 = vpack.c.bf16 %v855_v26, %v853_v25  ;;  %v826_v32 = vsel %vm140_vm7, %v823_v31, %v825_v24 }
 0x665   :  { %v2865_v37 = vpack.c.bf16 %v826_v32, %v813_v35  ;;  %v836_v39 = vpop.permute.xlu0 %835 }
 0x666   :  { %2860 = vmatprep.subr.bf16.mxu1 %v2859_v28 }
 0x667   :  { %v838_v30 = vpop.permute.xlu1 %837  ;;  %2862 = vmatpush1.bf16.msra.mxu1 %v2861_v29  ;;  %v857_v33 = vld [vmem:[#allocation4 + $0x68] sm:$0xff] }
 0x668   :  { %843 = vst.msk [vmem:[#allocation4 + $0x88] sm:$0xff] %vm46_vm0, %v838_v30  ;;  %v839_v41 = vsel %vm154_vm9, %v836_v39, %v838_v30 }
 0x66b   :  { %v859_v34 = vld [vmem:[#allocation4 + $0x78] sm:$0xff] }
 0x66c   :  { %v2863_v36 = vpack.c.bf16 %v859_v34, %v857_v33 }
 0x66e   :  { %2864 = vmatprep.subr.bf16.mxu1 %v2863_v36 }
 0x66f   :  { %2866 = vmatpush1.bf16.msra.mxu1 %v2865_v37  ;;  %v861_v38 = vld [vmem:[#allocation4 + $0x88] sm:$0xff] }
 0x670   :  { %886 = vmatprep.subr.mxu1 %v861_v38 }
 0x673   :  { %887 = vmatpush1.msra.mxu1 %v839_v41 }
 0x674   :  { %2779 = vmatmul.mubr.msk.f32.vlgmr.msra.gmra.mrb[2].mxu1 %vm30_vm1, %v2777_v40  ;;  %v2780_v40 = vld [vmem:[%s3908_s1 + $0x20] sm:$0xff] }
 0x675   :  { %1382 = vmatprep.mubr.f32.mxu1 %v3048_v2 }
 0x676   :  { %v865_v42 = vpop.permute.xlu0 %864 }
 0x747   :  { %v936_v43 = vpop.f32.mrb[2].mxu1 }
 0x748   :  { %v937_v44 = vadd.f32 %v936_v43, %v865_v42  ;;  %v938_v45 = vpop.f32.mrb[3].mxu1 }
 0x749   :  { %v939_v46 = vadd.f32 %v938_v45, %v865_v42 }
 0x74a   :  { %v941_v47 = vmax.f32 %v937_v44, 0.0 }
 0x74b   :  { %v942_v48 = vmax.f32 %v939_v46, 0.0 }
 0x74c   :  { %v943_v51 = vmul.f32 %v941_v47, %v3175_v52 }
 0x74d   :  { %v944_v53 = vmul.f32 %v942_v48, %v3183_v59 }
 0x74e   :  { %947 = vrot.lane.b32.xlu1 %v943_v51, %s3051_s22 }
 0x74f   :  { %949 = vrot.lane.b32.xlu0 %v944_v53, %s3051_s22 }
 0x7c0   :  { %v948_v54 = vpop.permute.xlu1 %947 }
 0x7c1   :  { %954 = vst.msk [vmem:[#allocation2] sm:$0xff] %vm280_vm10, %v948_v54  ;;  %v950_v56 = vpop.permute.xlu0 %949 }
 0x7c2   :  { %v951_v58 = vsel %vm276_vm11, %v948_v54, %v950_v56 }
 0x7c3   :  { %955 = vst.msk [vmem:[#allocation2 + $0x8] sm:$0xff] %vm282_vm12, %v951_v58 }
 0x7c8   :  { %v964_v60 = vld [vmem:[#allocation2] sm:$0xff] }
 0x7c9   :  { %968 = vrot.lane.b32.xlu1 %v964_v60, %s3042_s10 }
 0x7ca   :  { %v965_v61 = vld [vmem:[#allocation2 + $0x8] sm:$0xff] }
 0x7cb   :  { %970 = vrot.lane.b32.xlu0 %v965_v61, %s3042_s10  ;;  %963 = vst.msk [vmem:[#allocation4 + $0x8] sm:$0xff] %vm46_vm0, %v965_v61 }
 0x7cd   :  { %981 = vrot.lane.b32.xlu1 %v964_v60, %s3041_s9 }
 0x7cf   :  { %983 = vrot.lane.b32.xlu0 %v965_v61, %s3041_s9 }
 0x7d1   :  { %994 = vrot.lane.b32.xlu1 %v964_v60, %s3043_s11 }
 0x7d2   :  { %v1069_v7 = vld [vmem:[#allocation4 + $0x8] sm:$0xff] }
 0x7d3   :  { %996 = vrot.lane.b32.xlu0 %v965_v61, %s3043_s11 }
 0x7d5   :  { %1007 = vrot.lane.b32.xlu1 %v964_v60, %s3044_s0 }
 0x7d7   :  { %1009 = vrot.lane.b32.xlu0 %v965_v61, %s3044_s0 }
 0x7d9   :  { %1020 = vrot.lane.b32.xlu1 %v964_v60, %s3045_s12 }
 0x7db   :  { %1022 = vrot.lane.b32.xlu0 %v965_v61, %s3045_s12 }
 0x7dd   :  { %1033 = vrot.lane.b32.xlu1 %v964_v60, %s3046_s13 }
 0x7df   :  { %1035 = vrot.lane.b32.xlu0 %v965_v61, %s3046_s13 }
 0x7e1   :  { %1046 = vrot.lane.b32.xlu1 %v964_v60, %s3047_s14 }
 0x7e3   :  { %1048 = vrot.lane.b32.xlu0 %v965_v61, %s3047_s14 }
 0x7e5   :  { %1059 = vrot.lane.b32.xlu1 %v964_v60, %s3049_s15 }
 0x7e7   :  { %1061 = vrot.lane.b32.xlu0 %v965_v61, %s3049_s15 }
 0x7e9   :  { %1088 = vperm.xlu1 %3039, %v2781_v62  }
 0x83b   :  { %v969_v63 = vpop.permute.xlu1 %968 }
 0x83d   :  { %v971_v0 = vpop.permute.xlu0 %970 }
 0x83e   :  { %976 = vst.msk [vmem:[#allocation4 + $0x18] sm:$0xff] %vm46_vm0, %v971_v0  ;;  %v972_v5 = vsel %vm56_vm2, %v969_v63, %v971_v0 }
 0x83f   :  { %v982_v1 = vpop.permute.xlu1 %981  ;;  %v2869_v10 = vpack.c.bf16 %v972_v5, %v964_v60 }
 0x841   :  { %v984_v3 = vpop.permute.xlu0 %983 }
 0x842   :  { %989 = vst.msk [vmem:[#allocation4 + $0x28] sm:$0xff] %vm46_vm0, %v984_v3  ;;  %v985_v17 = vsel %vm70_vm4, %v982_v1, %v984_v3 }
 0x843   :  { %v995_v4 = vpop.permute.xlu1 %994 }
 0x845   :  { %v997_v6 = vpop.permute.xlu0 %996  ;;  %v1071_v8 = vld [vmem:[#allocation4 + $0x18] sm:$0xff] }
 0x846   :  { %1002 = vst.msk [vmem:[#allocation4 + $0x38] sm:$0xff] %vm46_vm0, %v997_v6  ;;  %v2867_v9 = vpack.c.bf16 %v1071_v8, %v1069_v7  ;;  %v998_v13 = vsel %vm84_vm3, %v995_v4, %v997_v6 }
 0x847   :  { %v1008_v11 = vpop.permute.xlu1 %1007  ;;  %v2873_v20 = vpack.c.bf16 %v998_v13, %v985_v17 }
 0x848   :  { %2868 = vmatprep.subr.bf16.mxu0 %v2867_v9 }
 0x849   :  { %v1010_v12 = vpop.permute.xlu0 %1009  ;;  %2870 = vmatpush1.bf16.msra.mxu0 %v2869_v10  ;;  %v1073_v15 = vld [vmem:[#allocation4 + $0x28] sm:$0xff] }
 0x84a   :  { %1015 = vst.msk [vmem:[#allocation4 + $0x48] sm:$0xff] %vm46_vm0, %v1010_v12  ;;  %v1011_v27 = vsel %vm98_vm6, %v1008_v11, %v1010_v12 }
 0x84b   :  { %v1021_v19 = vpop.permute.xlu1 %1020 }
 0x84d   :  { %v1023_v14 = vpop.permute.xlu0 %1022  ;;  %v1075_v16 = vld [vmem:[#allocation4 + $0x38] sm:$0xff] }
 0x84e   :  { %1028 = vst.msk [vmem:[#allocation4 + $0x58] sm:$0xff] %vm46_vm0, %v1023_v14  ;;  %v2871_v18 = vpack.c.bf16 %v1075_v16, %v1073_v15  ;;  %v1024_v22 = vsel %vm112_vm5, %v1021_v19, %v1023_v14 }
 0x84f   :  { %v1034_v23 = vpop.permute.xlu1 %1033  ;;  %v2877_v29 = vpack.c.bf16 %v1024_v22, %v1011_v27 }
 0x850   :  { %2872 = vmatprep.subr.bf16.mxu0 %v2871_v18 }
 0x851   :  { %v1036_v21 = vpop.permute.xlu0 %1035  ;;  %2874 = vmatpush1.bf16.msra.mxu0 %v2873_v20  ;;  %v1077_v25 = vld [vmem:[#allocation4 + $0x48] sm:$0xff] }
 0x852   :  { %1041 = vst.msk [vmem:[#allocation4 + $0x68] sm:$0xff] %vm46_vm0, %v1036_v21  ;;  %v1037_v35 = vsel %vm126_vm8, %v1034_v23, %v1036_v21 }
 0x853   :  { %v1047_v31 = vpop.permute.xlu1 %1046 }
 0x855   :  { %v1049_v24 = vpop.permute.xlu0 %1048  ;;  %v1079_v26 = vld [vmem:[#allocation4 + $0x58] sm:$0xff] }
 0x856   :  { %1054 = vst.msk [vmem:[#allocation4 + $0x78] sm:$0xff] %vm46_vm0, %v1049_v24  ;;  %v2875_v28 = vpack.c.bf16 %v1079_v26, %v1077_v25  ;;  %v1050_v32 = vsel %vm140_vm7, %v1047_v31, %v1049_v24 }
 0x857   :  { %v2881_v37 = vpack.c.bf16 %v1050_v32, %v1037_v35  ;;  %v1060_v39 = vpop.permute.xlu1 %1059 }
 0x858   :  { %2876 = vmatprep.subr.bf16.mxu0 %v2875_v28 }
 0x859   :  { %v1062_v30 = vpop.permute.xlu0 %1061  ;;  %2878 = vmatpush1.bf16.msra.mxu0 %v2877_v29  ;;  %v1081_v33 = vld [vmem:[#allocation4 + $0x68] sm:$0xff] }
 0x85a   :  { %1067 = vst.msk [vmem:[#allocation4 + $0x88] sm:$0xff] %vm46_vm0, %v1062_v30  ;;  %v1063_v41 = vsel %vm154_vm9, %v1060_v39, %v1062_v30  ;;  %v3434_v39 = vld [vmem:[#allocation3] sm:$0xff] }
 0x85d   :  { %v1083_v34 = vld [vmem:[#allocation4 + $0x78] sm:$0xff] }
 0x85e   :  { %v2879_v36 = vpack.c.bf16 %v1083_v34, %v1081_v33 }
 0x860   :  { %2880 = vmatprep.subr.bf16.mxu0 %v2879_v36 }
 0x861   :  { %2882 = vmatpush1.bf16.msra.mxu0 %v2881_v37  ;;  %v1085_v38 = vld [vmem:[#allocation4 + $0x88] sm:$0xff]  ;;  %v2783_v37 = vld [vmem:[%s3908_s1 + $0x28] sm:$0xff] }
 0x862   :  { %1110 = vmatprep.subr.mxu0 %v1085_v38 }
 0x865   :  { %1111 = vmatpush1.msra.mxu0 %v1063_v41 }
 0x866   :  { %2782 = vmatmul.mubr.msk.f32.vlgmr.msra.gmra.mrb[4].mxu0 %vm30_vm1, %v2780_v40 }
 0x867   :  { %1604 = vmatprep.mubr.f32.mxu0 %v3048_v2 }
 0x868   :  { %v1089_v42 = vpop.permute.xlu1 %1088 }
 0x939   :  { %v1160_v43 = vpop.f32.mrb[4].mxu0 }
 0x93a   :  { %v1161_v44 = vadd.f32 %v1160_v43, %v1089_v42  ;;  %v1162_v45 = vpop.f32.mrb[5].mxu0 }
 0x93b   :  { %v1163_v46 = vadd.f32 %v1162_v45, %v1089_v42 }
 0x93c   :  { %v1165_v47 = vadd.f32 %v1161_v44, %v3282_v49 }
 0x93d   :  { %v1166_v48 = vadd.f32 %v1163_v46, %v3285_v50  ;;  %v2784_v50 = vld [vmem:[%s3907_s2 + $0x28] sm:$0xff] }
 0x93e   :  { %v1167_v51 = vmul.f32 %v1165_v47, %v3175_v52 }
 0x93f   :  { %v1168_v53 = vmul.f32 %v1166_v48, %v3183_v59 }
 0x940   :  { %1171 = vrot.lane.b32.xlu0 %v1167_v51, %s3051_s22 }
 0x941   :  { %1173 = vrot.lane.b32.xlu1 %v1168_v53, %s3051_s22 }
 0x9b2   :  { %v1172_v54 = vpop.permute.xlu0 %1171 }
 0x9b3   :  { %1178 = vst.msk [vmem:[#allocation2] sm:$0xff] %vm280_vm10, %v1172_v54  ;;  %v1174_v2 = vpop.permute.xlu1 %1173 }
 0x9b4   :  { %v1175_v56 = vsel %vm276_vm11, %v1172_v54, %v1174_v2 }
 0x9b5   :  { %1179 = vst.msk [vmem:[#allocation2 + $0x8] sm:$0xff] %vm282_vm12, %v1175_v56  ;;  %v2788_v56 = vld [vmem:[%s3910_s4 + $0x8] sm:$0xff] }
 0x9ba   :  { %v1188_v58 = vld [vmem:[#allocation2] sm:$0xff] }
 0x9bb   :  { %1192 = vrot.lane.b32.xlu0 %v1188_v58, %s3042_s10 }
 0x9bc   :  { %v1189_v49 = vld [vmem:[#allocation2 + $0x8] sm:$0xff] }
 0x9bd   :  { %1194 = vrot.lane.b32.xlu1 %v1189_v49, %s3042_s10  ;;  %1187 = vst.msk [vmem:[#allocation4 + $0x8] sm:$0xff] %vm46_vm0, %v1189_v49 }
 0x9bf   :  { %1205 = vrot.lane.b32.xlu0 %v1188_v58, %s3041_s9 }
 0x9c1   :  { %1207 = vrot.lane.b32.xlu1 %v1189_v49, %s3041_s9 }
 0x9c3   :  { %1218 = vrot.lane.b32.xlu0 %v1188_v58, %s3043_s11 }
 0x9c4   :  { %v1293_v4 = vld [vmem:[#allocation4 + $0x8] sm:$0xff] }
 0x9c5   :  { %1220 = vrot.lane.b32.xlu1 %v1189_v49, %s3043_s11 }
 0x9c7   :  { %1231 = vrot.lane.b32.xlu0 %v1188_v58, %s3044_s0 }
 0x9c9   :  { %1233 = vrot.lane.b32.xlu1 %v1189_v49, %s3044_s0 }
 0x9cb   :  { %1244 = vrot.lane.b32.xlu0 %v1188_v58, %s3045_s12 }
 0x9cd   :  { %1246 = vrot.lane.b32.xlu1 %v1189_v49, %s3045_s12 }
 0x9cf   :  { %1257 = vrot.lane.b32.xlu0 %v1188_v58, %s3046_s13 }
 0x9d1   :  { %1259 = vrot.lane.b32.xlu1 %v1189_v49, %s3046_s13 }
 0x9d3   :  { %1270 = vrot.lane.b32.xlu0 %v1188_v58, %s3047_s14 }
 0x9d5   :  { %1272 = vrot.lane.b32.xlu1 %v1189_v49, %s3047_s14 }
 0x9d7   :  { %1283 = vrot.lane.b32.xlu0 %v1188_v58, %s3049_s15 }
 0x9d9   :  { %1285 = vrot.lane.b32.xlu1 %v1189_v49, %s3049_s15  ;;  %v1531_v49 = vld [vmem:[%s3910_s4] sm:$0xff] }
 0x9db   :  { %1312 = vperm.xlu0 %3038, %v2784_v50  }
 0xa2d   :  { %v1193_v60 = vpop.permute.xlu0 %1192 }
 0xa2f   :  { %v1195_v61 = vpop.permute.xlu1 %1194 }
 0xa30   :  { %1200 = vst.msk [vmem:[#allocation4 + $0x18] sm:$0xff] %vm46_vm0, %v1195_v61  ;;  %v1196_v1 = vsel %vm56_vm2, %v1193_v60, %v1195_v61 }
 0xa31   :  { %v1206_v62 = vpop.permute.xlu0 %1205  ;;  %v2885_v7 = vpack.c.bf16 %v1196_v1, %v1188_v58  ;;  %v2794_v58 = vld [vmem:[%s3910_s4 + $0x18] sm:$0xff] }
 0xa33   :  { %v1208_v63 = vpop.permute.xlu1 %1207 }
 0xa34   :  { %1213 = vst.msk [vmem:[#allocation4 + $0x28] sm:$0xff] %vm46_vm0, %v1208_v63  ;;  %v1209_v14 = vsel %vm70_vm4, %v1206_v62, %v1208_v63 }
 0xa35   :  { %v1219_v0 = vpop.permute.xlu0 %1218 }
 0xa37   :  { %v1221_v3 = vpop.permute.xlu1 %1220  ;;  %v1295_v5 = vld [vmem:[#allocation4 + $0x18] sm:$0xff] }
 0xa38   :  { %1226 = vst.msk [vmem:[#allocation4 + $0x38] sm:$0xff] %vm46_vm0, %v1221_v3  ;;  %v2883_v6 = vpack.c.bf16 %v1295_v5, %v1293_v4  ;;  %v1222_v10 = vsel %vm84_vm3, %v1219_v0, %v1221_v3 }
 0xa39   :  { %v1232_v8 = vpop.permute.xlu0 %1231  ;;  %v2889_v17 = vpack.c.bf16 %v1222_v10, %v1209_v14 }
 0xa3a   :  { %2884 = vmatprep.subr.bf16.mxu1 %v2883_v6 }
 0xa3b   :  { %v1234_v9 = vpop.permute.xlu1 %1233  ;;  %2886 = vmatpush1.bf16.msra.mxu1 %v2885_v7  ;;  %v1297_v12 = vld [vmem:[#allocation4 + $0x28] sm:$0xff] }
 0xa3c   :  { %1239 = vst.msk [vmem:[#allocation4 + $0x48] sm:$0xff] %vm46_vm0, %v1234_v9  ;;  %v1235_v24 = vsel %vm98_vm6, %v1232_v8, %v1234_v9 }
 0xa3d   :  { %v1245_v16 = vpop.permute.xlu0 %1244 }
 0xa3f   :  { %v1247_v11 = vpop.permute.xlu1 %1246  ;;  %v1299_v13 = vld [vmem:[#allocation4 + $0x38] sm:$0xff] }
 0xa40   :  { %1252 = vst.msk [vmem:[#allocation4 + $0x58] sm:$0xff] %vm46_vm0, %v1247_v11  ;;  %v2887_v15 = vpack.c.bf16 %v1299_v13, %v1297_v12  ;;  %v1248_v19 = vsel %vm112_vm5, %v1245_v16, %v1247_v11 }
 0xa41   :  { %v1258_v20 = vpop.permute.xlu0 %1257  ;;  %v2893_v26 = vpack.c.bf16 %v1248_v19, %v1235_v24 }
 0xa42   :  { %2888 = vmatprep.subr.bf16.mxu1 %v2887_v15 }
 0xa43   :  { %v1260_v18 = vpop.permute.xlu1 %1259  ;;  %2890 = vmatpush1.bf16.msra.mxu1 %v2889_v17  ;;  %v1301_v22 = vld [vmem:[#allocation4 + $0x48] sm:$0xff] }
 0xa44   :  { %1265 = vst.msk [vmem:[#allocation4 + $0x68] sm:$0xff] %vm46_vm0, %v1260_v18  ;;  %v1261_v32 = vsel %vm126_vm8, %v1258_v20, %v1260_v18 }
 0xa45   :  { %v1271_v28 = vpop.permute.xlu0 %1270 }
 0xa47   :  { %v1273_v21 = vpop.permute.xlu1 %1272  ;;  %v1303_v23 = vld [vmem:[#allocation4 + $0x58] sm:$0xff] }
 0xa48   :  { %1278 = vst.msk [vmem:[#allocation4 + $0x78] sm:$0xff] %vm46_vm0, %v1273_v21  ;;  %v2891_v25 = vpack.c.bf16 %v1303_v23, %v1301_v22  ;;  %v1274_v29 = vsel %vm140_vm7, %v1271_v28, %v1273_v21 }
 0xa49   :  { %v2897_v34 = vpack.c.bf16 %v1274_v29, %v1261_v32  ;;  %v1284_v36 = vpop.permute.xlu0 %1283 }
 0xa4a   :  { %2892 = vmatprep.subr.bf16.mxu1 %v2891_v25 }
 0xa4b   :  { %v1286_v27 = vpop.permute.xlu1 %1285  ;;  %2894 = vmatpush1.bf16.msra.mxu1 %v2893_v26  ;;  %v1305_v30 = vld [vmem:[#allocation4 + $0x68] sm:$0xff] }
 0xa4c   :  { %1291 = vst.msk [vmem:[#allocation4 + $0x88] sm:$0xff] %vm46_vm0, %v1286_v27  ;;  %v1287_v38 = vsel %vm154_vm9, %v1284_v36, %v1286_v27  ;;  %v1530_v36 = vld [vmem:[%s3911_s3] sm:$0xff] }
 0xa4f   :  { %v1307_v31 = vld [vmem:[#allocation4 + $0x78] sm:$0xff] }
 0xa50   :  { %v2895_v33 = vpack.c.bf16 %v1307_v31, %v1305_v30 }
 0xa52   :  { %2896 = vmatprep.subr.bf16.mxu1 %v2895_v33 }
 0xa53   :  { %2898 = vmatpush1.bf16.msra.mxu1 %v2897_v34  ;;  %v1309_v35 = vld [vmem:[#allocation4 + $0x88] sm:$0xff] }
 0xa54   :  { %1334 = vmatprep.subr.mxu1 %v1309_v35 }
 0xa57   :  { %1335 = vmatpush1.msra.mxu1 %v1287_v38 }
 0xa58   :  { %2785 = vmatmul.mubr.msk.f32.vlgmr.msra.gmra.mrb[4].mxu1 %vm30_vm1, %v2783_v37  ;;  %v2787_v37 = vld [vmem:[%s3911_s3 + $0x8] sm:$0xff] }
 0xa59   :  { %1700 = vmatprep.mubr.f32.mxu1 %v3434_v39 }
 0xa5a   :  { %v1313_v40 = vpop.permute.xlu0 %1312 }
 0xb2b   :  { %v1384_v41 = vpop.f32.mrb[4].mxu1 }
 0xb2c   :  { %v1385_v42 = vadd.f32 %v1384_v41, %v1313_v40  ;;  %v1386_v43 = vpop.f32.mrb[5].mxu1  ;;  %v2793_v41 = vld [vmem:[%s3911_s3 + $0x18] sm:$0xff] }
 0xb2d   :  { %v1387_v44 = vadd.f32 %v1386_v43, %v1313_v40  ;;  %v2790_v40 = vld [vmem:[%s3911_s3 + $0x10] sm:$0xff] }
 0xb2e   :  { %v1389_v45 = vadd.f32 %v1385_v42, %v3177_v55 }
 0xb2f   :  { %v1390_v46 = vadd.f32 %v1387_v44, %v3179_v57  ;;  %v2791_v57 = vld [vmem:[%s3910_s4 + $0x10] sm:$0xff] }
 0xb30   :  { %v1391_v47 = vmul.f32 %v1389_v45, %v3175_v52 }
 0xb31   :  { %v1392_v48 = vmul.f32 %v1390_v46, %v3183_v59 }
 0xb32   :  { %1395 = vrot.lane.b32.xlu1 %v1391_v47, %s3051_s22 }
 0xb33   :  { %1397 = vrot.lane.b32.xlu0 %v1392_v48, %s3051_s22 }
 0xba4   :  { %v1396_v51 = vpop.permute.xlu1 %1395 }
 0xba5   :  { %1402 = vst.msk [vmem:[#allocation2] sm:$0xff] %vm280_vm10, %v1396_v51  ;;  %v1398_v53 = vpop.permute.xlu0 %1397 }
 0xba6   :  { %v1399_v54 = vsel %vm276_vm11, %v1396_v51, %v1398_v53 }
 0xba7   :  { %1403 = vst.msk [vmem:[#allocation2 + $0x8] sm:$0xff] %vm282_vm12, %v1399_v54 }
 0xbac   :  { %v1408_v2 = vld [vmem:[#allocation2] sm:$0xff] }
 0xbad   :  { %1412 = vrot.lane.b32.xlu1 %v1408_v2, %s3042_s10 }
 0xbae   :  { %v1409_v55 = vld [vmem:[#allocation2 + $0x8] sm:$0xff] }
 0xbaf   :  { %1414 = vrot.lane.b32.xlu0 %v1409_v55, %s3042_s10  ;;  %1407 = vst.msk [vmem:[#allocation4 + $0x8] sm:$0xff] %vm46_vm0, %v1409_v55 }
 0xbb1   :  { %1425 = vrot.lane.b32.xlu1 %v1408_v2, %s3041_s9 }
 0xbb3   :  { %1427 = vrot.lane.b32.xlu0 %v1409_v55, %s3041_s9 }
 0xbb5   :  { %1438 = vrot.lane.b32.xlu1 %v1408_v2, %s3043_s11 }
 0xbb6   :  { %v1513_v3 = vld [vmem:[#allocation4 + $0x8] sm:$0xff] }
 0xbb7   :  { %1440 = vrot.lane.b32.xlu0 %v1409_v55, %s3043_s11 }
 0xbb9   :  { %1451 = vrot.lane.b32.xlu1 %v1408_v2, %s3044_s0 }
 0xbbb   :  { %1453 = vrot.lane.b32.xlu0 %v1409_v55, %s3044_s0 }
 0xbbd   :  { %1464 = vrot.lane.b32.xlu1 %v1408_v2, %s3045_s12 }
 0xbbf   :  { %1466 = vrot.lane.b32.xlu0 %v1409_v55, %s3045_s12 }
 0xbc1   :  { %1477 = vrot.lane.b32.xlu1 %v1408_v2, %s3046_s13 }
 0xbc3   :  { %1479 = vrot.lane.b32.xlu0 %v1409_v55, %s3046_s13 }
 0xbc5   :  { %1490 = vrot.lane.b32.xlu1 %v1408_v2, %s3047_s14 }
 0xbc7   :  { %1492 = vrot.lane.b32.xlu0 %v1409_v55, %s3047_s14 }
 0xbc9   :  { %1503 = vrot.lane.b32.xlu1 %v1408_v2, %s3049_s15 }
 0xbcb   :  { %1505 = vrot.lane.b32.xlu0 %v1409_v55, %s3049_s15 }
 0xbcd   :  { %1727 = vperm.xlu1 %3039, %v2791_v57  }
 0xbcf   :  { %1630 = vperm.xlu0 %3038, %v2788_v56  }
 0xbd1   :  { %1824 = vperm.xlu1 %3039, %v2794_v58  }
 0xbd3   :  { %1534 = vperm.xlu0 %3038, %v1531_v49  }
 0xc1f   :  { %v1413_v50 = vpop.permute.xlu1 %1412 }
 0xc21   :  { %v1415_v60 = vpop.permute.xlu0 %1414 }
 0xc22   :  { %1420 = vst.msk [vmem:[#allocation4 + $0x18] sm:$0xff] %vm46_vm0, %v1415_v60  ;;  %v1416_v0 = vsel %vm56_vm2, %v1413_v50, %v1415_v60 }
 0xc23   :  { %v1426_v61 = vpop.permute.xlu1 %1425  ;;  %v3479_v6 = vpack.c.bf16 %v1416_v0, %v1408_v2 }
 0xc25   :  { %v1428_v62 = vpop.permute.xlu0 %1427 }
 0xc26   :  { %1433 = vst.msk [vmem:[#allocation4 + $0x28] sm:$0xff] %vm46_vm0, %v1428_v62  ;;  %v1429_v13 = vsel %vm70_vm4, %v1426_v61, %v1428_v62 }
 0xc27   :  { %v1439_v63 = vpop.permute.xlu1 %1438 }
 0xc29   :  { %v1441_v1 = vpop.permute.xlu0 %1440  ;;  %v1515_v4 = vld [vmem:[#allocation4 + $0x18] sm:$0xff] }
 0xc2a   :  { %1446 = vst.msk [vmem:[#allocation4 + $0x38] sm:$0xff] %vm46_vm0, %v1441_v1  ;;  %v2899_v5 = vpack.c.bf16 %v1515_v4, %v1513_v3  ;;  %v1442_v9 = vsel %vm84_vm3, %v1439_v63, %v1441_v1 }
 0xc2b   :  { %v1452_v7 = vpop.permute.xlu1 %1451  ;;  %v2905_v16 = vpack.c.bf16 %v1442_v9, %v1429_v13 }
 0xc2c   :  { %2900 = vmatprep.subr.bf16.mxu0 %v2899_v5  ;;  %2916 = vmatprep.subr.bf16.mxu1 %v2899_v5 }
 0xc2d   :  { %v1454_v8 = vpop.permute.xlu0 %1453  ;;  %2902 = vmatpush1.bf16.msra.mxu0 %v3479_v6  ;;  %2918 = vmatpush1.bf16.msra.mxu1 %v3479_v6  ;;  %v1517_v11 = vld [vmem:[#allocation4 + $0x28] sm:$0xff] }
 0xc2e   :  { %1459 = vst.msk [vmem:[#allocation4 + $0x48] sm:$0xff] %vm46_vm0, %v1454_v8  ;;  %v1455_v23 = vsel %vm98_vm6, %v1452_v7, %v1454_v8 }
 0xc2f   :  { %v1465_v15 = vpop.permute.xlu1 %1464 }
 0xc31   :  { %v1467_v10 = vpop.permute.xlu0 %1466  ;;  %v1519_v12 = vld [vmem:[#allocation4 + $0x38] sm:$0xff] }
 0xc32   :  { %1472 = vst.msk [vmem:[#allocation4 + $0x58] sm:$0xff] %vm46_vm0, %v1467_v10  ;;  %v2903_v14 = vpack.c.bf16 %v1519_v12, %v1517_v11  ;;  %v1468_v18 = vsel %vm112_vm5, %v1465_v15, %v1467_v10 }
 0xc33   :  { %v1478_v19 = vpop.permute.xlu1 %1477  ;;  %v2909_v25 = vpack.c.bf16 %v1468_v18, %v1455_v23 }
 0xc34   :  { %2904 = vmatprep.subr.bf16.mxu0 %v2903_v14  ;;  %2920 = vmatprep.subr.bf16.mxu1 %v2903_v14 }
 0xc35   :  { %v1480_v17 = vpop.permute.xlu0 %1479  ;;  %2906 = vmatpush1.bf16.msra.mxu0 %v2905_v16  ;;  %2922 = vmatpush1.bf16.msra.mxu1 %v2905_v16  ;;  %v1521_v21 = vld [vmem:[#allocation4 + $0x48] sm:$0xff] }
 0xc36   :  { %1485 = vst.msk [vmem:[#allocation4 + $0x68] sm:$0xff] %vm46_vm0, %v1480_v17  ;;  %v1481_v31 = vsel %vm126_vm8, %v1478_v19, %v1480_v17 }
 0xc37   :  { %v1491_v27 = vpop.permute.xlu1 %1490 }
 0xc39   :  { %v1493_v20 = vpop.permute.xlu0 %1492  ;;  %v1523_v22 = vld [vmem:[#allocation4 + $0x58] sm:$0xff] }
 0xc3a   :  { %1498 = vst.msk [vmem:[#allocation4 + $0x78] sm:$0xff] %vm46_vm0, %v1493_v20  ;;  %v2907_v24 = vpack.c.bf16 %v1523_v22, %v1521_v21  ;;  %v1494_v28 = vsel %vm140_vm7, %v1491_v27, %v1493_v20 }
 0xc3b   :  { %v2913_v33 = vpack.c.bf16 %v1494_v28, %v1481_v31  ;;  %v1504_v35 = vpop.permute.xlu1 %1503 }
 0xc3c   :  { %2908 = vmatprep.subr.bf16.mxu0 %v2907_v24  ;;  %2924 = vmatprep.subr.bf16.mxu1 %v2907_v24 }
 0xc3d   :  { %v1506_v26 = vpop.permute.xlu0 %1505  ;;  %2910 = vmatpush1.bf16.msra.mxu0 %v2909_v25  ;;  %2926 = vmatpush1.bf16.msra.mxu1 %v2909_v25  ;;  %v1525_v29 = vld [vmem:[#allocation4 + $0x68] sm:$0xff] }
 0xc3e   :  { %1511 = vst.msk [vmem:[#allocation4 + $0x88] sm:$0xff] %vm46_vm0, %v1506_v26  ;;  %v1507_v38 = vsel %vm154_vm9, %v1504_v35, %v1506_v26 }
 0xc41   :  { %v1527_v30 = vld [vmem:[#allocation4 + $0x78] sm:$0xff] }
 0xc42   :  { %v2911_v32 = vpack.c.bf16 %v1527_v30, %v1525_v29 }
 0xc44   :  { %2912 = vmatprep.subr.bf16.mxu0 %v2911_v32  ;;  %2928 = vmatprep.subr.bf16.mxu1 %v2911_v32 }
 0xc45   :  { %2914 = vmatpush1.bf16.msra.mxu0 %v2913_v33  ;;  %2930 = vmatpush1.bf16.msra.mxu1 %v2913_v33  ;;  %v1529_v34 = vld [vmem:[#allocation4 + $0x88] sm:$0xff] }
 0xc46   :  { %1556 = vmatprep.subr.mxu0 %v1529_v34  ;;  %1652 = vmatprep.subr.mxu1 %v1529_v34 }
 0xc49   :  { %1557 = vmatpush1.msra.mxu0 %v1507_v38  ;;  %1653 = vmatpush1.msra.mxu1 %v1507_v38 }
 0xc4a   :  { %2786 = vmatmul.mubr.msk.f32.vlgmr.msra.gmra.mrb[6].mxu0 %vm30_vm1, %v1530_v36  ;;  %2789 = vmatmul.mubr.msk.f32.vlgmr.msra.gmra.mrb[6].mxu1 %vm30_vm1, %v2787_v37 }
 0xc4b   :  { %2932 = vmatprep.subr.bf16.mxu0 %v2899_v5  ;;  %2948 = vmatprep.subr.bf16.mxu1 %v2899_v5 }
 0xc4c   :  { %2934 = vmatpush1.bf16.msra.mxu0 %v3479_v6  ;;  %2950 = vmatpush1.bf16.msra.mxu1 %v3479_v6  ;;  %v1728_v58 = vpop.permute.xlu1 %1727 }
 0xc4d   :  { %2936 = vmatprep.subr.bf16.mxu0 %v2903_v14  ;;  %2952 = vmatprep.subr.bf16.mxu1 %v2903_v14 }
 0xc4e   :  { %1797 = vmatprep.mubr.f32.mxu0 %v3434_v39  ;;  %1894 = vmatprep.mubr.f32.mxu1 %v3434_v39  ;;  %v1631_v42 = vpop.permute.xlu0 %1630 }
 0xc50   :  { %2938 = vmatpush1.bf16.msra.mxu0 %v2905_v16  ;;  %2954 = vmatpush1.bf16.msra.mxu1 %v2905_v16  ;;  %v1825_v63 = vpop.permute.xlu1 %1824 }
 0xc51   :  { %2940 = vmatprep.subr.bf16.mxu0 %v2907_v24  ;;  %2956 = vmatprep.subr.bf16.mxu1 %v2907_v24 }
 0xc52   :  { %v1535_v48 = vpop.permute.xlu0 %1534 }
 0xc54   :  { %2942 = vmatpush1.bf16.msra.mxu0 %v2909_v25  ;;  %2958 = vmatpush1.bf16.msra.mxu1 %v2909_v25 }
 0xc55   :  { %2944 = vmatprep.subr.bf16.mxu0 %v2911_v32  ;;  %2960 = vmatprep.subr.bf16.mxu1 %v2911_v32 }
 0xc58   :  { %2946 = vmatpush1.bf16.msra.mxu0 %v2913_v33  ;;  %2962 = vmatpush1.bf16.msra.mxu1 %v2913_v33 }
 0xc59   :  { %1749 = vmatprep.subr.mxu0 %v1529_v34  ;;  %1846 = vmatprep.subr.mxu1 %v1529_v34 }
 0xc5c   :  { %1750 = vmatpush1.msra.mxu0 %v1507_v38  ;;  %1847 = vmatpush1.msra.mxu1 %v1507_v38 }
 0xc5d   :  { %2792 = vmatmul.mubr.msk.f32.vlgmr.msra.gmra.mrb[8].mxu0 %vm30_vm1, %v2790_v40  ;;  %2795 = vmatmul.mubr.msk.f32.vlgmr.msra.gmra.mrb[8].mxu1 %vm30_vm1, %v2793_v41 }
 0xc5e   :  { %2115 = vmatprep.mubr.f32.mxu0 %v3434_v39  ;;  %2329 = vmatprep.mubr.f32.mxu1 %v3434_v39 }
 0xd1d   :  { %v1606_v43 = vpop.f32.mrb[6].mxu0  ;;  %v1702_v44 = vpop.f32.mrb[6].mxu1 }
 0xd1e   :  { %v1703_v45 = vadd.f32 %v1702_v44, %v1631_v42  ;;  %v1608_v46 = vpop.f32.mrb[7].mxu0  ;;  %v1704_v47 = vpop.f32.mrb[7].mxu1  ;;  %v1607_v53 = vadd.f32 %v1606_v43, %v1535_v48 }
 0xd1f   :  { %v1705_v51 = vadd.f32 %v1704_v47, %v1631_v42  ;;  %v1609_v2 = vadd.f32 %v1608_v46, %v1535_v48 }
 0xd20   :  { %v1707_v54 = vmul.f32 %v1703_v45, %v3175_v52  ;;  %v1611_v57 = vmul.f32 %v1607_v53, %v3175_v52 }
 0xd21   :  { %v1708_v55 = vmul.f32 %v1705_v51, %v3183_v59  ;;  %v1612_v56 = vmul.f32 %v1609_v2, %v3183_v59  ;;  %v1916_v51 = vld [vmem:[%s3912_s6] sm:$0x7] }
 0xd22   :  { %1711 = vrot.lane.b32.xlu1 %v1707_v54, %s3051_s22 }
 0xd23   :  { %1713 = vrot.lane.b32.xlu0 %v1708_v55, %s3051_s22 }
 0xd26   :  { %1615 = vrot.lane.b32.xlu1 %v1611_v57, %s3051_s22 }
 0xd27   :  { %1617 = vrot.lane.b32.xlu0 %v1612_v56, %s3051_s22 }
 0xd30   :  { %v1799_v49 = vpop.f32.mrb[8].mxu0  ;;  %v1896_v50 = vpop.f32.mrb[8].mxu1 }
 0xd31   :  { %v1800_v60 = vadd.f32 %v1799_v49, %v1728_v58  ;;  %v1801_v61 = vpop.f32.mrb[9].mxu0  ;;  %v1898_v62 = vpop.f32.mrb[9].mxu1  ;;  %v1897_v3 = vadd.f32 %v1896_v50, %v1825_v63 }
 0xd32   :  { %v1802_v0 = vadd.f32 %v1801_v61, %v1728_v58  ;;  %v1899_v5 = vadd.f32 %v1898_v62, %v1825_v63 }
 0xd33   :  { %v1804_v1 = vmul.f32 %v1800_v60, %v3175_v52  ;;  %v1901_v6 = vmul.f32 %v1897_v3, %v3175_v52 }
 0xd34   :  { %v1805_v4 = vmul.f32 %v1802_v0, %v3183_v59  ;;  %v1902_v7 = vmul.f32 %v1899_v5, %v3183_v59 }
 0xd35   :  { %1808 = vrot.lane.b32.xlu1 %v1804_v1, %s3051_s22 }
 0xd36   :  { %1810 = vrot.lane.b32.xlu0 %v1805_v4, %s3051_s22 }
 0xd39   :  { %1905 = vrot.lane.b32.xlu1 %v1901_v6, %s3051_s22 }
 0xd3a   :  { %1907 = vrot.lane.b32.xlu0 %v1902_v7, %s3051_s22 }
 0xd94   :  { %v1712_v8 = vpop.permute.xlu1 %1711 }
 0xd95   :  { %1719 = vst.msk [vmem:[#allocation3 + $0x10] sm:$0xff] %vm280_vm10, %v1712_v8  ;;  %v1714_v9 = vpop.permute.xlu0 %1713 }
 0xd96   :  { %v1715_v10 = vsel %vm276_vm11, %v1712_v8, %v1714_v9 }
 0xd97   :  { %1720 = vst.msk [vmem:[#allocation3 + $0x18] sm:$0xff] %vm282_vm12, %v1715_v10 }
 0xd98   :  { %v1616_v11 = vpop.permute.xlu1 %1615 }
 0xd99   :  { %1622 = vst.msk [vmem:[#allocation3] sm:$0xff] %vm280_vm10, %v1616_v11  ;;  %v1618_v12 = vpop.permute.xlu0 %1617 }
 0xd9a   :  { %v1619_v52 = vsel %vm276_vm11, %v1616_v11, %v1618_v12 }
 0xd9b   :  { %1623 = vst.msk [vmem:[#allocation3 + $0x8] sm:$0xff] %vm282_vm12, %v1619_v52 }
 0xd9c   :  { %v3539_v59 = vld [vmem:[#allocation3 + $0x10] sm:$0xff] }
 0xd9d   :  { %1951 = vrot.lane.b32.xlu1 %v3539_v59, %s3043_s11 }
 0xd9e   :  { %v3543_v13 = vld [vmem:[#allocation3 + $0x18] sm:$0xff] }
 0xd9f   :  { %1953 = vrot.lane.b32.xlu0 %v3543_v13, %s3043_s11 }
 0xda0   :  { %v3547_v14 = vld [vmem:[#allocation3] sm:$0xff] }
 0xda1   :  { %1964 = vrot.lane.b32.xlu1 %v3547_v14, %s3044_s0 }
 0xda2   :  { %v3551_v15 = vld [vmem:[#allocation3 + $0x8] sm:$0xff] }
 0xda3   :  { %1966 = vrot.lane.b32.xlu0 %v3551_v15, %s3044_s0 }
 0xda5   :  { %1977 = vrot.lane.b32.xlu1 %v3539_v59, %s3044_s0 }
 0xda7   :  { %v1809_v16 = vpop.permute.xlu1 %1808  ;;  %1979 = vrot.lane.b32.xlu0 %v3543_v13, %s3044_s0 }
 0xda8   :  { %1816 = vst.msk [vmem:[#allocation3 + $0x20] sm:$0xff] %vm280_vm10, %v1809_v16  ;;  %v1811_v17 = vpop.permute.xlu0 %1810 }
 0xda9   :  { %v1812_v18 = vsel %vm276_vm11, %v1809_v16, %v1811_v17  ;;  %2173 = vrot.lane.b32.xlu1 %v3547_v14, %s3044_s0 }
 0xdaa   :  { %1817 = vst.msk [vmem:[#allocation3 + $0x28] sm:$0xff] %vm282_vm12, %v1812_v18 }
 0xdab   :  { %v1906_v19 = vpop.permute.xlu1 %1905  ;;  %2175 = vrot.lane.b32.xlu0 %v3551_v15, %s3044_s0 }
 0xdac   :  { %1913 = vst.msk [vmem:[#allocation3 + $0x30] sm:$0xff] %vm280_vm10, %v1906_v19  ;;  %v1908_v20 = vpop.permute.xlu0 %1907 }
 0xdad   :  { %v1909_v21 = vsel %vm276_vm11, %v1906_v19, %v1908_v20  ;;  %2186 = vrot.lane.b32.xlu1 %v3539_v59, %s3044_s0 }
 0xdae   :  { %1914 = vst.msk [vmem:[#allocation3 + $0x38] sm:$0xff] %vm282_vm12, %v1909_v21 }
 0xdaf   :  { %2188 = vrot.lane.b32.xlu0 %v3543_v13, %s3044_s0  ;;  %v1921_v23 = vld [vmem:[#allocation3 + $0x20] sm:$0xff] }
 0xdb1   :  { %2199 = vrot.lane.b32.xlu1 %v3547_v14, %s3045_s12  ;;  %v1922_v24 = vld [vmem:[#allocation3 + $0x28] sm:$0xff] }
 0xdb3   :  { %2201 = vrot.lane.b32.xlu0 %v3551_v15, %s3045_s12  ;;  %v3623_v25 = vld [vmem:[#allocation3 + $0x30] sm:$0xff] }
 0xdb5   :  { %2346 = vrot.lane.b32.xlu1 %v3539_v59, %s3043_s11  ;;  %v3579_v22 = vld [vmem:[#allocation3 + $0x38] sm:$0xff] }
 0xdb6   :  { %1920 = vst.msk [vmem:[#allocation4 + $0x8] sm:$0xff] %vm46_vm0, %v3579_v22 }
 0xdb7   :  { %2348 = vrot.lane.b32.xlu0 %v3543_v13, %s3043_s11 }
 0xdb9   :  { %2359 = vrot.lane.b32.xlu1 %v3547_v14, %s3044_s0 }
 0xdbb   :  { %2361 = vrot.lane.b32.xlu0 %v3551_v15, %s3044_s0 }
 0xdbd   :  { %2372 = vrot.lane.b32.xlu1 %v3539_v59, %s3044_s0 }
 0xdbf   :  { %2374 = vrot.lane.b32.xlu0 %v3543_v13, %s3044_s0 }
 0xdc1   :  { %2558 = vrot.lane.b32.xlu1 %v3547_v14, %s3044_s0 }
 0xdc3   :  { %2560 = vrot.lane.b32.xlu0 %v3551_v15, %s3044_s0 }
 0xdc5   :  { %2571 = vrot.lane.b32.xlu1 %v3539_v59, %s3044_s0 }
 0xdc7   :  { %2573 = vrot.lane.b32.xlu0 %v3543_v13, %s3044_s0 }
 0xdc9   :  { %2424 = vrot.lane.b32.xlu1 %v3539_v59, %s3046_s13 }
 0xdcb   :  { %2426 = vrot.lane.b32.xlu0 %v3543_v13, %s3046_s13 }
 0xdcd   :  { %2437 = vrot.lane.b32.xlu1 %v3547_v14, %s3047_s14 }
 0xdcf   :  { %2439 = vrot.lane.b32.xlu0 %v3551_v15, %s3047_s14 }
 0xdd1   :  { %2584 = vrot.lane.b32.xlu1 %v3547_v14, %s3045_s12 }
 0xdd3   :  { %2586 = vrot.lane.b32.xlu0 %v3551_v15, %s3045_s12 }
 0xdd5   :  { %2450 = vrot.lane.b32.xlu1 %v3539_v59, %s3047_s14 }
 0xdd7   :  { %2452 = vrot.lane.b32.xlu0 %v3543_v13, %s3047_s14 }
 0xdd9   :  { %2636 = vrot.lane.b32.xlu1 %v3547_v14, %s3047_s14 }
 0xddb   :  { %2638 = vrot.lane.b32.xlu0 %v3551_v15, %s3047_s14 }
 0xddd   :  { %1925 = vrot.lane.b32.xlu1 %v1921_v23, %s3042_s10 }
 0xddf   :  { %1927 = vrot.lane.b32.xlu0 %v1922_v24, %s3042_s10 }
 0xde1   :  { %1938 = vrot.lane.b32.xlu1 %v3623_v25, %s3042_s10 }
 0xde3   :  { %1940 = vrot.lane.b32.xlu0 %v3579_v22, %s3042_s10 }
 0xde5   :  { %2134 = vrot.lane.b32.xlu1 %v1921_v23, %s3042_s10 }
 0xde7   :  { %2136 = vrot.lane.b32.xlu0 %v1922_v24, %s3042_s10 }
 0xde9   :  { %2147 = vrot.lane.b32.xlu1 %v3623_v25, %s3042_s10 }
 0xdeb   :  { %2149 = vrot.lane.b32.xlu0 %v3579_v22, %s3042_s10 }
 0xded   :  { %1990 = vrot.lane.b32.xlu1 %v3623_v25, %s3043_s11 }
 0xdef   :  { %1992 = vrot.lane.b32.xlu0 %v3579_v22, %s3043_s11 }
 0xdf1   :  { %2003 = vrot.lane.b32.xlu1 %v1921_v23, %s3044_s0 }
 0xdf3   :  { %2005 = vrot.lane.b32.xlu0 %v1922_v24, %s3044_s0 }
 0xdf5   :  { %2160 = vrot.lane.b32.xlu1 %v1921_v23, %s3041_s9 }
 0xdf7   :  { %2162 = vrot.lane.b32.xlu0 %v1922_v24, %s3041_s9 }
 0xdf9   :  { %2016 = vrot.lane.b32.xlu1 %v3623_v25, %s3044_s0 }
 0xdfb   :  { %2018 = vrot.lane.b32.xlu0 %v3579_v22, %s3044_s0 }
 0xdfd   :  { %2212 = vrot.lane.b32.xlu1 %v1921_v23, %s3044_s0 }
 0xdff   :  { %2214 = vrot.lane.b32.xlu0 %v1922_v24, %s3044_s0 }
 0xe01   :  { %2225 = vrot.lane.b32.xlu1 %v3623_v25, %s3044_s0 }
 0xe03   :  { %2227 = vrot.lane.b32.xlu0 %v3579_v22, %s3044_s0 }
 0xe05   :  { %2385 = vrot.lane.b32.xlu1 %v3623_v25, %s3043_s11 }
 0xe07   :  { %2387 = vrot.lane.b32.xlu0 %v3579_v22, %s3043_s11 }
 0xe09   :  { %2238 = vrot.lane.b32.xlu1 %v1921_v23, %s3045_s12 }
 0xe0b   :  { %2240 = vrot.lane.b32.xlu0 %v1922_v24, %s3045_s12 }
 0xe0d   :  { %2398 = vrot.lane.b32.xlu1 %v1921_v23, %s3044_s0 }
 0xe0f   :  { %2400 = vrot.lane.b32.xlu0 %v1922_v24, %s3044_s0  ;;  %v1952_v26 = vpop.permute.xlu1 %1951 }
 0xe11   :  { %v1954_v27 = vpop.permute.xlu0 %1953  ;;  %2411 = vrot.lane.b32.xlu1 %v3623_v25, %s3044_s0 }
 0xe12   :  { %v3664_v28 = vsel %vm84_vm3, %v1952_v26, %v1954_v27  ;;  %1959 = vst.msk [vmem:[#allocation4 + $0x38] sm:$0xff] %vm46_vm0, %v1954_v27 }
 0xe13   :  { %2413 = vrot.lane.b32.xlu0 %v3579_v22, %s3044_s0  ;;  %v1965_v29 = vpop.permute.xlu1 %1964 }
 0xe15   :  { %v1967_v30 = vpop.permute.xlu0 %1966  ;;  %2597 = vrot.lane.b32.xlu1 %v1921_v23, %s3044_s0 }
 0xe16   :  { %v3671_v31 = vsel %vm98_vm6, %v1965_v29, %v1967_v30  ;;  %1972 = vst.msk [vmem:[#allocation4 + $0x48] sm:$0xff] %vm46_vm0, %v1967_v30  ;;  %v2026_v29 = vld [vmem:[#allocation4 + $0x8] sm:$0xff] }
 0xe17   :  { %2599 = vrot.lane.b32.xlu0 %v1922_v24, %s3044_s0  ;;  %v1978_v32 = vpop.permute.xlu1 %1977 }
 0xe19   :  { %v1980_v33 = vpop.permute.xlu0 %1979  ;;  %2610 = vrot.lane.b32.xlu1 %v3623_v25, %s3044_s0  ;;  %v3685_v37 = vld [vmem:[#allocation4 + $0x38] sm:$0xff] }
 0xe1a   :  { %v3678_v34 = vsel %vm98_vm6, %v1978_v32, %v1980_v33  ;;  %1985 = vst.msk [vmem:[#allocation4 + $0x58] sm:$0xff] %vm46_vm0, %v1980_v33 }
 0xe1b   :  { %2612 = vrot.lane.b32.xlu0 %v3579_v22, %s3044_s0  ;;  %v2174_v35 = vpop.permute.xlu1 %2173  ;;  %v2973_v36 = vpack.c.bf16 %v3678_v34, %v3671_v31 }
 0xe1d   :  { %v2176_v38 = vpop.permute.xlu0 %2175  ;;  %2623 = vrot.lane.b32.xlu1 %v1921_v23, %s3045_s12  ;;  %v3693_v42 = vld [vmem:[#allocation4 + $0x48] sm:$0xff] }
 0xe1e   :  { %v3689_v40 = vsel %vm98_vm6, %v2174_v35, %v2176_v38  ;;  %2181 = vst.msk [vmem:[#allocation4 + $0x38] sm:$0xff] %vm46_vm0, %v2176_v38 }
 0xe1f   :  { %2625 = vrot.lane.b32.xlu0 %v1922_v24, %s3045_s12  ;;  %v2187_v41 = vpop.permute.xlu1 %2186 }
 0xe21   :  { %v2189_v43 = vpop.permute.xlu0 %2188  ;;  %2649 = vrot.lane.b32.xlu1 %v3539_v59, %s3047_s14  ;;  %v3703_v46 = vld [vmem:[#allocation4 + $0x58] sm:$0xff] }
 0xe22   :  { %v3698_v44 = vsel %vm98_vm6, %v2187_v41, %v2189_v43  ;;  %2194 = vst.msk [vmem:[#allocation4 + $0x48] sm:$0xff] %vm46_vm0, %v2189_v43 }
 0xe23   :  { %2651 = vrot.lane.b32.xlu0 %v3543_v13, %s3047_s14  ;;  %v2200_v45 = vpop.permute.xlu1 %2199 }
 0xe25   :  { %v2202_v47 = vpop.permute.xlu0 %2201  ;;  %2662 = vrot.lane.b32.xlu1 %v3547_v14, %s3049_s15 }
 0xe26   :  { %v3708_v48 = vsel %vm112_vm5, %v2200_v45, %v2202_v47  ;;  %2207 = vst.msk [vmem:[#allocation4 + $0x58] sm:$0xff] %vm46_vm0, %v2202_v47 }
 0xe27   :  { %2664 = vrot.lane.b32.xlu0 %v3551_v15, %s3049_s15  ;;  %v2347_v53 = vpop.permute.xlu1 %2346  ;;  %v2989_v54 = vpack.c.bf16 %v3708_v48, %v3698_v44 }
 0xe29   :  { %v3718_v2 = vpop.permute.xlu0 %2348  ;;  %2045 = vperm.xlu1 %3039, %v1916_v51  }
 0xe2a   :  { %v3722_v55 = vsel %vm84_vm3, %v2347_v53, %v3718_v2  ;;  %v2971_v53 = vpack.c.bf16 %v3703_v46, %v3693_v42 }
 0xe2b   :  { %v2360_v57 = vpop.permute.xlu1 %2359 }
 0xe2d   :  { %v3724_v56 = vpop.permute.xlu0 %2361 }
 0xe2e   :  { %v3728_v58 = vsel %vm98_vm6, %v2360_v57, %v3724_v56 }
 0xe2f   :  { %v2373_v49 = vpop.permute.xlu1 %2372  ;;  %v2997_v50 = vpack.c.bf16 %v3728_v58, %v3722_v55 }
 0xe31   :  { %v3732_v60 = vpop.permute.xlu0 %2374 }
 0xe32   :  { %v3736_v61 = vsel %vm98_vm6, %v2373_v49, %v3732_v60 }
 0xe33   :  { %v2559_v62 = vpop.permute.xlu1 %2558 }
 0xe35   :  { %v3738_v63 = vpop.permute.xlu0 %2560 }
 0xe36   :  { %v3742_v0 = vsel %vm98_vm6, %v2559_v62, %v3738_v63 }
 0xe37   :  { %v2572_v1 = vpop.permute.xlu1 %2571 }
 0xe39   :  { %v3744_v3 = vpop.permute.xlu0 %2573 }
 0xe3a   :  { %v3748_v4 = vsel %vm98_vm6, %v2572_v1, %v3744_v3 }
 0xe3b   :  { %v2425_v5 = vpop.permute.xlu1 %2424  ;;  %v3013_v6 = vpack.c.bf16 %v3748_v4, %v3742_v0 }
 0xe3d   :  { %v3752_v7 = vpop.permute.xlu0 %2426 }
 0xe3e   :  { %v3756_v8 = vsel %vm126_vm8, %v2425_v5, %v3752_v7 }
 0xe3f   :  { %v2438_v9 = vpop.permute.xlu1 %2437 }
 0xe41   :  { %v3758_v10 = vpop.permute.xlu0 %2439 }
 0xe42   :  { %v3762_v11 = vsel %vm140_vm7, %v2438_v9, %v3758_v10 }
 0xe43   :  { %v2585_v12 = vpop.permute.xlu1 %2584  ;;  %v3009_v52 = vpack.c.bf16 %v3762_v11, %v3756_v8 }
 0xe45   :  { %v3766_v59 = vpop.permute.xlu0 %2586 }
 0xe46   :  { %v3770_v13 = vsel %vm112_vm5, %v2585_v12, %v3766_v59 }
 0xe47   :  { %v2451_v14 = vpop.permute.xlu1 %2450 }
 0xe49   :  { %v3772_v15 = vpop.permute.xlu0 %2452 }
 0xe4a   :  { %v3776_v16 = vsel %vm140_vm7, %v2451_v14, %v3772_v15 }
 0xe4b   :  { %v2637_v17 = vpop.permute.xlu1 %2636 }
 0xe4d   :  { %v3778_v18 = vpop.permute.xlu0 %2638 }
 0xe4e   :  { %v3782_v19 = vsel %vm140_vm7, %v2637_v17, %v3778_v18 }
 0xe4f   :  { %v1926_v20 = vpop.permute.xlu1 %1925 }
 0xe51   :  { %v1928_v21 = vpop.permute.xlu0 %1927 }
 0xe52   :  { %1933 = vst.msk [vmem:[#allocation4 + $0x18] sm:$0xff] %vm46_vm0, %v1928_v21  ;;  %v1929_v26 = vsel %vm56_vm2, %v1926_v20, %v1928_v21 }
 0xe53   :  { %v1939_v22 = vpop.permute.xlu1 %1938  ;;  %v2965_v35 = vpack.c.bf16 %v1929_v26, %v3623_v25  ;;  %v2254_v26 = vld [vmem:[#allocation4 + $0x38] sm:$0xff] }
 0xe55   :  { %v1941_v23 = vpop.permute.xlu0 %1940 }
 0xe56   :  { %1946 = vst.msk [vmem:[#allocation4 + $0x28] sm:$0xff] %vm46_vm0, %v1941_v23  ;;  %v1942_v38 = vsel %vm56_vm2, %v1939_v22, %v1941_v23 }
 0xe57   :  { %v2135_v24 = vpop.permute.xlu1 %2134  ;;  %v2969_v51 = vpack.c.bf16 %v3664_v28, %v1942_v38 }
 0xe59   :  { %v2137_v27 = vpop.permute.xlu0 %2136  ;;  %v2028_v30 = vld [vmem:[#allocation4 + $0x18] sm:$0xff] }
 0xe5a   :  { %2142 = vst.msk [vmem:[#allocation4 + $0x8] sm:$0xff] %vm46_vm0, %v2137_v27  ;;  %v2963_v32 = vpack.c.bf16 %v2028_v30, %v2026_v29  ;;  %v2138_v42 = vsel %vm56_vm2, %v2135_v24, %v2137_v27  ;;  %v2258_v27 = vld [vmem:[#allocation4 + $0x58] sm:$0xff] }
 0xe5b   :  { %v2148_v33 = vpop.permute.xlu1 %2147 }
 0xe5c   :  { %2964 = vmatprep.subr.bf16.mxu0 %v2963_v32 }
 0xe5d   :  { %v2150_v41 = vpop.permute.xlu0 %2149  ;;  %2966 = vmatpush1.bf16.msra.mxu0 %v2965_v35  ;;  %v2030_v43 = vld [vmem:[#allocation4 + $0x28] sm:$0xff] }
 0xe5e   :  { %2155 = vst.msk [vmem:[#allocation4 + $0x18] sm:$0xff] %vm46_vm0, %v2150_v41  ;;  %v2967_v45 = vpack.c.bf16 %v3685_v37, %v2030_v43  ;;  %v2151_v62 = vsel %vm56_vm2, %v2148_v33, %v2150_v41  ;;  %v3822_v41 = vld [vmem:[%s3913_s5] sm:$0x7] }
 0xe5f   :  { %v1991_v47 = vpop.permute.xlu1 %1990  ;;  %v2981_v5 = vpack.c.bf16 %v2151_v62, %v2138_v42 }
 0xe60   :  { %2968 = vmatprep.subr.bf16.mxu0 %v2967_v45 }
 0xe61   :  { %v1993_v57 = vpop.permute.xlu0 %1992  ;;  %2970 = vmatpush1.bf16.msra.mxu0 %v2969_v51  ;;  %v2248_v25 = vld [vmem:[#allocation4 + $0x8] sm:$0xff] }
 0xe62   :  { %1998 = vst.msk [vmem:[#allocation4 + $0x68] sm:$0xff] %vm46_vm0, %v1993_v57  ;;  %2972 = vmatprep.subr.bf16.mxu0 %v2971_v53  ;;  %2354 = vst.msk [vmem:[#allocation4 + $0x8] sm:$0xff] %vm46_vm0, %v3718_v2 }
 0xe63   :  { %v2004_v49 = vpop.permute.xlu1 %2003 }
 0xe65   :  { %v2006_v37 = vpop.permute.xlu0 %2005  ;;  %2974 = vmatpush1.bf16.msra.mxu0 %v2973_v36  ;;  %v2250_v28 = vld [vmem:[#allocation4 + $0x18] sm:$0xff] }
 0xe66   :  { %2011 = vst.msk [vmem:[#allocation4 + $0x78] sm:$0xff] %vm46_vm0, %v2006_v37  ;;  %v2979_v46 = vpack.c.bf16 %v2250_v28, %v2248_v25  ;;  %2367 = vst.msk [vmem:[#allocation4 + $0x18] sm:$0xff] %vm46_vm0, %v3724_v56  ;;  %v2007_v34 = vsel %vm98_vm6, %v2004_v49, %v2006_v37  ;;  %v1994_v56 = vsel %vm84_vm3, %v1991_v47, %v1993_v57 }
 0xe67   :  { %v2161_v1 = vpop.permute.xlu1 %2160  ;;  %v2977_v22 = vpack.c.bf16 %v2007_v34, %v1994_v56 }
 0xe68   :  { %2980 = vmatprep.subr.bf16.mxu1 %v2979_v46 }
 0xe69   :  { %v2163_v2 = vpop.permute.xlu0 %2162  ;;  %2982 = vmatpush1.bf16.msra.mxu1 %v2981_v5  ;;  %v2460_v9 = vld [vmem:[#allocation4 + $0x8] sm:$0xff] }
 0xe6a   :  { %2168 = vst.msk [vmem:[#allocation4 + $0x28] sm:$0xff] %vm46_vm0, %v2163_v2  ;;  %2566 = vst.msk [vmem:[#allocation4 + $0x8] sm:$0xff] %vm46_vm0, %v3738_v63  ;;  %v2038_v12 = vld [vmem:[#allocation4 + $0x68] sm:$0xff]  ;;  %v2164_v23 = vsel %vm70_vm4, %v2161_v1, %v2163_v2 }
 0xe6b   :  { %v2017_v31 = vpop.permute.xlu1 %2016  ;;  %v2985_v32 = vpack.c.bf16 %v3689_v40, %v2164_v23 }
 0xe6d   :  { %v2019_v36 = vpop.permute.xlu0 %2018  ;;  %v2040_v14 = vld [vmem:[#allocation4 + $0x78] sm:$0xff] }
 0xe6e   :  { %v2462_v17 = vld [vmem:[#allocation4 + $0x18] sm:$0xff]  ;;  %2024 = vst.msk [vmem:[#allocation4 + $0x88] sm:$0xff] %vm46_vm0, %v2019_v36  ;;  %v2975_v20 = vpack.c.bf16 %v2040_v14, %v2038_v12  ;;  %v2020_v43 = vsel %vm98_vm6, %v2017_v31, %v2019_v36 }
 0xe6f   :  { %2579 = vst.msk [vmem:[#allocation4 + $0x18] sm:$0xff] %vm46_vm0, %v3744_v3  ;;  %v2213_v21 = vpop.permute.xlu1 %2212  ;;  %v2256_v3 = vld [vmem:[#allocation4 + $0x48] sm:$0xff] }
 0xe70   :  { %2976 = vmatprep.subr.bf16.mxu0 %v2975_v20  ;;  %v2987_v33 = vpack.c.bf16 %v2258_v27, %v2256_v3 }
 0xe71   :  { %v2215_v63 = vpop.permute.xlu0 %2214  ;;  %2978 = vmatpush1.bf16.msra.mxu0 %v2977_v22  ;;  %v2252_v24 = vld [vmem:[#allocation4 + $0x28] sm:$0xff] }
 0xe72   :  { %2220 = vst.msk [vmem:[#allocation4 + $0x68] sm:$0xff] %vm46_vm0, %v2215_v63  ;;  %v2983_v29 = vpack.c.bf16 %v2254_v26, %v2252_v24  ;;  %2380 = vst.msk [vmem:[#allocation4 + $0x28] sm:$0xff] %vm46_vm0, %v3732_v60  ;;  %v2995_v60 = vpack.c.bf16 %v2462_v17, %v2460_v9  ;;  %v2216_v55 = vsel %vm98_vm6, %v2213_v21, %v2215_v63  ;;  %v2672_v1 = vld [vmem:[#allocation4 + $0x8] sm:$0xff] }
 0xe73   :  { %v2226_v30 = vpop.permute.xlu1 %2225 }
 0xe74   :  { %2984 = vmatprep.subr.bf16.mxu1 %v2983_v29 }
 0xe75   :  { %v2228_v35 = vpop.permute.xlu0 %2227  ;;  %2986 = vmatpush1.bf16.msra.mxu1 %v2985_v32  ;;  %v2042_v38 = vld [vmem:[#allocation4 + $0x88] sm:$0xff] }
 0xe76   :  { %2233 = vst.msk [vmem:[#allocation4 + $0x78] sm:$0xff] %vm46_vm0, %v2228_v35  ;;  %2067 = vmatprep.subr.mxu0 %v2042_v38  ;;  %2988 = vmatprep.subr.bf16.mxu1 %v2987_v33  ;;  %v2229_v44 = vsel %vm98_vm6, %v2226_v30, %v2228_v35  ;;  %v2674_v42 = vld [vmem:[#allocation4 + $0x18] sm:$0xff] }
 0xe77   :  { %2068 = vmatpush1.msra.mxu0 %v2020_v43  ;;  %v2386_v40 = vpop.permute.xlu1 %2385  ;;  %v3011_v2 = vpack.c.bf16 %v2674_v42, %v2672_v1 }
 0xe78   :  { %2796 = vmatmul.mubr.msk.f32.vlgmr.msra.gmra.mrb[10].mxu0 %vm30_vm1, %v3822_v41  ;;  %2996 = vmatprep.subr.bf16.mxu0 %v2995_v60 }
 0xe79   :  { %v2388_v45 = vpop.permute.xlu0 %2387  ;;  %2990 = vmatpush1.bf16.msra.mxu1 %v2989_v54  ;;  %2998 = vmatpush1.bf16.msra.mxu0 %v2997_v50  ;;  %v2260_v47 = vld [vmem:[#allocation4 + $0x68] sm:$0xff] }
 0xe7a   :  { %v2464_v51 = vld [vmem:[#allocation4 + $0x28] sm:$0xff]  ;;  %2393 = vst.msk [vmem:[#allocation4 + $0x38] sm:$0xff] %vm46_vm0, %v2388_v45  ;;  %2432 = vst.msk [vmem:[#allocation4 + $0x68] sm:$0xff] %vm46_vm0, %v3752_v7  ;;  %2541 = vmatprep.mubr.f32.mxu0 %v3434_v39  ;;  %v2993_v7 = vpack.c.bf16 %v2229_v44, %v2216_v55  ;;  %v2389_v57 = vsel %vm84_vm3, %v2386_v40, %v2388_v45 }
 0xe7b   :  { %2592 = vst.msk [vmem:[#allocation4 + $0x28] sm:$0xff] %vm46_vm0, %v3766_v59  ;;  %v2239_v53 = vpop.permute.xlu1 %2238  ;;  %v3001_v28 = vpack.c.bf16 %v2389_v57, %v3736_v61 }
 0xe7d   :  { %v2241_v48 = vpop.permute.xlu0 %2240  ;;  %v2262_v54 = vld [vmem:[#allocation4 + $0x78] sm:$0xff] }
 0xe7e   :  { %2246 = vst.msk [vmem:[#allocation4 + $0x88] sm:$0xff] %vm46_vm0, %v2241_v48  ;;  %v2991_v58 = vpack.c.bf16 %v2262_v54, %v2260_v47  ;;  %2445 = vst.msk [vmem:[#allocation4 + $0x78] sm:$0xff] %vm46_vm0, %v3758_v10  ;;  %v2242_v5 = vsel %vm112_vm5, %v2239_v53, %v2241_v48 }
 0xe7f   :  { %v2399_v50 = vpop.permute.xlu1 %2398 }
 0xe80   :  { %2992 = vmatprep.subr.bf16.mxu1 %v2991_v58 }
 0xe81   :  { %v2401_v59 = vpop.permute.xlu0 %2400  ;;  %2994 = vmatpush1.bf16.msra.mxu1 %v2993_v7  ;;  %v2466_v25 = vld [vmem:[#allocation4 + $0x38] sm:$0xff]  ;;  %v2472_v49 = vld [vmem:[#allocation4 + $0x68] sm:$0xff] }
 0xe82   :  { %2406 = vst.msk [vmem:[#allocation4 + $0x48] sm:$0xff] %vm46_vm0, %v2401_v59  ;;  %v2999_v62 = vpack.c.bf16 %v2466_v25, %v2464_v51  ;;  %2644 = vst.msk [vmem:[#allocation4 + $0x68] sm:$0xff] %vm46_vm0, %v3778_v18  ;;  %v2402_v17 = vsel %vm98_vm6, %v2399_v50, %v2401_v59  ;;  %v2676_v21 = vld [vmem:[#allocation4 + $0x28] sm:$0xff] }
 0xe83   :  { %v2412_v37 = vpop.permute.xlu1 %2411 }
 0xe84   :  { %3000 = vmatprep.subr.bf16.mxu0 %v2999_v62 }
 0xe85   :  { %v2414_v10 = vpop.permute.xlu0 %2413  ;;  %3002 = vmatpush1.bf16.msra.mxu0 %v3001_v28  ;;  %v2264_v46 = vld [vmem:[#allocation4 + $0x88] sm:$0xff]  ;;  %v2474_v14 = vld [vmem:[#allocation4 + $0x78] sm:$0xff] }
 0xe86   :  { %2419 = vst.msk [vmem:[#allocation4 + $0x58] sm:$0xff] %vm46_vm0, %v2414_v10  ;;  %2281 = vmatprep.subr.mxu1 %v2264_v46  ;;  %2458 = vst.msk [vmem:[#allocation4 + $0x88] sm:$0xff] %vm46_vm0, %v3772_v15  ;;  %v2415_v15 = vsel %vm98_vm6, %v2412_v37, %v2414_v10 }
 0xe87   :  { %2282 = vmatpush1.msra.mxu1 %v2242_v5  ;;  %v2598_v18 = vpop.permute.xlu1 %2597 }
 0xe88   :  { %2797 = vmatmul.mubr.msk.f32.vlgmr.msra.gmra.mrb[10].mxu1 %vm30_vm1, %v3822_v41  ;;  %3012 = vmatprep.subr.bf16.mxu1 %v3011_v2 }
 0xe89   :  { %v2600_v61 = vpop.permute.xlu0 %2599  ;;  %3014 = vmatpush1.bf16.msra.mxu1 %v3013_v6  ;;  %2753 = vmatprep.mubr.f32.mxu1 %v3434_v39  ;;  %v2468_v34 = vld [vmem:[#allocation4 + $0x48] sm:$0xff]  ;;  %v3005_v39 = vpack.c.bf16 %v2415_v15, %v2402_v17  ;;  %v3007_v6 = vpack.c.bf16 %v2474_v14, %v2472_v49 }
 0xe8a   :  { %v2601_v9 = vsel %vm98_vm6, %v2598_v18, %v2600_v61  ;;  %2605 = vst.msk [vmem:[#allocation4 + $0x38] sm:$0xff] %vm46_vm0, %v2600_v61 }
 0xe8b   :  { %v2611_v31 = vpop.permute.xlu1 %2610  ;;  %v3017_v26 = vpack.c.bf16 %v2601_v9, %v3770_v13 }
 0xe8d   :  { %v2613_v36 = vpop.permute.xlu0 %2612  ;;  %v2470_v12 = vld [vmem:[#allocation4 + $0x58] sm:$0xff]  ;;  %v2476_v29 = vld [vmem:[#allocation4 + $0x88] sm:$0xff] }
 0xe8e   :  { %v2614_v56 = vsel %vm98_vm6, %v2611_v31, %v2613_v36  ;;  %2618 = vst.msk [vmem:[#allocation4 + $0x48] sm:$0xff] %vm46_vm0, %v2613_v36  ;;  %v3003_v0 = vpack.c.bf16 %v2470_v12, %v2468_v34 }
 0xe8f   :  { %v2624_v4 = vpop.permute.xlu1 %2623 }
 0xe90   :  { %3004 = vmatprep.subr.bf16.mxu0 %v3003_v0 }
 0xe91   :  { %v2626_v20 = vpop.permute.xlu0 %2625  ;;  %3006 = vmatpush1.bf16.msra.mxu0 %v3005_v39  ;;  %v2678_v22 = vld [vmem:[#allocation4 + $0x38] sm:$0xff] }
 0xe92   :  { %v2627_v23 = vsel %vm112_vm5, %v2624_v4, %v2626_v20  ;;  %2631 = vst.msk [vmem:[#allocation4 + $0x58] sm:$0xff] %vm46_vm0, %v2626_v20  ;;  %3008 = vmatprep.subr.bf16.mxu0 %v3007_v6  ;;  %v3015_v63 = vpack.c.bf16 %v2678_v22, %v2676_v21 }
 0xe93   :  { %v2650_v24 = vpop.permute.xlu1 %2649  ;;  %v3021_v11 = vpack.c.bf16 %v2627_v23, %v2614_v56 }
 0xe94   :  { %3016 = vmatprep.subr.bf16.mxu1 %v3015_v63 }
 0xe95   :  { %v2652_v27 = vpop.permute.xlu0 %2651  ;;  %3010 = vmatpush1.bf16.msra.mxu0 %v3009_v52  ;;  %3018 = vmatpush1.bf16.msra.mxu1 %v3017_v26  ;;  %v2680_v33 = vld [vmem:[#allocation4 + $0x48] sm:$0xff] }
 0xe96   :  { %v2653_v30 = vsel %vm140_vm7, %v2650_v24, %v2652_v27  ;;  %2657 = vst.msk [vmem:[#allocation4 + $0x78] sm:$0xff] %vm46_vm0, %v2652_v27  ;;  %2493 = vmatprep.subr.mxu0 %v2476_v29  ;;  %v2684_v52 = vld [vmem:[#allocation4 + $0x68] sm:$0xff] }
 0xe97   :  { %v2663_v32 = vpop.permute.xlu1 %2662  ;;  %v3025_v60 = vpack.c.bf16 %v2653_v30, %v3782_v19 }
 0xe99   :  { %v2665_v3 = vpop.permute.xlu0 %2664  ;;  %2494 = vmatpush1.msra.mxu0 %v3776_v16  ;;  %v2682_v35 = vld [vmem:[#allocation4 + $0x58] sm:$0xff] }
 0xe9a   :  { %v2666_v13 = vsel %vm154_vm9, %v2663_v32, %v2665_v3  ;;  %2670 = vst.msk [vmem:[#allocation4 + $0x88] sm:$0xff] %vm46_vm0, %v2665_v3  ;;  %2799 = vmatmul.mubr.msk.f32.vlgmr.msra.gmra.mrb[12].mxu0 %vm30_vm1, %v3822_v41  ;;  %v3019_v8 = vpack.c.bf16 %v2682_v35, %v2680_v33 }
 0xe9c   :  { %3020 = vmatprep.subr.bf16.mxu1 %v3019_v8 }
 0xe9d   :  { %3022 = vmatpush1.bf16.msra.mxu1 %v3021_v11  ;;  %v2686_v38 = vld [vmem:[#allocation4 + $0x78] sm:$0xff] }
 0xe9e   :  { %v3023_v43 = vpack.c.bf16 %v2686_v38, %v2684_v52 }
 0xea0   :  { %3024 = vmatprep.subr.bf16.mxu1 %v3023_v43 }
 0xea1   :  { %3026 = vmatpush1.bf16.msra.mxu1 %v3025_v60  ;;  %v2688_v16 = vld [vmem:[#allocation4 + $0x88] sm:$0xff] }
 0xea2   :  { %2705 = vmatprep.subr.mxu1 %v2688_v16 }
 0xea5   :  { %2706 = vmatpush1.msra.mxu1 %v2666_v13 }
 0xea6   :  { %2801 = vmatmul.mubr.msk.f32.vlgmr.msra.gmra.mrb[12].mxu1 %vm30_vm1, %v3822_v41 }
 0xea8   :  { %v2046_v40 = vpop.permute.xlu1 %2045 }
 0xf4b   :  { %v2117_v45 = vpop.f32.mrb[10].mxu0 }
 0xf4c   :  { %v2118_v47 = vadd.f32 %v2117_v45, %v2046_v40  ;;  %v2119_v51 = vpop.f32.mrb[11].mxu0 }
 0xf4d   :  { %v2120_v53 = vadd.f32 %v2119_v51, %v2046_v40 }
 0xf4f   :  { %v2124_v19 = vcombine.low %v2118_v47, %v2120_v53 }
 0xf51   :  { %2129 = vst.msk [vmem:[%s3914_s8] sm:$0x77] %vm3882_vm15, %v2124_v19 }
 0xf5b   :  { %v2331_v48 = vpop.f32.mrb[10].mxu1 }
 0xf5c   :  { %v2332_v41 = vadd.f32 %v2331_v48, %v2046_v40  ;;  %v2333_v54 = vpop.f32.mrb[11].mxu1 }
 0xf5d   :  { %v2334_v55 = vadd.f32 %v2333_v54, %v2046_v40 }
 0xf5f   :  { %v2338_v58 = vcombine.low %v2332_v41, %v2334_v55 }
 0xf61   :  { %2798 = vst.msk [vmem:[%s3914_s8 + $0x8] sm:$0x77] %vm3882_vm15, %v2338_v58 }
 0xf6d   :  { %v2543_v50 = vpop.f32.mrb[12].mxu0 }
 0xf6e   :  { %v2544_v7 = vadd.f32 %v2543_v50, %v2046_v40  ;;  %v2545_v57 = vpop.f32.mrb[13].mxu0 }
 0xf6f   :  { %v2546_v59 = vadd.f32 %v2545_v57, %v2046_v40 }
 0xf71   :  { %v2550_v25 = vcombine.low %v2544_v7, %v2546_v59 }
 0xf73   :  { %2800 = vst.msk [vmem:[%s3914_s8 + $0x10] sm:$0x77] %vm3882_vm15, %v2550_v25 }
 0xf79   :  { %v2755_v49 = vpop.f32.mrb[12].mxu1 }
 0xf7a   :  { %v2756_v62 = vadd.f32 %v2755_v49, %v2046_v40  ;;  %v2757_v37 = vpop.f32.mrb[13].mxu1 }
 0xf7b   :  { %v2758_v28 = vadd.f32 %v2757_v37, %v2046_v40 }
 0xf7d   :  { %v2762_v42 = vcombine.low %v2756_v62, %v2758_v28 }
 0xf7f   :  { %2802 = vst.msk [vmem:[%s3914_s8 + $0x18] sm:$0x77] %vm3882_vm15, %v2762_v42 }

</bundles_post_ra>
